<compile_context>
chip_gen: v5e
topology: v5e:2x2
jax: 0.10.0
libtpu: 0.0.40
codegen_flags: <defaults>
</compile_context>

<pallas_src>
import functools

import numpy as np
import jax
import jax.numpy as jnp
from jax.experimental import pallas as pl
from jax.experimental.pallas import tpu as pltpu


def _round_up(n, m):
    return ((n + m - 1) // m) * m


def _ms_fourier_kernel(x_ref, w_ref, o_ref, *, in_features, out_features,
                       use_vpu):
    x = x_ref[...]                       # (tm, K)   float32
    w = w_ref[...]                       # (K, 2F)   float32 = [W_high | W_low]

    if use_vpu:
        # K is tiny (e.g. 2 coords): unrolled VPU outer-product accumulation
        # keeps the <1%-utilized MXU off the critical path and co-issues with
        # the sin/cos below.
        z = x[:, 0:1] * w[0:1, :]
        for k in range(1, in_features):
            z = z + x[:, k:k + 1] * w[k:k + 1, :]
    else:
        z = jnp.dot(x, w, preferred_element_type=jnp.float32)

    s = jnp.sin(z)                       # (tm, 2F)  [sin_h | sin_l]
    c = jnp.cos(z)                       # (tm, 2F)  [cos_h | cos_l]

    F = out_features
    dt = o_ref.dtype
    # Torch layout [sin_h | cos_h | sin_l | cos_l] assembled with static
    # lane-sliced stores; the HBM writeback DMA is still one dense
    # (tm, out_dim_pad) tile.
    o_ref[:, 0 * F:1 * F] = s[:, :F].astype(dt)   # sin(x @ W_high)
    o_ref[:, 1 * F:2 * F] = c[:, :F].astype(dt)   # cos(x @ W_high)
    o_ref[:, 2 * F:3 * F] = s[:, F:].astype(dt)   # sin(x @ W_low)
    o_ref[:, 3 * F:4 * F] = c[:, F:].astype(dt)   # cos(x @ W_low)

    pad = o_ref.shape[-1] - 4 * F
    if pad:  # lane-padding columns (only when 4F % 128 != 0): keep them defined
        o_ref[:, 4 * F:] = jnp.zeros((o_ref.shape[0], pad), dt)


def multiscale_fourier_embedding(x, w_high, w_low, *, tm=4096,
                                 out_dtype=jnp.float32):
    """x: (N, in_features); w_*: (in_features, out_features).

    Returns (N, 4*out_features) laid out as
    [sin(x@W_high) | cos(x@W_high) | sin(x@W_low) | cos(x@W_low)].
    """
    N, in_features = x.shape
    in_f2, out_features = w_high.shape
    assert in_f2 == in_features and w_low.shape == w_high.shape

    f32 = jnp.float32
    x = x.astype(f32)
    # Fused, non-duplicated weights: z = x @ [W_high | W_low] is only 2F wide.
    w_cat = jnp.concatenate([w_high, w_low], axis=1).astype(f32)   # (K, 2F)

    out_dim = 4 * out_features
    out_dim_pad = _round_up(out_dim, 128)      # lane-dense output writeback
    out_bytes = jnp.dtype(out_dtype).itemsize

    # Row-tile granularity: 8 sublanes for f32, 16 for bf16 output packing.
    g = 16 if out_dtype == jnp.bfloat16 else 8
    n_g = _round_up(N, g)

    tm = max(g, min(_round_up(tm, g), n_g))
    # v7x: keep >= 2 grid steps so the "parallel" axis feeds both TensorCores.
    if n_g >= 2 * g:
        tm = min(tm, _round_up(pl.cdiv(n_g, 2), g))

    # Double-buffered VMEM estimate: lane-padded x tile + output tile +
    # resident weights. Shrink the tile if a wide out_features would blow it.
    def vmem_bytes(tm_):
        x_buf = tm_ * max(_round_up(in_features, 128), 128) * 4
        o_buf = tm_ * out_dim_pad * out_bytes
        w_buf = _round_up(in_features, 8) * _round_up(2 * out_features, 128) * 4
        return 2 * (x_buf + o_buf + w_buf)

    VMEM_BUDGET = 40 * 1024 * 1024     # headroom under v7x's 64 MiB physical
    while tm > 2 * g and vmem_bytes(tm) > VMEM_BUDGET:
        tm = max(g, _round_up(tm // 2, g))

    n_pad = _round_up(N, tm)
    x_in = x if n_pad == N else jnp.pad(x, ((0, n_pad - N), (0, 0)))
    grid = (n_pad // tm,)

    kernel = functools.partial(
        _ms_fourier_kernel,
        in_features=in_features,
        out_features=out_features,
        use_vpu=(in_features <= 8),
    )

    cost = pl.CostEstimate(
        flops=2 * n_pad * in_features * (2 * out_features),
        transcendentals=n_pad * out_dim,
        bytes_accessed=(4 * x_in.size + 4 * w_cat.size
                        + n_pad * out_dim_pad * out_bytes),
    )

    out = pl.pallas_call(
        kernel,
        out_shape=jax.ShapeDtypeStruct((n_pad, out_dim_pad), out_dtype),
        grid_spec=pltpu.PrefetchScalarGridSpec(
            num_scalar_prefetch=0,
            grid=grid,
            in_specs=[
                # row-tiled input
                pl.BlockSpec((tm, in_features), lambda i: (i, 0)),
                # fused weights stay resident across all grid steps
                pl.BlockSpec((in_features, 2 * out_features), lambda i: (0, 0)),
            ],
            out_specs=pl.BlockSpec((tm, out_dim_pad), lambda i: (i, 0)),
        ),
        compiler_params=pltpu.CompilerParams(
            dimension_semantics=("parallel",),
            # Explicit limit: above v5e's 16 MiB scoped default, with headroom
            # below v7x's 64 MiB physical VMEM.
            vmem_limit_bytes=int(min(max(vmem_bytes(tm) * 3 // 2,
                                         32 * 1024 * 1024),
                                     48 * 1024 * 1024)),
        ),
        cost_estimate=cost,
    )(x_in, w_cat)

    if n_pad != N or out_dim_pad != out_dim:
        out = out[:N, :out_dim]
    return out


def reference(x, w_high, w_low):
    zh = x @ w_high
    zl = x @ w_low
    return jnp.concatenate(
        [jnp.sin(zh), jnp.cos(zh), jnp.sin(zl), jnp.cos(zl)], axis=-1)


if __name__ == "__main__":
    # Module config: MultiscaleFourierEmbedding(in_features, out_features, scale)
    in_features = 2       # e.g. (x, t) coords typical for PINNs
    out_features = 64
    scale = 1.0
    N = 203               # deliberately NOT a multiple of the tile -> padding path

    key = jax.random.PRNGKey(0)
    kx, kh, kl = jax.random.split(key, 3)

    x = jax.random.normal(kx, (N, in_features), dtype=jnp.float32)
    # Deterministic equivalents of "torch.randn(in, out) * pi * (scale*5)" / "* pi * scale".
    w_high = (jax.random.normal(kh, (in_features, out_features), jnp.float32)
              * np.pi * scale * 5.0)
    w_low = (jax.random.normal(kl, (in_features, out_features), jnp.float32)
             * np.pi * scale)

    out = multiscale_fourier_embedding(x, w_high, w_low)
    out = jax.block_until_ready(out)

    ref = reference(x, w_high, w_low)
    # sin/cos are now evaluated directly (no phase trick); tolerance covers
    # transcendental-implementation differences at |z| up to a few tens.
    np.testing.assert_allclose(np.asarray(out), np.asarray(ref),
                               rtol=1e-5, atol=1e-4)

    print("KERNEL_OK")
</pallas_src>

<mosaic_0001>
module attributes {stable_mosaic.version = 11 : i64} {
  func.func @_ms_fourier_kernel(%arg0: i32, %arg1: memref<104x2xf32, #tpu.memory_space<vmem>>, %arg2: memref<2x128xf32, #tpu.memory_space<vmem>>, %arg3: memref<104x256xf32, #tpu.memory_space<vmem>>) attributes {dimension_semantics = [#tpu.dimension_semantics<parallel>], iteration_bounds = array<i64: 2>, scalar_prefetch = 0 : i64, scratch_operands = 0 : i64, tpu.core_type = #tpu.core_type<tc>, window_params = [{transform_indices = @transform_0, window_bounds = array<i64: 104, 2>}, {pipeline_mode = #tpu.pipeline_mode<synchronous>, transform_indices = @transform_1, window_bounds = array<i64: 2, 128>}, {transform_indices = @transform_2, window_bounds = array<i64: 104, 256>}]} {
    %c0 = arith.constant 0 : index
    %c0_0 = arith.constant 0 : index
    %0 = vector.load %arg1[%c0, %c0_0] : memref<104x2xf32, #tpu.memory_space<vmem>>, vector<104x2xf32>
    %c0_1 = arith.constant 0 : index
    %c0_2 = arith.constant 0 : index
    %1 = vector.load %arg2[%c0_1, %c0_2] : memref<2x128xf32, #tpu.memory_space<vmem>>, vector<2x128xf32>
    %2 = vector.extract_strided_slice %0 {offsets = [0, 0], sizes = [104, 1], strides = [1, 1]} : vector<104x2xf32> to vector<104x1xf32>
    %3 = vector.extract_strided_slice %1 {offsets = [0, 0], sizes = [1, 128], strides = [1, 1]} : vector<2x128xf32> to vector<1x128xf32>
    %4 = vector.broadcast %2 : vector<104x1xf32> to vector<104x128xf32>
    %5 = vector.broadcast %3 : vector<1x128xf32> to vector<104x128xf32>
    %6 = arith.mulf %4, %5 : vector<104x128xf32>
    %7 = vector.extract_strided_slice %0 {offsets = [0, 1], sizes = [104, 1], strides = [1, 1]} : vector<104x2xf32> to vector<104x1xf32>
    %8 = vector.extract_strided_slice %1 {offsets = [1, 0], sizes = [1, 128], strides = [1, 1]} : vector<2x128xf32> to vector<1x128xf32>
    %9 = vector.broadcast %7 : vector<104x1xf32> to vector<104x128xf32>
    %10 = vector.broadcast %8 : vector<1x128xf32> to vector<104x128xf32>
    %11 = arith.mulf %9, %10 : vector<104x128xf32>
    %12 = arith.addf %6, %11 : vector<104x128xf32>
    %13 = math.sin %12 : vector<104x128xf32>
    %14 = math.cos %12 : vector<104x128xf32>
    %15 = vector.extract_strided_slice %13 {offsets = [0, 0], sizes = [104, 64], strides = [1, 1]} : vector<104x128xf32> to vector<104x64xf32>
    %c0_3 = arith.constant 0 : index
    %c0_4 = arith.constant 0 : index
    %16 = vector.load %arg3[%c0_3, %c0_4] : memref<104x256xf32, #tpu.memory_space<vmem>>, vector<104x64xf32>
    tpu.vector_store %arg3[%c0_3, %c0_4], %15 {strides = array<i32>} : memref<104x256xf32, #tpu.memory_space<vmem>>, vector<104x64xf32>,
    %17 = vector.extract_strided_slice %14 {offsets = [0, 0], sizes = [104, 64], strides = [1, 1]} : vector<104x128xf32> to vector<104x64xf32>
    %c0_5 = arith.constant 0 : index
    %c64 = arith.constant 64 : index
    %18 = vector.load %arg3[%c0_5, %c64] : memref<104x256xf32, #tpu.memory_space<vmem>>, vector<104x64xf32>
    tpu.vector_store %arg3[%c0_5, %c64], %17 {strides = array<i32>} : memref<104x256xf32, #tpu.memory_space<vmem>>, vector<104x64xf32>,
    %19 = vector.extract_strided_slice %13 {offsets = [0, 64], sizes = [104, 64], strides = [1, 1]} : vector<104x128xf32> to vector<104x64xf32>
    %c0_6 = arith.constant 0 : index
    %c128 = arith.constant 128 : index
    %20 = vector.load %arg3[%c0_6, %c128] : memref<104x256xf32, #tpu.memory_space<vmem>>, vector<104x64xf32>
    tpu.vector_store %arg3[%c0_6, %c128], %19 {strides = array<i32>} : memref<104x256xf32, #tpu.memory_space<vmem>>, vector<104x64xf32>,
    %21 = vector.extract_strided_slice %14 {offsets = [0, 64], sizes = [104, 64], strides = [1, 1]} : vector<104x128xf32> to vector<104x64xf32>
    %c0_7 = arith.constant 0 : index
    %c192 = arith.constant 192 : index
    %22 = vector.load %arg3[%c0_7, %c192] : memref<104x256xf32, #tpu.memory_space<vmem>>, vector<104x64xf32>
    tpu.vector_store %arg3[%c0_7, %c192], %21 {strides = array<i32>} : memref<104x256xf32, #tpu.memory_space<vmem>>, vector<104x64xf32>,
    return
  }
  func.func @transform_0(%arg0: i32) -> (i32, i32) {
    %c0_i32 = arith.constant 0 : i32
    %c0_i32_0 = arith.constant 0 : i32
    return %arg0, %c0_i32 : i32, i32
  }
  func.func @transform_1(%arg0: i32) -> (i32, i32) {
    %c0_i32 = arith.constant 0 : i32
    %c0_i32_0 = arith.constant 0 : i32
    %c0_i32_1 = arith.constant 0 : i32
    return %c0_i32, %c0_i32_0 : i32, i32
  }
  func.func @transform_2(%arg0: i32) -> (i32, i32) {
    %c0_i32 = arith.constant 0 : i32
    %c0_i32_0 = arith.constant 0 : i32
    return %arg0, %c0_i32 : i32, i32
  }
}

</mosaic_0001>

<bundles_post_ra>
// kernel: tpu_custom_call.1
= control target key start
LH: loop header
LB: loop body
LE: loop exit
PB: predicated region body
PF: predicated region fallthrough
CT: control target
= control target key end

     0   :  { %7 = vsyncpa [#allocation3], 0  ;;  %s7369_s0 = inlined_call_operand.vmem [shape: f32[208,2], index: 0, kind: input, shape index: {}]   ;;  %s7370_s1 = inlined_call_operand.vmem [shape: f32[2,128], index: 1, kind: input, shape index: {}]   ;;  %s7371_s2 = inlined_call_operand.hbm [shape: f32[208,256], index: 2, kind: output, shape index: {}]  }
   0x1   :  { %9 = vsyncpa [#allocation3 + $0x1], 0  ;;  %s4808_s9 = smov 0   ;;  %s4810_s10 = smov 0  }
   0x2   :  { %s4812_s11 = smov 0   ;;  %s4814_s12 = smov 0  }
   0x3 LB: > { %s4829_s13 = sadd.s32 4294967295, %s4780_s12   ;;  %s4571_s14 = sadd.s32 4294967294, %s4780_s12   ;;  %s4780_s12 = sphi %s4814_s12, %s7732_s12   ;;  %s4776_s11 = sphi %s4812_s11, %s7731_s11   ;;  %s4772_s10 = sphi %s4810_s10, %s7730_s10   ;;  %s4768_s9 = sphi %s4808_s9, %s7729_s9  }
   0x4   : > { %s4833_s15 = sadd.s32 1, %s4780_s12   ;;  %s69_s16 = sadd.s32 1, %s4776_s11 }
   0x5   : > { %s66_s17 = ssub.s32 %s4780_s12, %s4833_s15  ;;  %p79_p0 = scmp.ne.s32.totalorder %s4776_s11, %s4772_s10 }
   0x6   : > { %p67_p1 = scmp.eq.s32.totalorder %s66_s17, 0  ;;  %p80_p2 = scmp.eq.s32.totalorder %s4829_s13, 1 }
   0x7   : > { %p85_p3 = scmp.ne.s32.totalorder %s4772_s10, %s4768_s9  ;;  %p86_p4 = scmp.eq.s32.totalorder %s4571_s14, 1 }
   0x8   : > { %s4844_s18 = scalar_select %p67_p1, %s4776_s11, %s69_s16  }
   0x9   : > { %p4846_p5 = por %p80_p2, %p79_p0  ;;  %p4850_p6 = por %p86_p4, %p85_p3 }
   0xa   : > { %p4574_p7 = scmp.ge.s32.totalorder %s4780_s12, 1  ;;  %p116_p8 = scmp.lt.s32.totalorder %s4780_s12, 3 }
   0xc   : > { %p117_p9 = pnand %p4574_p7, %p116_p8 }
   0xe   : > { %120 = sbr.rel (%p117_p9) target bundleno = 824 (0x338), region = 28 }
  0x13   : > { %s138_s21 = smul.u32 13, %s4829_s13  ;;  %v7379_v0 = vmov 0   ;;  %v4783_v14 = vmov 1   ;;  %v158_v16 = vld [vmem:[%s7370_s1] sm:$0x3]  ;;  %s4790_s28 = smov 64  }
  0x14   : > { %4714 = vset.pattern.permute.xlu2 %v7379_v0  ;;  %4713 = vset.pattern.permute.xlu1 %v7379_v0  ;;  %v224_v17 = vperm.slane %v158_v16, 0  ;;  %v4874_v27 = vperm.slane %v158_v16, 1  ;;  %s135_s29 = sand.u32 1, %s4772_s10   ;;  %s4660_s4 = smul.u32 208, %s4829_s13 }
  0x15   : > { %4712 = vset.pattern.permute.xlu0 %v7379_v0  ;;  %p139_p10 = scmp.lt.s32.totalorder %s138_s21, 25  ;;  %s4661_s30 = smul.u32 208, %s135_s29 }
  0x16   : > { %s4505_s7 = scalar_lea.hbm %s7371_s2, %s4660_s4  ;;  %s4493_s14 = scalar_lea.sflag [#allocation3], %s135_s29 }
  0x17   : > { %s7734_s21 = smov (!%p139_p10, %s138_s21), 25  ;;  %s6997_s3 = scalar_lea.vmem [#allocation2], %s4661_s30 }
  0x18   : > { %s4575_s22 = sshll.u32 %s7734_s21, 3  ;;  %s4506_s8 = sshll.u32 %s6997_s3, 4  ;;  %s4507_s8 = int_to_ptr.vmem [resolvable:$true] %s4506_s8 }
  0x19   : > { %s142_s25 = scalar_lea.vmem %s7369_s0, %s4575_s22  ;;  %s4508_s13 = sshll.u32 %s4505_s7, 4  ;;  %s4509_s13 = int_to_ptr.hbm [resolvable:$true] %s4508_s13 }
  0x1a   : > { %v149_v1 = vld [vmem:[%s142_s25 + $0x20] sm:$0xff]  ;;  %v147_v2 = vld [vmem:[%s142_s25 + $0x10] sm:$0xff]  ;;  %v150_v4 = vld [vmem:[%s142_s25 + $0x28] sm:$0xff]  ;;  %s4732_s16 = sshra.s32 %s4509_s13, 4  ;;  %s4738_s23 = scalar_lea.hbm %s7371_s2, 416  ;;  %s4733_s16 = int_to_ptr.hbm [resolvable:$true] %s4732_s16 }
  0x1b   : > { %v145_v3 = vld [vmem:[%s142_s25] sm:$0xff]  ;;  %181 = vperm.xlu2 %4714, %v149_v1   ;;  %171 = vperm.xlu1 %4713, %v147_v2   ;;  %v148_v5 = vld [vmem:[%s142_s25 + $0x18] sm:$0xff]  ;;  %v146_v6 = vld [vmem:[%s142_s25 + $0x8] sm:$0xff]  ;;  %s4734_s17 = scalar_lea.hbm %s4733_s16, 208  ;;  %p4739_p0 = scmp.lt.s32.totalorder %s4733_s16, %s7371_s2 }
  0x1c   : > { %161 = vperm.xlu0 %4712, %v145_v3   ;;  %v153_v7 = vld [vmem:[%s142_s25 + $0x40] sm:$0xff]  ;;  %v152_v8 = vld [vmem:[%s142_s25 + $0x38] sm:$0xff]  ;;  %v151_v9 = vld [vmem:[%s142_s25 + $0x30] sm:$0xff]  ;;  %p4735_p11 = scmp.ne.s32.totalorder %s4733_s16, %s4734_s17  ;;  %p4740_p1 = scmp.lt.s32.totalorder %s4738_s23, %s4734_s17 }
  0x1d   : > { %v156_v10 = vld [vmem:[%s142_s25 + $0x58] sm:$0xff]  ;;  %v155_v11 = vld [vmem:[%s142_s25 + $0x50] sm:$0xff]  ;;  %v154_v12 = vld [vmem:[%s142_s25 + $0x48] sm:$0xff] }
  0x1e   : > { %v157_v13 = vld [vmem:[%s142_s25 + $0x60] sm:$0xff]  ;;  %p4736_p12 = pnand %p4735_p11, %p4846_p5  ;;  %p4741_p2 = por %p4740_p1, %p4739_p0 }
  0x20   : > { %p4737_p13 = pneg %p4736_p12 }
  0x22   : > { %p4742_p3 = pnand %p4741_p2, %p4737_p13 }
  0x23   : > { %186 = vperm.xlu2 %4714, %v150_v4   ;;  %176 = vperm.xlu1 %4713, %v148_v5  }
  0x24   : > { %166 = vperm.xlu0 %4712, %v146_v6  }
  0x2b   : > { %201 = vperm.xlu2 %4714, %v153_v7   ;;  %196 = vperm.xlu1 %4713, %v152_v8  }
  0x2c   : > { %191 = vperm.xlu0 %4712, %v151_v9  }
  0x33   : > { %216 = vperm.xlu2 %4714, %v156_v10   ;;  %211 = vperm.xlu1 %4713, %v155_v11  }
  0x34   : > { %206 = vperm.xlu0 %4712, %v154_v12  }
  0x3b   : > { %4716 = vset.pattern.permute.xlu2 %v4783_v14  ;;  %4715 = vset.pattern.permute.xlu1 %v4783_v14 }
  0x3c   : > { %221 = vperm.xlu0 %4712, %v157_v13   ;;  %243 = vperm.xlu2 %4716, %v146_v6  }
  0x3d   : > { %239 = vperm.xlu1 %4715, %v145_v3  }
  0x44   : > { %4717 = vset.pattern.permute.xlu0 %v4783_v14  ;;  %255 = vperm.xlu2 %4716, %v149_v1  }
  0x45   : > { %251 = vperm.xlu1 %4715, %v148_v5   ;;  %247 = vperm.xlu0 %4717, %v147_v2  }
  0x4c   : > { %263 = vperm.xlu2 %4716, %v151_v9  }
  0x4d   : > { %259 = vperm.xlu1 %4715, %v150_v4   ;;  %267 = vperm.xlu0 %4717, %v152_v8  }
  0x54   : > { %275 = vperm.xlu2 %4716, %v154_v12  }
  0x55   : > { %271 = vperm.xlu1 %4715, %v153_v7   ;;  %279 = vperm.xlu0 %4717, %v155_v11  }
  0x5c   : > { %287 = vperm.xlu2 %4716, %v157_v13  }
  0x5d   : > { %283 = vperm.xlu1 %4715, %v156_v10  }
  0x75   : > { %v182_v15 = vpop.permute.xlu2 %181 }
  0x76   : > { %v229_v41 = vmul.f32 %v224_v17, %v182_v15 }
  0x7d   : > { %v187_v18 = vpop.permute.xlu2 %186 }
  0x7e   : > { %v4866_v19 = vmul.f32 %v224_v17, %v187_v18 }
  0x85   : > { %v202_v20 = vpop.permute.xlu2 %201 }
  0x86   : > { %v4868_v21 = vmul.f32 %v224_v17, %v202_v20 }
  0x8d   : > { %v217_v22 = vpop.permute.xlu2 %216  ;;  %v172_v23 = vpop.permute.xlu1 %171 }
  0x8e   : > { %v4870_v24 = vmul.f32 %v224_v17, %v217_v22  ;;  %v4872_v25 = vmul.f32 %v224_v17, %v172_v23  ;;  %v162_v26 = vpop.permute.xlu0 %161 }
  0x8f   : > { %v225_v1 = vmul.f32 %v224_v17, %v162_v26 }
  0x95   : > { %v177_v28 = vpop.permute.xlu1 %176 }
  0x96   : > { %v167_v29 = vpop.permute.xlu0 %166  ;;  %v244_v30 = vpop.permute.xlu2 %243  ;;  %v228_v11 = vmul.f32 %v224_v17, %v177_v28 }
  0x97   : > { %v226_v31 = vmul.f32 %v224_v17, %v167_v29  ;;  %v292_v32 = vmul.f32 %v4874_v27, %v244_v30 }
  0x99   : > { %v4877_v33 = vadd.f32 %v292_v32, %v226_v31 }
  0x9b   : > { %7522 = vst [vmem:[#allocation5_spill] sm:$0xff] %v4877_v33  ;;  %v475_v38 = vand.u32 2139095040, %v4877_v33  ;;  %v7372_v54 = vand.u32 2147483647, %v4877_v33 }
  0x9d   : > { %v197_v34 = vpop.permute.xlu1 %196  ;;  %v476_v40 = vshrl.u32 %v475_v38, 23  ;;  %v479_v63 = vand.u32 8388607, %v7372_v54  ;;  %v7384_v38 = vmov 1326507024  }
  0x9e   : > { %v4879_v35 = vmul.f32 %v224_v17, %v197_v34  ;;  %v192_v36 = vpop.permute.xlu0 %191  ;;  %v256_v37 = vpop.permute.xlu2 %255  ;;  %v7405_v34 = vmov 920167782  }
  0x9f   : > { %v295_v39 = vmul.f32 %v4874_v27, %v256_v37  ;;  %v4579_v47 = vadd.s32 4294967169, %v476_v40  ;;  %v231_v48 = vmul.f32 %v224_v17, %v192_v36  ;;  %v480_v7 = vor.u32 8388608, %v479_v63 }
  0xa1   : > { %v4883_v43 = vadd.f32 %v295_v39, %v229_v41  ;;  %v482_v53 = vadd.s32 1, %v4579_v47  ;;  %v4906_v23 = vshll.u32 %v480_v7, 8  ;;  %v7377_v7 = vmov 683565275  }
  0xa3   : > { %7523 = vst [vmem:[#allocation6_spill] sm:$0xff] %v4883_v43  ;;  %v940_v51 = vand.u32 2139095040, %v4883_v43  ;;  %vm483_vm0 = vcmp.gt.s32.totalorder %v482_v53, 0  ;;  %v4920_v41 = vand.u32 65535, %v4906_v23 }
  0xa4   : > { %v484_v2 = vsel %vm483_vm0, %v482_v53, 0 }
  0xa5   : > { %v212_v42 = vpop.permute.xlu1 %211  ;;  %v941_v55 = vshrl.u32 %v940_v51, 23  ;;  %v486_v6 = vand.u32 31, %v484_v2 }
  0xa6   : > { %v4885_v44 = vmul.f32 %v224_v17, %v212_v42  ;;  %v207_v45 = vpop.permute.xlu0 %206  ;;  %v264_v46 = vpop.permute.xlu2 %263  ;;  %v4923_v42 = vshrl.u32 %v4906_v23, 16 }
  0xa7   : > { %v234_v49 = vmul.f32 %v224_v17, %v207_v45  ;;  %v297_v50 = vmul.f32 %v4874_v27, %v264_v46  ;;  %v4588_v3 = vadd.s32 4294967169, %v941_v55  ;;  %v487_v22 = vsub.s32 32, %v486_v6 }
  0xa8   : > { %v7390_v45 = vmov 2102212464   ;;  %v501_v46 = vshll.u32 %v7405_v34, %v486_v6 }
  0xa9   : > { %v4889_v52 = vadd.f32 %v297_v50, %v231_v48  ;;  %v947_v8 = vadd.s32 1, %v4588_v3  ;;  %v499_v36 = vshrl.u32 %v7405_v34, %v487_v22  ;;  %v502_v39 = vshrl.u32 %v7384_v38, %v487_v22 }
  0xaa   : > { %v496_v53 = vshrl.u32 %v7390_v45, %v487_v22 }
  0xab   : > { %7524 = vst [vmem:[#allocation7_spill] sm:$0xff] %v4889_v52  ;;  %v1250_v4 = vand.u32 2139095040, %v4889_v52  ;;  %vm948_vm1 = vcmp.gt.s32.totalorder %v947_v8, 0 }
  0xac   : > { %v949_v37 = vsel %vm948_vm1, %v947_v8, 0  ;;  %v489_v8 = vshll.u32 %v7377_v7, %v486_v6 }
  0xad   : > { %v1251_v12 = vshrl.u32 %v1250_v4, 23 }
  0xae   : > { %v222_v56 = vpop.permute.xlu0 %221  ;;  %v276_v57 = vpop.permute.xlu2 %275 }
  0xaf   : > { %v237_v58 = vmul.f32 %v224_v17, %v222_v56  ;;  %v300_v59 = vmul.f32 %v4874_v27, %v276_v57  ;;  %v240_v60 = vpop.permute.xlu1 %239  ;;  %v4912_v17 = vshrl.u32 %v484_v2, 5  ;;  %v4594_v31 = vadd.s32 4294967169, %v1251_v12 }
  0xb0   : > { %v291_v62 = vmul.f32 %v4874_v27, %v240_v60  ;;  %v7375_v57 = vmov 2475754826  }
  0xb1   : > { %v4893_v61 = vadd.f32 %v300_v59, %v234_v49  ;;  %vm507_vm2 = vcmp.lt.s32.totalorder %v4912_v17, 4  ;;  %v4929_v49 = vand.u32 31, %v949_v37  ;;  %v1257_v50 = vadd.s32 1, %v4594_v31 }
  0xb2   : > { %v4899_v5 = vadd.f32 %v291_v62, %v225_v1  ;;  %v7373_v59 = vmov 2131351028   ;;  %v503_v62 = vor.u32 %v502_v39, %v501_v46  ;;  %vm504_vm5 = vcmp.lt.s32.totalorder %v4912_v17, 1 }
  0xb3   : > { %7525 = vst [vmem:[#allocation8_spill] sm:$0xff] %v4893_v61  ;;  %v1715_v9 = vand.u32 2139095040, %v4893_v61  ;;  %v493_v60 = vshrl.u32 %v7373_v59, %v487_v22  ;;  %v495_v2 = vshll.u32 %v7373_v59, %v486_v6  ;;  %vm1258_vm3 = vcmp.gt.s32.totalorder %v1257_v50, 0 }
  0xb4   : > { %7526 = vst [vmem:[#allocation9_spill] sm:$0xff] %v4899_v5  ;;  %v320_v15 = vand.u32 2139095040, %v4899_v5  ;;  %v1259_v31 = vsel %vm1258_vm3, %v1257_v50, 0  ;;  %vm506_vm7 = vcmp.lt.s32.totalorder %v4912_v17, 3  ;;  %v966_v50 = vshll.u32 %v7405_v34, %v4929_v49 }
  0xb5   : > { %v1716_v26 = vshrl.u32 %v1715_v9, 23  ;;  %v492_v9 = vshll.u32 %v7375_v57, %v486_v6  ;;  %v497_v12 = vor.u32 %v496_v53, %v495_v2  ;;  %vm505_vm8 = vcmp.lt.s32.totalorder %v4912_v17, 2 }
  0xb6   : > { %v288_v10 = vpop.permute.xlu2 %287  ;;  %v321_v32 = vshrl.u32 %v320_v15, 23  ;;  %v488_v15 = vshrl.u32 %v7377_v7, %v487_v22 }
  0xb7   : > { %v252_v13 = vpop.permute.xlu1 %251  ;;  %v248_v14 = vpop.permute.xlu0 %247  ;;  %v303_v16 = vmul.f32 %v4874_v27, %v288_v10  ;;  %v4603_v40 = vadd.s32 4294967169, %v1716_v26  ;;  %v4943_v10 = vsub.s32 32, %v4929_v49  ;;  %v494_v26 = vor.u32 %v493_v60, %v492_v9 }
  0xb8   : > { %v294_v18 = vmul.f32 %v4874_v27, %v252_v13  ;;  %v293_v20 = vmul.f32 %v4874_v27, %v248_v14  ;;  %v4576_v51 = vadd.s32 4294967169, %v321_v32 }
  0xb9   : > { %v4908_v29 = vadd.f32 %v303_v16, %v237_v58  ;;  %v490_v58 = vshrl.u32 %v7375_v57, %v487_v22  ;;  %v1722_v63 = vadd.s32 1, %v4603_v40  ;;  %v967_v22 = vshrl.u32 %v7384_v38, %v4943_v10 }
  0xba   : > { %v4910_v30 = vadd.f32 %v294_v18, %v228_v11  ;;  %v4915_v28 = vadd.f32 %v293_v20, %v4872_v25  ;;  %v498_v25 = vshll.u32 %v7390_v45, %v486_v6  ;;  %v327_v11 = vadd.s32 1, %v4576_v51 }
  0xbb   : > { %7527 = vst [vmem:[#allocation10_spill] sm:$0xff] %v4908_v29  ;;  %v2180_v47 = vand.u32 2139095040, %v4908_v29  ;;  %v491_v16 = vor.u32 %v490_v58, %v489_v8  ;;  %v517_v6 = vsel %vm507_vm2, %v503_v62, 1326507024  ;;  %vm1723_vm4 = vcmp.gt.s32.totalorder %v1722_v63, 0 }
  0xbc   : > { %7528 = vst [vmem:[#allocation11_spill] sm:$0xff] %v4910_v30  ;;  %v4932_v55 = vor.u32 %v499_v36, %v498_v25  ;;  %v785_v56 = vand.u32 2139095040, %v4910_v30  ;;  %v630_v4 = vand.u32 2139095040, %v4915_v28  ;;  %vm328_vm6 = vcmp.gt.s32.totalorder %v327_v11, 0 }
  0xbd   : > { %7529 = vst [vmem:[#allocation12_spill] sm:$0xff] %v4915_v28  ;;  %v2181_v3 = vshrl.u32 %v2180_v47, 23  ;;  %v509_v40 = vsel %vm507_vm2, %v497_v12, 2102212464  ;;  %v4961_v25 = vshrl.u32 %v949_v37, 5  ;;  %v1724_v46 = vsel %vm1723_vm4, %v1722_v63, 0 }
  0xbe   : > { %v786_v13 = vshrl.u32 %v785_v56, 23  ;;  %v513_v18 = vsel %vm507_vm2, %v4932_v55, 920167782  ;;  %v631_v36 = vshrl.u32 %v630_v4, 23  ;;  %v4968_v51 = vand.u32 31, %v1259_v31 }
  0xbf   : > { %v260_v48 = vpop.permute.xlu1 %259  ;;  %v268_v20 = vpop.permute.xlu0 %267  ;;  %v4612_v32 = vadd.s32 4294967169, %v2181_v3  ;;  %v508_v53 = vsel %vm504_vm5, %v488_v15, %v491_v16  ;;  %v329_v56 = vsel %vm328_vm6, %v327_v11, 0  ;;  %v510_v37 = vsel %vm506_vm7, %v494_v26, %v509_v40 }
  0xc0   : > { %v296_v1 = vmul.f32 %v4874_v27, %v260_v48  ;;  %v4585_v47 = vadd.s32 4294967169, %v786_v13  ;;  %v963_v48 = vshll.u32 %v7390_v45, %v4929_v49  ;;  %7531 = vst [vmem:[#allocation14_spill] sm:$0xff] %v4968_v51  ;;  %v4582_v60 = vadd.s32 4294967169, %v631_v36 }
  0xc1   : > { %v2187_v58 = vadd.s32 1, %v4612_v32  ;;  %v968_v63 = vor.u32 %v967_v22, %v966_v50  ;;  %vm972_vm9 = vcmp.lt.s32.totalorder %v4961_v25, 4  ;;  %v298_v4 = vmul.f32 %v4874_v27, %v268_v20 }
  0xc2   : > { %v4946_v14 = vadd.f32 %v296_v1, %v4866_v19  ;;  %v964_v19 = vshrl.u32 %v7405_v34, %v4943_v10  ;;  %v4976_v1 = vand.u32 31, %v1724_v46  ;;  %v792_v2 = vadd.s32 1, %v4585_v47 }
  0xc3   : > { %v4983_v8 = vsub.s32 32, %v4968_v51  ;;  %v4985_v9 = vand.u32 31, %v329_v56  ;;  %v4989_v11 = vsel %vm505_vm8, %v508_v53, %v510_v37  ;;  %v4993_v13 = vsel %vm504_vm5, %v491_v16, %v494_v26 }
  0xc4   : > { %7530 = vst [vmem:[#allocation13_spill] sm:$0xff] %v4946_v14  ;;  %v4974_v62 = vor.u32 %v964_v19, %v963_v48  ;;  %v1095_v3 = vand.u32 2139095040, %v4946_v14  ;;  %vm2188_vm10 = vcmp.gt.s32.totalorder %v2187_v58, 0  ;;  %v637_v15 = vadd.s32 1, %v4582_v60 }
  0xc5   : > { %7532 = vst [vmem:[#allocation15_spill] sm:$0xff] %v4976_v1  ;;  %v4996_v32 = vadd.f32 %v298_v4, %v4879_v35  ;;  %v5000_v20 = vsel %vm506_vm7, %v497_v12, %v513_v18  ;;  %v5009_v19 = vsel %vm972_vm9, %v968_v63, 1326507024  ;;  %v5012_v16 = vsub.s32 32, %v4976_v1 }
  0xc6   : > { %7533 = vst [vmem:[#allocation16_spill] sm:$0xff] %v4983_v8  ;;  %v5005_v36 = vsel %vm972_vm9, %v4974_v62, 920167782  ;;  %v516_v35 = vsel %vm504_vm5, %v494_v26, %v497_v12  ;;  %v5016_v47 = vshrl.u32 %v1259_v31, 5  ;;  %vm793_vm11 = vcmp.gt.s32.totalorder %v792_v2, 0 }
  0xc7   : > { %v272_v39 = vpop.permute.xlu1 %271  ;;  %7534 = vst [vmem:[#allocation17_spill] sm:$0xff] %v4996_v32  ;;  %v280_v22 = vpop.permute.xlu0 %279  ;;  %v1096_v18 = vshrl.u32 %v1095_v3, 23  ;;  %v518_v48 = vsel %vm506_vm7, %v4932_v55, %v517_v6  ;;  %v1274_v50 = vshrl.u32 %v7405_v34, %v4983_v8  ;;  %v1277_v53 = vshrl.u32 %v7384_v38, %v4983_v8 }
  0xc8   : > { %7535 = vst [vmem:[#allocation18_spill] sm:$0xff] %v5012_v16  ;;  %v5026_v60 = vsub.s32 32, %v4985_v9  ;;  %v2189_v37 = vsel %vm2188_vm10, %v2187_v58, 0  ;;  %vm638_vm12 = vcmp.gt.s32.totalorder %v637_v15, 0  ;;  %v299_v12 = vmul.f32 %v4874_v27, %v272_v39 }
  0xc9   : > { %7536 = vst [vmem:[#allocation19_spill] sm:$0xff] %v5016_v47  ;;  %v301_v26 = vmul.f32 %v4874_v27, %v280_v22  ;;  %v1273_v55 = vshll.u32 %v7390_v45, %v4968_v51  ;;  %v1276_v6 = vshll.u32 %v7405_v34, %v4968_v51  ;;  %v1739_v63 = vshrl.u32 %v7405_v34, %v5012_v16 }
  0xca   : > { %v794_v3 = vsel %vm793_vm11, %v792_v2, 0  ;;  %v4591_v4 = vadd.s32 4294967169, %v1096_v18  ;;  %v5039_v58 = vadd.f32 %v299_v12, %v4868_v21  ;;  %v5051_v54 = vand.u32 31, %v2189_v37 }
  0xcb   : > { %v5042_v39 = vadd.f32 %v301_v26, %v4885_v44  ;;  %v639_v59 = vsel %vm638_vm12, %v637_v15, 0  ;;  %v1278_v57 = vor.u32 %v1277_v53, %v1276_v6  ;;  %v5053_v2 = vshrl.u32 %v1724_v46, 5 }
  0xcc   : > { %7537 = vst [vmem:[#allocation20_spill] sm:$0xff] %v5039_v58  ;;  %v1738_v21 = vshll.u32 %v7390_v45, %v4976_v1  ;;  %v344_v44 = vshrl.u32 %v7405_v34, %v5026_v60  ;;  %v5061_v18 = vshrl.u32 %v329_v56, 5  ;;  %v5065_v12 = vand.u32 31, %v794_v3 }
  0xcd   : > { %7538 = vst [vmem:[#allocation21_spill] sm:$0xff] %v5042_v39  ;;  %v347_v46 = vshrl.u32 %v7384_v38, %v5026_v60  ;;  %v5071_v53 = vand.u32 31, %v639_v59  ;;  %v1102_v26 = vadd.s32 1, %v4591_v4  ;;  %vm1282_vm13 = vcmp.lt.s32.totalorder %v5016_v47, 4 }
  0xce   : > { %7541 = vst [vmem:[#allocation24_spill] sm:$0xff] %v5051_v54  ;;  %v5067_v15 = vor.u32 %v1739_v63, %v1738_v21  ;;  %v5079_v56 = vsel %vm505_vm8, %v516_v35, %v518_v48  ;;  %v346_v4 = vshll.u32 %v7405_v34, %v4985_v9  ;;  %v1405_v21 = vand.u32 2139095040, %v4996_v32 }
  0xcf   : > { %v284_v40 = vpop.permute.xlu1 %283  ;;  %7542 = vst [vmem:[#allocation25_spill] sm:$0xff] %v5053_v2  ;;  %vm1747_vm14 = vcmp.lt.s32.totalorder %v5053_v2, 4  ;;  %vm352_vm15 = vcmp.lt.s32.totalorder %v5061_v18, 4  ;;  %v5098_v35 = vsub.s32 32, %v5065_v12  ;;  %vm1103_vm0 = vcmp.gt.s32.totalorder %v1102_v26, 0 }
  0xd0   : > { %v302_v31 = vmul.f32 %v4874_v27, %v284_v40  ;;  %v5047_v27 = vor.u32 %v1274_v50, %v1273_v55  ;;  %v1742_v40 = vshrl.u32 %v7384_v38, %v5012_v16  ;;  %v343_v50 = vshll.u32 %v7390_v45, %v4985_v9  ;;  %7543 = vst [vmem:[#allocation26_spill] sm:$0xff] %v5067_v15 }
  0xd1   : > { %v5075_v55 = vsub.s32 32, %v5051_v54  ;;  %v5103_v48 = vsel %vm1747_vm14, %v5067_v15, 920167782  ;;  %v5125_v29 = vshrl.u32 %v794_v3, 5  ;;  %v1104_v15 = vsel %vm1103_vm0, %v1102_v26, 0 }
  0xd2   : > { %v5045_v22 = vadd.f32 %v302_v31, %v4870_v24  ;;  %7540 = vst [vmem:[#allocation23_spill] sm:$0xff] %v5047_v27  ;;  %v1741_v24 = vshll.u32 %v7405_v34, %v4976_v1  ;;  %v5084_v6 = vsel %vm1282_vm13, %v5047_v27, 920167782  ;;  %v5086_v63 = vor.u32 %v344_v44, %v343_v50 }
  0xd3   : > { %7544 = vst [vmem:[#allocation27_spill] sm:$0xff] %v5075_v55  ;;  %v348_v44 = vor.u32 %v347_v46, %v346_v4  ;;  %v5112_v50 = vshrl.u32 %v2189_v37, 5  ;;  %v2204_v7 = vshrl.u32 %v7405_v34, %v5075_v55  ;;  %v2207_v0 = vshrl.u32 %v7384_v38, %v5075_v55 }
  0xd4   : > { %7539 = vst [vmem:[#allocation22_spill] sm:$0xff] %v5045_v22  ;;  %v1743_v31 = vor.u32 %v1742_v40, %v1741_v24  ;;  %v5093_v40 = vsel %vm1282_vm13, %v1278_v57, 1326507024  ;;  %v5106_v24 = vsub.s32 32, %v5071_v53  ;;  %v5121_v46 = vsel %vm352_vm15, %v5086_v63, 920167782 }
  0xd5   : > { %7545 = vst [vmem:[#allocation28_spill] sm:$0xff] %v5084_v6  ;;  %v2203_v4 = vshll.u32 %v7390_v45, %v5051_v54  ;;  %v2206_v37 = vshll.u32 %v7405_v34, %v5051_v54  ;;  %v524_v38 = vshrl.u32 %v5079_v56, 16  ;;  %v5134_v55 = vsel %vm352_vm15, %v348_v44, 1326507024 }
  0xd6   : > { %7546 = vst [vmem:[#allocation29_spill] sm:$0xff] %v5093_v40  ;;  %v5110_v57 = vsel %vm1747_vm14, %v1743_v31, 1326507024  ;;  %v1406_v31 = vshrl.u32 %v1405_v21, 23  ;;  %v654_v3 = vshrl.u32 %v7405_v34, %v5106_v24  ;;  %v7552_v26 = vmov 2102212464  }
  0xd7   : > { %7547 = vst [vmem:[#allocation30_spill] sm:$0xff] %v5103_v48  ;;  %v809_v48 = vshrl.u32 %v7405_v34, %v5098_v35  ;;  %v5142_v45 = vor.u32 %v2204_v7, %v2203_v4  ;;  %v2208_v54 = vor.u32 %v2207_v0, %v2206_v37  ;;  %v808_v1 = vshll.u32 %v7552_v26, %v5065_v12 }
  0xd8   : > { %7548 = vst [vmem:[#allocation31_spill] sm:$0xff] %v5110_v57  ;;  %v7550_v57 = vmov 1326507024   ;;  %v811_v16 = vshll.u32 %v7405_v34, %v5065_v12  ;;  %v653_v44 = vshll.u32 %v7552_v26, %v5071_v53  ;;  %v656_v61 = vshll.u32 %v7405_v34, %v5071_v53 }
  0xd9   : > { %7549 = vst [vmem:[#allocation32_spill] sm:$0xff] %v5112_v50  ;;  %v812_v2 = vshrl.u32 %v7550_v57, %v5098_v35  ;;  %v657_v21 = vshrl.u32 %v7550_v57, %v5106_v24  ;;  %v5152_v32 = vand.u32 31, %v1104_v15  ;;  %v4597_v14 = vadd.s32 4294967169, %v1406_v31 }
  0xda   : > { %7551 = vst [vmem:[#allocation33_spill] sm:$0xff] %v5142_v45  ;;  %v5154_v6 = vor.u32 %v809_v48, %v808_v1  ;;  %v5156_v7 = vshrl.u32 %v639_v59, 5  ;;  %v523_v0 = vand.u32 65535, %v5079_v56  ;;  %v5160_v4 = vmul.u32 %v524_v38, %v4920_v41 }
  0xdb   : > { %7553 = vst [vmem:[#allocation34_spill] sm:$0xff] %v5152_v32  ;;  %vm2212_vm1 = vcmp.lt.s32.totalorder %v5112_v50, 4  ;;  %v813_v37 = vor.u32 %v812_v2, %v811_v16  ;;  %v5163_v27 = vor.u32 %v654_v3, %v653_v44  ;;  %v658_v40 = vor.u32 %v657_v21, %v656_v61 }
  0xdc   : > { %7554 = vst [vmem:[#allocation35_spill] sm:$0xff] %v5156_v7  ;;  %v5168_v34 = vsel %vm2212_vm1, %v5142_v45, 920167782  ;;  %vm817_vm2 = vcmp.lt.s32.totalorder %v5125_v29, 4  ;;  %v1560_v59 = vand.u32 2139095040, %v5039_v58  ;;  %v1870_v1 = vand.u32 2139095040, %v5042_v39 }
  0xdd   : > { %7555 = vst [vmem:[#allocation36_spill] sm:$0xff] %v5163_v27  ;;  %v5175_v56 = vsel %vm2212_vm1, %v2208_v54, 1326507024  ;;  %v5178_v16 = vsub.s32 32, %v5152_v32  ;;  %v1412_v2 = vadd.s32 1, %v4597_v14  ;;  %v2025_v61 = vand.u32 2139095040, %v5045_v22 }
  0xde   : > { %7556 = vst [vmem:[#allocation37_spill] sm:$0xff] %v5168_v34  ;;  %v5184_v48 = vsel %vm817_vm2, %v5154_v6, 920167782  ;;  %vm662_vm3 = vcmp.lt.s32.totalorder %v5156_v7, 4  ;;  %v5188_v31 = vmul.u32 %v523_v0, %v4923_v42  ;;  %v529_v3 = vshll.u32 %v5160_v4, 16 }
  0xdf   : > { %7557 = vst [vmem:[#allocation38_spill] sm:$0xff] %v5175_v56  ;;  %v5193_v54 = vsel %vm817_vm2, %v813_v37, 1326507024  ;;  %v5198_v14 = vsel %vm662_vm3, %v5163_v27, 920167782  ;;  %v515_v44 = vsel %vm505_vm8, %v4993_v13, %v5000_v20  ;;  %v5208_v22 = vshrl.u32 %v1104_v15, 5 }
  0xe0   : > { %7558 = vst [vmem:[#allocation39_spill] sm:$0xff] %v5178_v16  ;;  %v5202_v21 = vsel %vm662_vm3, %v658_v40, 1326507024  ;;  %v1561_v34 = vshrl.u32 %v1560_v59, 23  ;;  %v1871_v45 = vshrl.u32 %v1870_v1, 23  ;;  %v525_v37 = vmul.u32 %v523_v0, %v4920_v41 }
  0xe1   : > { %7559 = vst [vmem:[#allocation40_spill] sm:$0xff] %v5198_v14  ;;  %v7562_v56 = vmov 920167782   ;;  %vm1413_vm4 = vcmp.gt.s32.totalorder %v1412_v2, 0  ;;  %v2026_v39 = vshrl.u32 %v2025_v61, 23  ;;  %v528_v58 = vmul.u32 %v524_v38, %v4923_v42 }
  0xe2   : > { %7560 = vst [vmem:[#allocation41_spill] sm:$0xff] %v5202_v21  ;;  %v1119_v50 = vshrl.u32 %v7562_v56, %v5178_v16  ;;  %v531_v40 = vshll.u32 %v5188_v31, 16  ;;  %vm533_vm5 = vc.u32 %v525_v37, %v529_v3  ;;  %v535_v47 = vadd.s32 %v529_v3, %v525_v37 }
  0xe3   : > { %7561 = vst [vmem:[#allocation42_spill] sm:$0xff] %v5208_v22  ;;  %v545_v51 = vand.u32 65535, %v515_v44  ;;  %v1118_v17 = vshll.u32 %v7552_v26, %v5152_v32  ;;  %v5219_v13 = vshrl.u32 %v7550_v57, %v5178_v16  ;;  %v7563_v20 = vmov 0  }
  0xe4   : > { %v534_v15 = vsel %vm533_vm5, 1, %v7563_v20  ;;  %v546_v0 = vshrl.u32 %v515_v44, 16  ;;  %v1414_v59 = vsel %vm1413_vm4, %v1412_v2, 0  ;;  %vm537_vm6 = vc.u32 %v535_v47, %v531_v40 }
  0xe5   : > { %v536_v1 = vadd.s32 %v534_v15, %v528_v58  ;;  %v549_v38 = vmul.u32 %v545_v51, %v4923_v42  ;;  %v5225_v61 = vshll.u32 %v7562_v56, %v5152_v32  ;;  %v4600_v3 = vadd.s32 4294967169, %v1561_v34 }
  0xe6   : > { %v538_v37 = vsel %vm537_vm6, 1, %v7563_v20  ;;  %v548_v8 = vmul.u32 %v546_v0, %v4920_v41  ;;  %v5229_v52 = vor.u32 %v1119_v50, %v1118_v17  ;;  %v4606_v16 = vadd.s32 4294967169, %v1871_v45 }
  0xe7   : > { %v4609_v27 = vadd.s32 4294967169, %v2026_v39  ;;  %v540_v21 = vadd.s32 %v538_v37, %v536_v1  ;;  %v1123_v58 = vor.u32 %v5219_v13, %v5225_v61  ;;  %v5233_v47 = vshrl.u32 %v1414_v59, 5 }
  0xe8   : > { %7564 = vst [vmem:[#allocation43_spill] sm:$0xff] %v5229_v52  ;;  %v547_v2 = vmul.u32 %v545_v51, %v4920_v41  ;;  %v551_v44 = vshll.u32 %v548_v8, 16  ;;  %vm1127_vm7 = vcmp.lt.s32.totalorder %v5208_v22, 4  ;;  %v530_v34 = vshrl.u32 %v5160_v4, 16 }
  0xe9   : > { %7565 = vst [vmem:[#allocation44_spill] sm:$0xff] %v5233_v47  ;;  %v550_v40 = vmul.u32 %v546_v0, %v4923_v42  ;;  %v553_v15 = vshll.u32 %v549_v38, 16  ;;  %v7432_v50 = vand.u32 2147483647, %v4883_v43  ;;  %v7566_v39 = vmov 683565275  }
  0xea   : > { %vm555_vm8 = vc.u32 %v547_v2, %v551_v44  ;;  %v557_v45 = vadd.s32 %v551_v44, %v547_v2  ;;  %v954_v17 = vshll.u32 %v7566_v39, %v4929_v49  ;;  %v7567_v13 = vmov 2475754826  }
  0xeb   : > { %v955_v1 = vshrl.u32 %v7567_v13, %v4943_v10  ;;  %v5244_v61 = vand.u32 31, %v1414_v59  ;;  %v541_v41 = vadd.s32 %v540_v21, %v530_v34  ;;  %v556_v51 = vsel %vm555_vm8, 1, %v7563_v20 }
  0xec   : > { %v944_v4 = vand.u32 8388607, %v7432_v50  ;;  %v532_v42 = vshrl.u32 %v5188_v31, 16  ;;  %v558_v0 = vadd.s32 %v556_v51, %v550_v40  ;;  %vm559_vm10 = vc.u32 %v557_v45, %v553_v15 }
  0xed   : > { %7568 = vst [vmem:[#allocation45_spill] sm:$0xff] %v5244_v61  ;;  %v956_v37 = vor.u32 %v955_v1, %v954_v17  ;;  %v560_v2 = vsel %vm559_vm10, 1, %v7563_v20  ;;  %v957_v32 = vshll.u32 %v7567_v13, %v4929_v49  ;;  %v7569_v59 = vmov 2131351028  }
  0xee   : > { %v945_v44 = vor.u32 8388608, %v944_v4  ;;  %v958_v47 = vshrl.u32 %v7569_v59, %v4943_v10  ;;  %v5255_v21 = vadd.s32 1, %v4600_v3  ;;  %v552_v34 = vshrl.u32 %v548_v8, 16 }
  0xef   : > { %v554_v14 = vshrl.u32 %v549_v38, 16  ;;  %v562_v7 = vadd.s32 %v560_v2, %v558_v0  ;;  %v5257_v50 = vadd.s32 %v541_v41, %v532_v42  ;;  %v960_v40 = vshll.u32 %v7569_v59, %v4929_v49 }
  0xf0   : > { %v959_v31 = vor.u32 %v958_v47, %v957_v32  ;;  %v961_v17 = vshrl.u32 %v7552_v26, %v4943_v10  ;;  %vm969_vm11 = vcmp.lt.s32.totalorder %v4961_v25, 1  ;;  %vm971_vm12 = vcmp.lt.s32.totalorder %v4961_v25, 3 }
  0xf1   : > { %v563_v1 = vadd.s32 %v562_v7, %v552_v34  ;;  %v5265_v51 = vshll.u32 %v945_v44, 8  ;;  %v5267_v3 = vadd.s32 %v557_v45, %v553_v15  ;;  %v983_v49 = vsel %vm971_vm12, %v4974_v62, %v5009_v19 }
  0xf2   : > { %v962_v8 = vor.u32 %v961_v17, %v960_v40  ;;  %v977_v38 = vsel %vm969_vm11, %v956_v37, %v959_v31  ;;  %v5278_v32 = vsel %vm1127_vm7, %v5229_v52, 920167782  ;;  %v5280_v7 = vadd.s32 1, %v4606_v16 }
  0xf3   : > { %7570 = vst [vmem:[#allocation46_spill] sm:$0xff] %v5278_v32  ;;  %v564_v47 = vadd.s32 %v563_v1, %v554_v14  ;;  %v565_v15 = vmul.u32 %v4906_v23, %v4989_v11  ;;  %vm567_vm0 = vc.u32 %v5257_v50, %v5267_v3  ;;  %vm970_vm4 = vcmp.lt.s32.totalorder %v4961_v25, 2 }
  0xf4   : > { %v979_v62 = vsel %vm971_vm12, %v962_v8, %v5005_v36  ;;  %v981_v19 = vsel %vm969_vm11, %v959_v31, %v962_v8  ;;  %v986_v23 = vand.u32 65535, %v5265_v51  ;;  %v987_v11 = vshrl.u32 %v5265_v51, 16 }
  0xf5   : > { %v568_v45 = vadd.s32 1, %v564_v47  ;;  %v980_v16 = vsel %vm970_vm4, %v977_v38, %v979_v62  ;;  %v984_v14 = vsel %vm970_vm4, %v981_v19, %v983_v49  ;;  %v5300_v36 = vsel %vm1127_vm7, %v1123_v58, 1326507024 }
  0xf6   : > { %v988_v41 = vand.u32 65535, %v984_v14  ;;  %v989_v4 = vshrl.u32 %v984_v14, 16  ;;  %v1010_v42 = vand.u32 65535, %v980_v16  ;;  %7571 = vst [vmem:[#allocation47_spill] sm:$0xff] %v5300_v36  ;;  %v953_v2 = vshrl.u32 %v7566_v39, %v4943_v10 }
  0xf7   : > { %v569_v0 = vsel %vm567_vm0, %v568_v45, %v564_v47  ;;  %v1011_v44 = vshrl.u32 %v980_v16, 16  ;;  %v5304_v34 = vadd.s32 1, %v4609_v27  ;;  %v5307_v38 = vsub.s32 32, %v5244_v61 }
  0xf8   : > { %v570_v40 = vadd.s32 %v569_v0, %v565_v15  ;;  %v991_v17 = vmul.u32 %v989_v4, %v986_v23  ;;  %v992_v1 = vmul.u32 %v988_v41, %v987_v11  ;;  %v973_v49 = vsel %vm969_vm11, %v953_v2, %v956_v37 }
  0xf9   : > { %7572 = vst [vmem:[#allocation48_spill] sm:$0xff] %v5307_v38  ;;  %v1013_v62 = vmul.u32 %v1011_v44, %v986_v23  ;;  %v1014_v19 = vmul.u32 %v1010_v42, %v987_v11  ;;  %v990_v14 = vmul.u32 %v988_v41, %v986_v23  ;;  %v974_v10 = vsel %vm972_vm9, %v962_v8, 2102212464 }
  0xfa   : > { %v571_v58 = vadd.s32 536870912, %v570_v40  ;;  %v994_v47 = vshll.u32 %v991_v17, 16  ;;  %v993_v27 = vmul.u32 %v989_v4, %v987_v11  ;;  %v1012_v15 = vmul.u32 %v1010_v42, %v986_v23 }
  0xfb   : > { %v1016_v16 = vshll.u32 %v1013_v62, 16  ;;  %v996_v32 = vshll.u32 %v992_v1, 16  ;;  %v1018_v2 = vshll.u32 %v1014_v19, 16  ;;  %v1015_v45 = vmul.u32 %v1011_v44, %v987_v11 }
  0xfc   : > { %v5314_v0 = vshrl.u32 %v571_v58, 30  ;;  %vm998_vm5 = vc.u32 %v990_v14, %v994_v47  ;;  %v1000_v52 = vadd.s32 %v994_v47, %v990_v14  ;;  %v975_v8 = vsel %vm971_vm12, %v959_v31, %v974_v10 }
  0xfd   : > { %v999_v37 = vsel %vm998_vm5, 1, %v7563_v20  ;;  %vm1020_vm6 = vc.u32 %v1012_v15, %v1016_v16  ;;  %v1022_v36 = vadd.s32 %v1016_v16, %v1012_v15  ;;  %v995_v58 = vshrl.u32 %v991_v17, 16 }
  0xfe   : > { %v573_v41 = vshll.u32 %v5314_v0, 30  ;;  %v1001_v22 = vadd.s32 %v999_v37, %v993_v27  ;;  %vm1002_vm8 = vc.u32 %v1000_v52, %v996_v32  ;;  %v1021_v4 = vsel %vm1020_vm6, 1, %v7563_v20 }
  0xff   : > { %v1003_v23 = vsel %vm1002_vm8, 1, %v7563_v20  ;;  %vm1024_vm9 = vc.u32 %v1022_v36, %v1018_v2  ;;  %v1023_v47 = vadd.s32 %v1021_v4, %v1015_v45  ;;  %v5326_v15 = vshll.u32 %v7552_v26, %v5244_v61 }
 0x100   : > { %v5322_v42 = vsub.s32 %v570_v40, %v573_v41  ;;  %v1005_v14 = vadd.s32 %v1003_v23, %v1001_v22  ;;  %v5330_v52 = vshll.u32 %v7562_v56, %v5244_v61  ;;  %vm1568_vm10 = vcmp.gt.s32.totalorder %v5255_v21, 0 }
 0x101   : > { %v1025_v31 = vsel %vm1024_vm9, 1, %v7563_v20  ;;  %v976_v22 = vsel %vm970_vm4, %v973_v49, %v975_v8  ;;  %v997_v44 = vshrl.u32 %v992_v1, 16  ;;  %v1017_v40 = vshrl.u32 %v1013_v62, 16 }
 0x102   : > { %vm575_vm11 = vcmp.lt.s32.totalorder %v5322_v42, 0  ;;  %v576_v32 = vsub.s32 0, %v5322_v42  ;;  %v1006_v11 = vadd.s32 %v1005_v14, %v995_v58  ;;  %v1019_v17 = vshrl.u32 %v1014_v19, 16 }
 0x103   : > { %v1027_v45 = vadd.s32 %v1025_v31, %v1023_v47  ;;  %v5339_v27 = vadd.s32 %v1022_v36, %v1018_v2  ;;  %v7573_v16 = vand.u32 2147483647, %v4899_v5  ;;  %v335_v41 = vshrl.u32 %v7567_v13, %v5026_v60 }
 0x104   : > { %v577_v10 = vsel %vm575_vm11, %v576_v32, %v5322_v42  ;;  %vm474_vm12 = vcmp.lt.s32.totalorder %v4877_v33, 0  ;;  %v5346_v25 = vadd.s32 %v1006_v11, %v997_v44  ;;  %v334_v1 = vshll.u32 %v7566_v39, %v4985_v9 }
 0x105   : > { %v324_v37 = vand.u32 8388607, %v7573_v16  ;;  %v578_v23 = vclz %v577_v10  ;;  %v1028_v49 = vadd.s32 %v1027_v45, %v1017_v40  ;;  %vm1878_vm0 = vcmp.gt.s32.totalorder %v5280_v7, 0 }
 0x106   : > { %v337_v36 = vshll.u32 %v7567_v13, %v4985_v9  ;;  %v338_v62 = vshrl.u32 %v7569_v59, %v5026_v60  ;;  %v340_v19 = vshll.u32 %v7569_v59, %v4985_v9  ;;  %v341_v2 = vshrl.u32 %v7552_v26, %v5026_v60 }
 0x107   : > { %v5362_v8 = vsel %vm1568_vm10, %v5255_v21, 0  ;;  %v566_v4 = vadd.s32 %v5267_v3, %v5257_v50  ;;  %v4580_v58 = vadd.s32 4294967294, %v578_v23  ;;  %v1029_v14 = vadd.s32 %v1028_v49, %v1019_v17 }
 0x108   : > { %vm1032_vm4 = vc.u32 %v5346_v25, %v5339_v27  ;;  %v5368_v47 = vor.u32 %v335_v41, %v334_v1  ;;  %v5370_v31 = vor.u32 %v338_v62, %v337_v36  ;;  %v342_v9 = vor.u32 %v341_v2, %v340_v19 }
 0x109   : > { %v7574_v32 = vand.u32 2147483647, %v4877_v33  ;;  %vm4581_vm6 = vcmp.lt.s32.totalorder %v4580_v58, 0  ;;  %v596_v21 = vsub.s32 4, %v5314_v0  ;;  %v1030_v50 = vmul.u32 %v5265_v51, %v976_v22 }
 0x10a   : > { %v1033_v3 = vadd.s32 1, %v1029_v14  ;;  %v581_v44 = vsel %vm4581_vm6, 0, %v4580_v58  ;;  %v325_v40 = vor.u32 8388608, %v324_v37  ;;  %vm349_vm8 = vcmp.lt.s32.totalorder %v5061_v18, 1 }
 0x10b   : > { %vm5374_vm5 = vcmp.le.f32.partialorder %v7574_v32, 0.7853982  ;;  %vm350_vm9 = vcmp.lt.s32.totalorder %v5061_v18, 2  ;;  %v582_v17 = vsub.s32 32, %v581_v44  ;;  %v586_v45 = vsub.s32 4294967266, %v581_v44 }
 0x10c   : > { %v1034_v10 = vsel %vm1032_vm4, %v1033_v3, %v1029_v14  ;;  %vm351_vm10 = vcmp.lt.s32.totalorder %v5061_v18, 3  ;;  %v357_v41 = vsel %vm349_vm8, %v5368_v47, %v5370_v31  ;;  %v361_v22 = vsel %vm349_vm8, %v5370_v31, %v342_v9 }
 0x10d   : > { %v1035_v16 = vadd.s32 %v1034_v10, %v1030_v50  ;;  %v359_v51 = vsel %vm351_vm10, %v342_v9, %v5121_v46  ;;  %v583_v37 = vshll.u32 %v5322_v42, %v581_v44  ;;  %v584_v23 = vshrl.u32 %v566_v4, %v582_v17 }
 0x10e   : > { %v587_v49 = vadd.s32 127, %v586_v45  ;;  %v363_v1 = vsel %vm351_vm10, %v5086_v63, %v5134_v55  ;;  %v597_v36 = vsel %vm474_vm12, %v596_v21, %v5314_v0  ;;  %v5403_v19 = vshll.u32 %v325_v40, 8 }
 0x10f   : > { %v1036_v62 = vadd.s32 536870912, %v1035_v16  ;;  %v364_v46 = vsel %vm350_vm9, %v361_v22, %v363_v1  ;;  %v585_v2 = vor.u32 %v584_v23, %v583_v37  ;;  %v5407_v14 = vshrl.u32 %v7562_v56, %v5307_v38 }
 0x110   : > { %v588_v58 = vshll.u32 %v587_v49, 23  ;;  %v368_v42 = vand.u32 65535, %v364_v46  ;;  %v369_v4 = vshrl.u32 %v364_v46, 16  ;;  %v360_v55 = vsel %vm350_vm9, %v357_v41, %v359_v51 }
 0x111   : > { %v5409_v32 = vshrl.u32 %v1036_v62, 30  ;;  %v366_v63 = vand.u32 65535, %v5403_v19  ;;  %v5416_v0 = vshrl.u32 %v7550_v57, %v5307_v38  ;;  %v5421_v21 = vsel %vm1878_vm0, %v5280_v7, 0 }
 0x112   : > { %v589_v50 = vor.u32 4788187, %v588_v58  ;;  %v367_v3 = vshrl.u32 %v5403_v19, 16  ;;  %v5425_v44 = vshrl.u32 %v5362_v8, 5  ;;  %v5429_v40 = vsel %vm5374_vm5, 0, %v597_v36 }
 0x113   : > { %7578 = vst [vmem:[#allocation50_spill] sm:$0xff] %v5429_v40  ;;  %v1038_v17 = vshll.u32 %v5409_v32, 30  ;;  %v371_v45 = vmul.u32 %v369_v4, %v366_v63  ;;  %v592_v41 = vcvt.s32.f32 %v585_v2  ;;  %v391_v22 = vshrl.u32 %v360_v55, 16 }
 0x114   : > { %7577 = vst [vmem:[#allocation49_spill] sm:$0xff] %v5425_v44  ;;  %v590_v10 = vand.u32 2147483647, %v589_v50  ;;  %v5432_v51 = vmul.u32 %v368_v42, %v367_v3  ;;  %v333_v37 = vshrl.u32 %v7566_v39, %v5026_v60  ;;  %v370_v23 = vmul.u32 %v368_v42, %v366_v63 }
 0x115   : > { %v5434_v7 = vsub.s32 %v1035_v16, %v1038_v17  ;;  %v374_v49 = vshll.u32 %v371_v45, 16  ;;  %v354_v36 = vsel %vm352_vm15, %v342_v9, 2102212464  ;;  %v373_v62 = vmul.u32 %v369_v4, %v367_v3 }
 0x116   : > { %v593_v1 = vmul.f32 %v592_v41, %v590_v10  ;;  %v390_v46 = vand.u32 65535, %v360_v55  ;;  %v376_v58 = vshll.u32 %v5432_v51, 16  ;;  %v393_v60 = vmul.u32 %v391_v22, %v366_v63 }
 0x117   : > { %vm1040_vm11 = vcmp.lt.s32.totalorder %v5434_v7, 0  ;;  %v1041_v2 = vsub.s32 0, %v5434_v7  ;;  %vm378_vm0 = vc.u32 %v370_v23, %v374_v49  ;;  %v380_v17 = vadd.s32 %v374_v49, %v370_v23 }
 0x118   : > { %v594_v16 = vxor.u32 2147483648, %v593_v1  ;;  %v379_v50 = vsel %vm378_vm0, 1, %v7563_v20  ;;  %v5445_v42 = vand.u32 31, %v5362_v8  ;;  %v353_v9 = vsel %vm349_vm8, %v333_v37, %v5368_v47 }
 0x119   : > { %v1042_v10 = vsel %vm1040_vm11, %v1041_v2, %v5434_v7  ;;  %v355_v4 = vsel %vm351_vm10, %v5370_v31, %v354_v36  ;;  %v381_v44 = vadd.s32 %v379_v50, %v373_v62  ;;  %vm382_vm15 = vc.u32 %v380_v17, %v376_v58 }
 0x11a   : > { %v595_v55 = vsel %vm474_vm12, %v594_v16, %v593_v1  ;;  %v1043_v41 = vclz %v1042_v10  ;;  %v5462_v23 = vand.u32 3, %v5429_v40  ;;  %v383_v47 = vsel %vm382_vm15, 1, %v7563_v20 }
 0x11b   : > { %v5459_v8 = vsel %vm5374_vm5, %v4877_v33, %v595_v55  ;;  %v394_v37 = vmul.u32 %v390_v46, %v367_v3  ;;  %v385_v36 = vadd.s32 %v383_v47, %v381_v44  ;;  %v396_v1 = vshll.u32 %v393_v60, 16 }
 0x11c   : > { %v600_v31 = vmul.f32 %v5459_v8, %v5459_v8  ;;  %v4589_v49 = vadd.s32 4294967294, %v1043_v41  ;;  %v1031_v62 = vadd.s32 %v5339_v27, %v5346_v25  ;;  %v5471_v11 = vsel %vm350_vm9, %v353_v9, %v355_v4 }
 0x11d   : > { %v375_v2 = vshrl.u32 %v371_v45, 16  ;;  %v392_v58 = vmul.u32 %v390_v46, %v366_v63  ;;  %v395_v17 = vmul.u32 %v391_v22, %v367_v3  ;;  %v398_v55 = vshll.u32 %v394_v37, 16 }
 0x11e   : > { %v601_v16 = vmul.f32 -0.001358992, %v600_v31  ;;  %v608_v50 = vmul.f32 -0.00019511016, %v600_v31  ;;  %vm4590_vm12 = vcmp.lt.s32.totalorder %v4589_v49, 0  ;;  %v377_v27 = vshrl.u32 %v5432_v51, 16 }
 0x11f   : > { %v1046_v10 = vsel %vm4590_vm12, 0, %v4589_v49  ;;  %vm400_vm4 = vc.u32 %v392_v58, %v396_v1  ;;  %v402_v40 = vadd.s32 %v396_v1, %v392_v58  ;;  %v386_v38 = vadd.s32 %v385_v36, %v375_v2 }
 0x120   : > { %v602_v41 = vadd.f32 0.041655596, %v601_v16  ;;  %v609_v44 = vadd.f32 0.008332121, %v608_v50  ;;  %v1047_v47 = vsub.s32 32, %v1046_v10  ;;  %v1051_v61 = vsub.s32 4294967266, %v1046_v10 }
 0x121   : > { %v401_v18 = vsel %vm400_vm4, 1, %v7563_v20  ;;  %vm404_vm5 = vc.u32 %v402_v40, %v398_v55  ;;  %vm939_vm6 = vcmp.lt.s32.totalorder %v4883_v43, 0  ;;  %v1048_v22 = vshll.u32 %v5434_v7, %v1046_v10 }
 0x122   : > { %v603_v25 = vmul.f32 %v602_v41, %v600_v31  ;;  %v610_v63 = vmul.f32 %v609_v44, %v600_v31  ;;  %v1049_v45 = vshrl.u32 %v1031_v62, %v1047_v47  ;;  %v403_v3 = vadd.s32 %v401_v18, %v395_v17 }
 0x123   : > { %v1052_v46 = vadd.s32 127, %v1051_v61  ;;  %v397_v9 = vshrl.u32 %v393_v60, 16  ;;  %v405_v4 = vsel %vm404_vm5, 1, %v7563_v20  ;;  %v5478_v1 = vadd.s32 %v386_v38, %v377_v27 }
 0x124   : > { %v604_v49 = vadd.f32 -0.4999988, %v603_v25  ;;  %v611_v36 = vadd.f32 -0.16666654, %v610_v63  ;;  %v407_v51 = vadd.s32 %v405_v4, %v403_v3  ;;  %vm2632_vm8 = vcmp.eq.s32.totalorder %v5462_v23, 0 }
 0x125   : > { %v1050_v2 = vor.u32 %v1049_v45, %v1048_v22  ;;  %v1053_v58 = vshll.u32 %v1052_v46, 23  ;;  %v399_v16 = vshrl.u32 %v394_v37, 16  ;;  %v7447_v50 = vand.u32 2147483647, %v4910_v30 }
 0x126   : > { %v605_v62 = vmul.f32 %v604_v49, %v600_v31  ;;  %v612_v17 = vmul.f32 %v611_v36, %v600_v31  ;;  %vm2631_vm9 = vcmp.lt.s32.totalorder %v5462_v23, 2  ;;  %v5483_v61 = vadd.s32 %v402_v40, %v398_v55 }
 0x127   : > { %v408_v7 = vadd.s32 %v407_v51, %v397_v9  ;;  %vm615_vm10 = vweird.f32 %v4877_v33  ;;  %vm2635_vm11 = vcmp.eq.s32.totalorder %v5462_v23, 2  ;;  %v1054_v38 = vor.u32 4788187, %v1053_v58 }
 0x128   : > { %v1061_v60 = vsub.s32 4, %v5409_v32  ;;  %v410_v10 = vmul.u32 %v5403_v19, %v5471_v11  ;;  %v5490_v37 = vadd.f32 1.0, %v605_v62  ;;  %v613_v41 = vadd.f32 1.0, %v612_v17 }
 0x129   : > { %v409_v44 = vadd.s32 %v408_v7, %v399_v16  ;;  %vm412_vm0 = vc.u32 %v5478_v1, %v5483_v61  ;;  %v1055_v40 = vand.u32 2147483647, %v1054_v38  ;;  %v1057_v31 = vcvt.s32.f32 %v1050_v2 }
 0x12a   : > { %v789_v55 = vand.u32 8388607, %v7447_v50  ;;  %v800_v47 = vshrl.u32 %v7567_v13, %v5098_v35  ;;  %v5499_v27 = vmul.f32 %v613_v41, %v5459_v8  ;;  %v7444_v19 = vxor.u32 2147483648, %v5490_v37 }
 0x12b   : > { %v413_v11 = vadd.s32 1, %v409_v44  ;;  %v803_v18 = vshrl.u32 %v7569_v59, %v5098_v35  ;;  %v1058_v25 = vmul.f32 %v1057_v31, %v1055_v40  ;;  %v1062_v63 = vsel %vm939_vm6, %v1061_v60, %v5409_v32 }
 0x12c   : > { %v799_v45 = vshll.u32 %v7566_v39, %v5065_v12  ;;  %v806_v3 = vshrl.u32 %v7552_v26, %v5098_v35  ;;  %v7445_v8 = vxor.u32 2147483648, %v5499_v27  ;;  %v802_v46 = vshll.u32 %v7567_v13, %v5065_v12 }
 0x12d   : > { %v414_v22 = vsel %vm412_vm0, %v413_v11, %v409_v44  ;;  %v805_v9 = vshll.u32 %v7569_v59, %v5065_v12  ;;  %v1059_v4 = vxor.u32 2147483648, %v1058_v25  ;;  %v790_v36 = vor.u32 8388608, %v789_v55 }
 0x12e   : > { %v415_v49 = vadd.s32 %v414_v22, %v410_v10  ;;  %v801_v51 = vor.u32 %v800_v47, %v799_v45  ;;  %v2634_v32 = vsel %vm2632_vm8, %v5490_v37, %v7445_v8  ;;  %v2637_v2 = vsel %vm2635_vm11, %v7444_v19, %v5499_v27 }
 0x12f   : > { %v804_v58 = vor.u32 %v803_v18, %v802_v46  ;;  %v807_v16 = vor.u32 %v806_v3, %v805_v9  ;;  %v2638_v12 = vsel %vm2631_vm9, %v2634_v32, %v2637_v2  ;;  %v7579_v62 = vand.u32 2147483647, %v4883_v43 }
 0x130   : > { %v1060_v17 = vsel %vm939_vm6, %v1059_v4, %v1058_v25  ;;  %v416_v7 = vadd.s32 536870912, %v415_v49  ;;  %v5534_v38 = vsel %vm615_vm10, nan, %v2638_v12  ;;  %vm816_vm12 = vcmp.lt.s32.totalorder %v5125_v29, 3 }
 0x131   : > { %vm938_vm15 = vcmp.le.f32.partialorder %v7579_v62, 0.7853982  ;;  %7580 = vst [vmem:[#allocation51_spill] sm:$0xff] %v5534_v38  ;;  %4363 = vrot.lane.b32.xlu1 %v5534_v38, %s4790_s28  ;;  %vm814_vm4 = vcmp.lt.s32.totalorder %v5125_v29, 1  ;;  %v828_v44 = vsel %vm816_vm12, %v5154_v6, %v5193_v54  ;;  %v824_v31 = vsel %vm816_vm12, %v807_v16, %v5184_v48 }
 0x132   : > { %v5537_v60 = vsel %vm938_vm15, %v4883_v43, %v1060_v17  ;;  %v5539_v10 = vsel %vm938_vm15, 0, %v1062_v63  ;;  %v5546_v41 = vshrl.u32 %v416_v7, 30  ;;  %v822_v40 = vsel %vm814_vm4, %v801_v51, %v804_v58 }
 0x133   : > { %7581 = vst [vmem:[#allocation52_spill] sm:$0xff] %v5539_v10  ;;  %v1065_v23 = vmul.f32 %v5537_v60, %v5537_v60  ;;  %v826_v55 = vsel %vm814_vm4, %v804_v58, %v807_v16  ;;  %v5560_v47 = vshll.u32 %v790_v36, 8  ;;  %vm815_vm5 = vcmp.lt.s32.totalorder %v5125_v29, 2 }
 0x134   : > { %v418_v25 = vshll.u32 %v5546_v41, 30  ;;  %v5565_v6 = vshrl.u32 %v5421_v21, 5  ;;  %v5568_v54 = vand.u32 3, %v5539_v10  ;;  %v798_v48 = vshrl.u32 %v7566_v39, %v5098_v35 }
 0x135   : > { %v1066_v11 = vmul.f32 -0.001358992, %v1065_v23  ;;  %v1073_v18 = vmul.f32 -0.00019511016, %v1065_v23  ;;  %v829_v63 = vsel %vm815_vm5, %v826_v55, %v828_v44  ;;  %v825_v46 = vsel %vm815_vm5, %v822_v40, %v824_v31 }
 0x136   : > { %v5574_v22 = vsub.s32 %v415_v49, %v418_v25  ;;  %v819_v9 = vsel %vm817_vm2, %v807_v16, 2102212464  ;;  %v831_v4 = vand.u32 65535, %v5560_v47  ;;  %v833_v36 = vand.u32 65535, %v829_v63 }
 0x137   : > { %v1067_v45 = vadd.f32 0.041655596, %v1066_v11  ;;  %v1074_v3 = vadd.f32 0.008332121, %v1073_v18  ;;  %v834_v32 = vshrl.u32 %v829_v63, 16  ;;  %v818_v49 = vsel %vm814_vm4, %v798_v48, %v801_v51 }
 0x138   : > { %vm420_vm6 = vcmp.lt.s32.totalorder %v5574_v22, 0  ;;  %v421_v35 = vsub.s32 0, %v5574_v22  ;;  %v832_v62 = vshrl.u32 %v5560_v47, 16  ;;  %v856_v7 = vshrl.u32 %v825_v46, 16 }
 0x139   : > { %v1068_v2 = vmul.f32 %v1067_v45, %v1065_v23  ;;  %v1075_v12 = vmul.f32 %v1074_v3, %v1065_v23  ;;  %v836_v17 = vmul.u32 %v834_v32, %v831_v4  ;;  %v820_v31 = vsel %vm816_vm12, %v804_v58, %v819_v9 }
 0x13a   : > { %v422_v16 = vsel %vm420_vm6, %v421_v35, %v5574_v22  ;;  %vm3094_vm2 = vcmp.eq.s32.totalorder %v5568_v54, 0  ;;  %vm3097_vm8 = vcmp.eq.s32.totalorder %v5568_v54, 2  ;;  %v411_v55 = vadd.s32 %v5483_v61, %v5478_v1 }
 0x13b   : > { %v1069_v44 = vadd.f32 -0.4999988, %v1068_v2  ;;  %v1076_v40 = vadd.f32 -0.16666654, %v1075_v12  ;;  %v423_v11 = vclz %v422_v16  ;;  %v5593_v51 = vmul.u32 %v833_v36, %v832_v62 }
 0x13c   : > { %v855_v18 = vand.u32 65535, %v825_v46  ;;  %vm3093_vm9 = vcmp.lt.s32.totalorder %v5568_v54, 2  ;;  %v835_v63 = vmul.u32 %v833_v36, %v831_v4  ;;  %v839_v45 = vshll.u32 %v836_v17, 16 }
 0x13d   : > { %v1070_v25 = vmul.f32 %v1069_v44, %v1065_v23  ;;  %v1077_v48 = vmul.f32 %v1076_v40, %v1065_v23  ;;  %vm7448_vm11 = vweird.f32 %v4883_v43  ;;  %v4577_v58 = vadd.s32 4294967294, %v423_v11 }
 0x13e   : > { %v5599_v3 = vsel %vm815_vm5, %v818_v49, %v820_v31  ;;  %v838_v9 = vmul.u32 %v834_v32, %v832_v62  ;;  %v858_v2 = vmul.u32 %v856_v7, %v831_v4  ;;  %vm843_vm0 = vc.u32 %v835_v63, %v839_v45 }
 0x13f   : > { %v5601_v1 = vadd.f32 1.0, %v1070_v25  ;;  %v1078_v61 = vadd.f32 1.0, %v1077_v48  ;;  %v845_v46 = vadd.s32 %v839_v45, %v835_v63  ;;  %vm4578_vm15 = vcmp.lt.s32.totalorder %v4577_v58, 0 }
 0x140   : > { %v841_v23 = vshll.u32 %v5593_v51, 16  ;;  %v844_v36 = vsel %vm843_vm0, 1, %v7563_v20  ;;  %v857_v12 = vmul.u32 %v855_v18, %v831_v4  ;;  %v426_v49 = vsel %vm4578_vm15, 0, %v4577_v58 }
 0x141   : > { %7582 = vst [vmem:[#allocation53_spill] sm:$0xff] %v5601_v1  ;;  %v5606_v35 = vmul.f32 %v1078_v61, %v5537_v60  ;;  %v7442_v29 = vxor.u32 2147483648, %v5601_v1  ;;  %v846_v44 = vadd.s32 %v844_v36, %v838_v9  ;;  %v427_v32 = vsub.s32 32, %v426_v49 }
 0x142   : > { %v431_v40 = vsub.s32 4294967266, %v426_v49  ;;  %vm847_vm12 = vc.u32 %v845_v46, %v841_v23  ;;  %v859_v16 = vmul.u32 %v855_v18, %v832_v62  ;;  %v840_v11 = vshrl.u32 %v836_v17, 16 }
 0x143   : > { %7583 = vst [vmem:[#allocation54_spill] sm:$0xff] %v5606_v35  ;;  %v7443_v31 = vxor.u32 2147483648, %v5606_v35  ;;  %v848_v25 = vsel %vm847_vm12, 1, %v7563_v20  ;;  %v861_v48 = vshll.u32 %v858_v2, 16  ;;  %v428_v63 = vshll.u32 %v5574_v22, %v426_v49 }
 0x144   : > { %v429_v4 = vshrl.u32 %v411_v55, %v427_v32  ;;  %v432_v45 = vadd.s32 127, %v431_v40  ;;  %v850_v60 = vadd.s32 %v848_v25, %v846_v44  ;;  %v3099_v17 = vsel %vm3097_vm8, %v7442_v29, %v5606_v35 }
 0x145   : > { %v3096_v58 = vsel %vm3094_vm2, %v5601_v1, %v7443_v31  ;;  %v860_v18 = vmul.u32 %v856_v7, %v832_v62  ;;  %vm865_vm4 = vc.u32 %v857_v12, %v861_v48  ;;  %vm319_vm5 = vcmp.lt.s32.totalorder %v4899_v5, 0 }
 0x146   : > { %v3100_v22 = vsel %vm3093_vm9, %v3096_v58, %v3099_v17  ;;  %v430_v55 = vor.u32 %v429_v4, %v428_v63  ;;  %v433_v9 = vshll.u32 %v432_v45, 23  ;;  %v863_v61 = vshll.u32 %v859_v16, 16 }
 0x147   : > { %v5627_v46 = vsel %vm7448_vm11, nan, %v3100_v22  ;;  %v851_v23 = vadd.s32 %v850_v60, %v840_v11  ;;  %v866_v36 = vsel %vm865_vm4, 1, %v7563_v20  ;;  %v867_v49 = vadd.s32 %v861_v48, %v857_v12 }
 0x148   : > { %7584 = vst [vmem:[#allocation55_spill] sm:$0xff] %v5627_v46  ;;  %4369 = vrot.lane.b32.xlu1 %v5627_v46, %s4790_s28  ;;  %v7585_v62 = vand.u32 2147483647, %v4899_v5  ;;  %v434_v7 = vor.u32 4788187, %v433_v9  ;;  %v441_v44 = vsub.s32 4, %v5546_v41  ;;  %v868_v32 = vadd.s32 %v866_v36, %v860_v18 }
 0x149   : > { %v842_v40 = vshrl.u32 %v5593_v51, 16  ;;  %vm869_vm2 = vc.u32 %v867_v49, %v863_v61  ;;  %v875_v11 = vmul.u32 %v5560_v47, %v5599_v3  ;;  %v7446_v12 = vand.u32 2147483647, %v4915_v28 }
 0x14a   : > { %vm5634_vm6 = vcmp.le.f32.partialorder %v7585_v62, 0.7853982  ;;  %v435_v25 = vand.u32 2147483647, %v434_v7  ;;  %v437_v48 = vcvt.s32.f32 %v430_v55  ;;  %v862_v63 = vshrl.u32 %v858_v2, 16 }
 0x14b   : > { %v870_v4 = vsel %vm869_vm2, 1, %v7563_v20  ;;  %v5644_v45 = vadd.s32 %v851_v23, %v842_v40  ;;  %v864_v60 = vshrl.u32 %v859_v16, 16  ;;  %v644_v17 = vshll.u32 %v7566_v39, %v5071_v53 }
 0x14c   : > { %v872_v58 = vadd.s32 %v870_v4, %v868_v32  ;;  %v438_v18 = vmul.f32 %v437_v48, %v435_v25  ;;  %v634_v51 = vand.u32 8388607, %v7446_v12  ;;  %v645_v47 = vshrl.u32 %v7567_v13, %v5106_v24  ;;  %v7589_v4 = vld [vmem:[#allocation40_spill] sm:$0xff] }
 0x14d   : > { %v647_v3 = vshll.u32 %v7567_v13, %v5071_v53  ;;  %v648_v22 = vshrl.u32 %v7569_v59, %v5106_v24  ;;  %v650_v16 = vshll.u32 %v7569_v59, %v5071_v53  ;;  %v651_v55 = vshrl.u32 %v7552_v26, %v5106_v24 }
 0x14e   : > { %v873_v2 = vadd.s32 %v872_v58, %v862_v63  ;;  %vm2033_vm8 = vcmp.gt.s32.totalorder %v5304_v34, 0  ;;  %v439_v9 = vxor.u32 2147483648, %v438_v18  ;;  %v5661_v23 = vadd.s32 %v867_v49, %v863_v61  ;;  %v7588_v61 = vld [vmem:[#allocation35_spill] sm:$0xff] }
 0x14f   : > { %v635_v36 = vor.u32 8388608, %v634_v51  ;;  %v5663_v62 = vor.u32 %v645_v47, %v644_v17  ;;  %v442_v7 = vsel %vm319_vm5, %v441_v44, %v5546_v41  ;;  %v5668_v40 = vor.u32 %v648_v22, %v647_v3  ;;  %v7590_v47 = vld [vmem:[#allocation41_spill] sm:$0xff]  ;;  %v7591_v3 = vld [vmem:[#allocation36_spill] sm:$0xff] }
 0x150   : > { %v874_v32 = vadd.s32 %v873_v2, %v864_v60  ;;  %v5670_v25 = vor.u32 %v651_v55, %v650_v16  ;;  %v440_v53 = vsel %vm319_vm5, %v439_v9, %v438_v18  ;;  %vm877_vm9 = vc.u32 %v5644_v45, %v5661_v23 }
 0x151   : > { %vm659_vm0 = vcmp.lt.s32.totalorder %v7588_v61, 1  ;;  %vm661_vm15 = vcmp.lt.s32.totalorder %v7588_v61, 3  ;;  %v5681_v49 = vsel %vm5634_vm6, %v4899_v5, %v440_v53  ;;  %v5687_v48 = vshll.u32 %v635_v36, 8 }
 0x152   : > { %v878_v41 = vadd.s32 1, %v874_v32  ;;  %v667_v44 = vsel %vm659_vm0, %v5663_v62, %v5668_v40  ;;  %v445_v63 = vmul.f32 %v5681_v49, %v5681_v49  ;;  %vm660_vm12 = vcmp.lt.s32.totalorder %v7588_v61, 2 }
 0x153   : > { %v669_v60 = vsel %vm661_vm15, %v5670_v25, %v7589_v4  ;;  %v671_v58 = vsel %vm659_vm0, %v5668_v40, %v5670_v25  ;;  %v5702_v17 = vsel %vm5634_vm6, 0, %v442_v7  ;;  %v673_v2 = vsel %vm661_vm15, %v7591_v3, %v7590_v47 }
 0x154   : > { %v879_v18 = vsel %vm877_vm9, %v878_v41, %v874_v32  ;;  %v5706_v51 = vsel %vm660_vm12, %v667_v44, %v669_v60  ;;  %v446_v22 = vmul.f32 -0.001358992, %v445_v63  ;;  %v453_v16 = vmul.f32 -0.00019511016, %v445_v63 }
 0x155   : > { %v880_v55 = vadd.s32 %v879_v18, %v875_v11  ;;  %v674_v9 = vsel %vm660_vm12, %v671_v58, %v673_v2  ;;  %v676_v54 = vand.u32 65535, %v5687_v48  ;;  %v677_v36 = vshrl.u32 %v5687_v48, 16 }
 0x156   : > { %v678_v7 = vand.u32 65535, %v674_v9  ;;  %v679_v32 = vshrl.u32 %v674_v9, 16  ;;  %v5717_v53 = vand.u32 31, %v5421_v21  ;;  %v447_v41 = vadd.f32 0.041655596, %v446_v22 }
 0x157   : > { %v454_v44 = vadd.f32 0.008332121, %v453_v16  ;;  %v881_v4 = vadd.s32 536870912, %v880_v55  ;;  %v5721_v60 = vor.u32 %v5407_v14, %v5326_v15  ;;  %v2476_v11 = vand.u32 3, %v5702_v17 }
 0x158   : > { %v681_v18 = vmul.u32 %v679_v32, %v676_v54  ;;  %v5724_v58 = vmul.u32 %v678_v7, %v677_v36  ;;  %v448_v47 = vmul.f32 %v447_v41, %v445_v63  ;;  %v701_v9 = vshrl.u32 %v5706_v51, 16 }
 0x159   : > { %v455_v3 = vmul.f32 %v454_v44, %v445_v63  ;;  %v5726_v2 = vshrl.u32 %v881_v4, 30  ;;  %v5734_v22 = vsel %vm2033_vm8, %v5304_v34, 0  ;;  %v680_v15 = vmul.u32 %v678_v7, %v676_v54 }
 0x15a   : > { %v684_v14 = vshll.u32 %v681_v18, 16  ;;  %v5737_v16 = vsub.s32 32, %v5445_v42  ;;  %v449_v29 = vadd.f32 -0.4999988, %v448_v47  ;;  %vm2478_vm4 = vcmp.eq.s32.totalorder %v2476_v11, 0 }
 0x15b   : > { %v456_v41 = vadd.f32 -0.16666654, %v455_v3  ;;  %v883_v44 = vshll.u32 %v5726_v2, 30  ;;  %v686_v4 = vshll.u32 %v5724_v58, 16  ;;  %v700_v19 = vand.u32 65535, %v5706_v51 }
 0x15c   : > { %vm688_vm5 = vc.u32 %v680_v15, %v684_v14  ;;  %v690_v31 = vadd.s32 %v684_v14, %v680_v15  ;;  %v450_v8 = vmul.f32 %v449_v29, %v445_v63  ;;  %vm2477_vm6 = vcmp.lt.s32.totalorder %v2476_v11, 2 }
 0x15d   : > { %v457_v12 = vmul.f32 %v456_v41, %v445_v63  ;;  %v884_v34 = vsub.s32 %v880_v55, %v883_v44  ;;  %v703_v7 = vmul.u32 %v701_v9, %v676_v54  ;;  %vm460_vm2 = vweird.f32 %v4899_v5 }
 0x15e   : > { %vm2481_vm8 = vcmp.eq.s32.totalorder %v2476_v11, 2  ;;  %v683_v21 = vmul.u32 %v679_v32, %v677_v36  ;;  %v689_v47 = vsel %vm688_vm5, 1, %v7563_v20  ;;  %vm692_vm9 = vc.u32 %v690_v31, %v686_v4 }
 0x15f   : > { %v5744_v3 = vadd.f32 1.0, %v450_v8  ;;  %v458_v50 = vadd.f32 1.0, %v457_v12  ;;  %vm885_vm11 = vcmp.lt.s32.totalorder %v884_v34, 0  ;;  %v886_v46 = vsub.s32 0, %v884_v34 }
 0x160   : > { %v643_v51 = vshrl.u32 %v7566_v39, %v5106_v24  ;;  %v691_v29 = vadd.s32 %v689_v47, %v683_v21  ;;  %v693_v63 = vsel %vm692_vm9, 1, %v7563_v20  ;;  %v704_v55 = vmul.u32 %v700_v19, %v677_v36 }
 0x161   : > { %7592 = vst [vmem:[#allocation35_spill] sm:$0xff] %v5744_v3  ;;  %v5750_v15 = vmul.f32 %v458_v50, %v5681_v49  ;;  %v7450_v32 = vxor.u32 2147483648, %v5744_v3  ;;  %v887_v14 = vsel %vm885_vm11, %v886_v46, %v884_v34  ;;  %v706_v41 = vshll.u32 %v703_v7, 16 }
 0x162   : > { %v876_v8 = vadd.s32 %v5661_v23, %v5644_v45  ;;  %v888_v31 = vclz %v887_v14  ;;  %v663_v12 = vsel %vm659_vm0, %v643_v51, %v5663_v62  ;;  %v702_v24 = vmul.u32 %v700_v19, %v676_v54 }
 0x163   : > { %7593 = vst [vmem:[#allocation40_spill] sm:$0xff] %v5750_v15  ;;  %v7451_v21 = vxor.u32 2147483648, %v5750_v15  ;;  %v664_v50 = vsel %vm662_vm3, %v5670_v25, 2102212464  ;;  %v685_v49 = vshrl.u32 %v681_v18, 16  ;;  %v695_v44 = vadd.s32 %v693_v63, %v691_v29 }
 0x164   : > { %v2483_v46 = vsel %vm2481_vm8, %v7450_v32, %v5750_v15  ;;  %v4586_v45 = vadd.s32 4294967294, %v888_v31  ;;  %v705_v23 = vmul.u32 %v701_v9, %v677_v36  ;;  %vm710_vm11 = vc.u32 %v702_v24, %v706_v41 }
 0x165   : > { %v2480_v19 = vsel %vm2478_vm4, %v5744_v3, %v7451_v21  ;;  %v708_v62 = vshll.u32 %v704_v55, 16  ;;  %v711_v54 = vsel %vm710_vm11, 1, %v7563_v20  ;;  %v712_v4 = vadd.s32 %v706_v41, %v702_v24  ;;  %v7595_v24 = vld [vmem:[#allocation7_spill] sm:$0xff] }
 0x166   : > { %v2484_v25 = vsel %vm2477_vm6, %v2480_v19, %v2483_v46  ;;  %vm4587_vm3 = vcmp.lt.s32.totalorder %v4586_v45, 0  ;;  %v696_v18 = vadd.s32 %v695_v44, %v685_v49  ;;  %v713_v47 = vadd.s32 %v711_v54, %v705_v23 }
 0x167   : > { %v5774_v51 = vsel %vm460_vm2, nan, %v2484_v25  ;;  %v891_v36 = vsel %vm4587_vm3, 0, %v4586_v45  ;;  %v665_v9 = vsel %vm661_vm15, %v5668_v40, %v664_v50  ;;  %vm714_vm0 = vc.u32 %v712_v4, %v708_v62 }
 0x168   : > { %7594 = vst [vmem:[#allocation41_spill] sm:$0xff] %v5774_v51  ;;  %4361 = vrot.lane.b32.xlu0 %v5774_v51, %s4790_s28  ;;  %v892_v29 = vsub.s32 32, %v891_v36  ;;  %v896_v63 = vsub.s32 4294967266, %v891_v36  ;;  %v687_v11 = vshrl.u32 %v5724_v58, 16  ;;  %v715_v14 = vsel %vm714_vm0, 1, %v7563_v20 }
 0x169   : > { %vm784_vm4 = vcmp.lt.s32.totalorder %v4910_v30, 0  ;;  %v707_v41 = vshrl.u32 %v703_v7, 16  ;;  %v717_v31 = vadd.s32 %v715_v14, %v713_v47  ;;  %v7452_v49 = vand.u32 2147483647, %v7595_v24 }
 0x16a   : > { %v893_v44 = vshll.u32 %v884_v34, %v891_v36  ;;  %v894_v46 = vshrl.u32 %v876_v8, %v892_v29  ;;  %v897_v45 = vadd.s32 127, %v896_v63  ;;  %v5785_v40 = vadd.s32 %v696_v18, %v687_v11  ;;  %v7596_v34 = vld [vmem:[#allocation16_spill] sm:$0xff]  ;;  %v7597_v18 = vld [vmem:[#allocation14_spill] sm:$0xff] }
 0x16b   : > { %v906_v50 = vsub.s32 4, %v5726_v2  ;;  %v666_v23 = vsel %vm660_vm12, %v663_v12, %v665_v9  ;;  %v709_v19 = vshrl.u32 %v704_v55, 16  ;;  %v718_v58 = vadd.s32 %v717_v31, %v707_v41  ;;  %v7598_v12 = vld [vmem:[#allocation44_spill] sm:$0xff] }
 0x16c   : > { %v895_v54 = vor.u32 %v894_v46, %v893_v44  ;;  %v898_v25 = vshll.u32 %v897_v45, 23  ;;  %v5790_v32 = vadd.s32 %v712_v4, %v708_v62  ;;  %v1254_v7 = vand.u32 8388607, %v7452_v49 }
 0x16d   : > { %v719_v47 = vadd.s32 %v718_v58, %v709_v19  ;;  %v1265_v8 = vshrl.u32 %v7567_v13, %v7596_v34  ;;  %v1267_v36 = vshll.u32 %v7567_v13, %v7597_v18  ;;  %v1268_v61 = vshrl.u32 %v7569_v59, %v7596_v34  ;;  %v7599_v58 = vld [vmem:[#allocation19_spill] sm:$0xff] }
 0x16e   : > { %vm1437_vm15 = vcmp.lt.s32.totalorder %v7598_v12, 4  ;;  %v899_v55 = vor.u32 4788187, %v898_v25  ;;  %vm722_vm12 = vc.u32 %v5785_v40, %v5790_v32  ;;  %v1255_v62 = vor.u32 8388608, %v1254_v7 }
 0x16f   : > { %v1264_v4 = vshll.u32 %v7566_v39, %v7597_v18  ;;  %v723_v9 = vadd.s32 1, %v719_v47  ;;  %v5805_v29 = vor.u32 %v1268_v61, %v1267_v36  ;;  %v1270_v63 = vshll.u32 %v7569_v59, %v7597_v18  ;;  %v7600_v18 = vld [vmem:[#allocation29_spill] sm:$0xff]  ;;  %v7601_v36 = vld [vmem:[#allocation23_spill] sm:$0xff] }
 0x170   : > { %v1271_v11 = vshrl.u32 %v7552_v26, %v7596_v34  ;;  %v900_v14 = vand.u32 2147483647, %v899_v55  ;;  %v902_v41 = vcvt.s32.f32 %v895_v54  ;;  %v907_v31 = vsel %vm784_vm4, %v906_v50, %v5726_v2 }
 0x171   : > { %v720_v44 = vmul.u32 %v5687_v48, %v666_v23  ;;  %v724_v46 = vsel %vm722_vm12, %v723_v9, %v719_v47  ;;  %v1266_v45 = vor.u32 %v1265_v8, %v1264_v4  ;;  %vm1281_vm5 = vcmp.lt.s32.totalorder %v7599_v58, 3  ;;  %v7604_v9 = vld [vmem:[#allocation28_spill] sm:$0xff] }
 0x172   : > { %v1272_v19 = vor.u32 %v1271_v11, %v1270_v63  ;;  %v903_v25 = vmul.f32 %v902_v41, %v900_v14  ;;  %vm1279_vm6 = vcmp.lt.s32.totalorder %v7599_v58, 1  ;;  %v1293_v54 = vsel %vm1281_vm5, %v7601_v36, %v7600_v18 }
 0x173   : > { %v725_v7 = vadd.s32 %v724_v46, %v720_v44  ;;  %v5823_v61 = vshll.u32 %v7552_v26, %v5445_v42  ;;  %v5827_v48 = vshll.u32 %v7562_v56, %v5445_v42  ;;  %v5832_v50 = vshll.u32 %v1255_v62, 8 }
 0x174   : > { %v1291_v2 = vsel %vm1279_vm6, %v5805_v29, %v1272_v19  ;;  %v7602_v23 = vand.u32 2147483647, %v4910_v30  ;;  %v904_v47 = vxor.u32 2147483648, %v903_v25  ;;  %vm1280_vm9 = vcmp.lt.s32.totalorder %v7599_v58, 2 }
 0x175   : > { %v726_v8 = vadd.s32 536870912, %v725_v7  ;;  %v1287_v4 = vsel %vm1279_vm6, %v1266_v45, %v5805_v29  ;;  %v1289_v63 = vsel %vm1281_vm5, %v1272_v19, %v7604_v9  ;;  %v1294_v62 = vsel %vm1280_vm9, %v1291_v2, %v1293_v54 }
 0x176   : > { %vm783_vm8 = vcmp.le.f32.partialorder %v7602_v23, 0.7853982  ;;  %v905_v11 = vsel %vm784_vm4, %v904_v47, %v903_v25  ;;  %v1298_v41 = vand.u32 65535, %v1294_v62  ;;  %v1299_v44 = vshrl.u32 %v1294_v62, 16 }
 0x177   : > { %v5837_v55 = vsel %vm783_vm8, 0, %v907_v31  ;;  %v5849_v14 = vshrl.u32 %v726_v8, 30  ;;  %v5854_v31 = vsel %vm1437_vm15, %v5721_v60, 920167782  ;;  %v5857_v46 = vsel %vm783_vm8, %v4910_v30, %v905_v11 }
 0x178   : > { %7603 = vst [vmem:[#allocation36_spill] sm:$0xff] %v5837_v55  ;;  %v1296_v18 = vand.u32 65535, %v5832_v50  ;;  %v1297_v36 = vshrl.u32 %v5832_v50, 16  ;;  %v7605_v54 = vor.u32 %v5416_v0, %v5330_v52  ;;  %v910_v2 = vmul.f32 %v5857_v46, %v5857_v46 }
 0x179   : > { %v728_v23 = vshll.u32 %v5849_v14, 30  ;;  %v1290_v47 = vsel %vm1280_vm9, %v1287_v4, %v1289_v63  ;;  %v5874_v8 = vand.u32 3, %v5837_v55  ;;  %v1263_v9 = vshrl.u32 %v7566_v39, %v7596_v34 }
 0x17a   : > { %v5866_v25 = vsel %vm1437_vm15, %v7605_v54, 1326507024  ;;  %v5878_v62 = vmul.u32 %v1299_v44, %v1296_v18  ;;  %v5880_v52 = vmul.u32 %v1298_v41, %v1297_v36  ;;  %v911_v0 = vmul.f32 -0.001358992, %v910_v2 }
 0x17b   : > { %v918_v11 = vmul.f32 -0.00019511016, %v910_v2  ;;  %v5882_v54 = vsub.s32 %v725_v7, %v728_v23  ;;  %v1284_v21 = vsel %vm1282_vm13, %v1272_v19, 2102212464  ;;  %v1300_v49 = vmul.u32 %v1298_v41, %v1296_v18 }
 0x17c   : > { %v1304_v4 = vshll.u32 %v5878_v62, 16  ;;  %v1320_v63 = vand.u32 65535, %v1290_v47  ;;  %v1321_v38 = vshrl.u32 %v1290_v47, 16  ;;  %v912_v51 = vadd.f32 0.041655596, %v911_v0 }
 0x17d   : > { %v919_v55 = vadd.f32 0.008332121, %v918_v11  ;;  %vm730_vm11 = vcmp.lt.s32.totalorder %v5882_v54, 0  ;;  %v731_v34 = vsub.s32 0, %v5882_v54  ;;  %v1303_v43 = vmul.u32 %v1299_v44, %v1297_v36 }
 0x17e   : > { %v1306_v1 = vshll.u32 %v5880_v52, 16  ;;  %vm1308_vm3 = vc.u32 %v1300_v49, %v1304_v4  ;;  %v1310_v7 = vadd.s32 %v1304_v4, %v1300_v49  ;;  %v913_v23 = vmul.f32 %v912_v51, %v910_v2 }
 0x17f   : > { %v920_v35 = vmul.f32 %v919_v55, %v910_v2  ;;  %v732_v19 = vsel %vm730_vm11, %v731_v34, %v5882_v54  ;;  %v1309_v41 = vsel %vm1308_vm3, 1, %v7563_v20  ;;  %v721_v47 = vadd.s32 %v5790_v32, %v5785_v40 }
 0x180   : > { %v733_v0 = vclz %v732_v19  ;;  %v1283_v11 = vsel %vm1279_vm6, %v1263_v9, %v1266_v45  ;;  %v1285_v44 = vsel %vm1281_vm5, %v5805_v29, %v1284_v21  ;;  %v914_v5 = vadd.f32 -0.4999988, %v913_v23 }
 0x181   : > { %v921_v3 = vadd.f32 -0.16666654, %v920_v35  ;;  %v1311_v49 = vadd.s32 %v1309_v41, %v1303_v43  ;;  %vm1312_vm13 = vc.u32 %v1310_v7, %v1306_v1  ;;  %vm2940_vm0 = vcmp.eq.s32.totalorder %v5874_v8, 0 }
 0x182   : > { %vm2943_vm4 = vcmp.eq.s32.totalorder %v5874_v8, 2  ;;  %v4583_v51 = vadd.s32 4294967294, %v733_v0  ;;  %v1313_v55 = vsel %vm1312_vm13, 1, %v7563_v20  ;;  %v1323_v32 = vmul.u32 %v1321_v38, %v1296_v18 }
 0x183   : > { %v1324_v40 = vmul.u32 %v1320_v63, %v1297_v36  ;;  %v915_v4 = vmul.f32 %v914_v5, %v910_v2  ;;  %v922_v34 = vmul.f32 %v921_v3, %v910_v2  ;;  %vm2939_vm12 = vcmp.lt.s32.totalorder %v5874_v8, 2 }
 0x184   : > { %v751_v45 = vsub.s32 4, %v5849_v14  ;;  %v5906_v35 = vsel %vm1280_vm9, %v1283_v11, %v1285_v44  ;;  %vm7501_vm5 = vweird.f32 %v4910_v30  ;;  %vm4584_vm6 = vcmp.lt.s32.totalorder %v4583_v51, 0 }
 0x185   : > { %v1305_v43 = vshrl.u32 %v5878_v62, 16  ;;  %v1322_v1 = vmul.u32 %v1320_v63, %v1296_v18  ;;  %v1326_v21 = vshll.u32 %v1323_v32, 16  ;;  %v5910_v29 = vadd.f32 1.0, %v915_v4 }
 0x186   : > { %v923_v9 = vadd.f32 1.0, %v922_v34  ;;  %v736_v5 = vsel %vm4584_vm6, 0, %v4583_v51  ;;  %v1315_v3 = vadd.s32 %v1313_v55, %v1311_v49  ;;  %v1325_v23 = vmul.u32 %v1321_v38, %v1297_v36  ;;  %v7608_v36 = vld [vmem:[#allocation13_spill] sm:$0xff] }
 0x187   : > { %7606 = vst [vmem:[#allocation16_spill] sm:$0xff] %v5910_v29  ;;  %v737_v2 = vsub.s32 32, %v736_v5  ;;  %v741_v7 = vsub.s32 4294967266, %v736_v5  ;;  %v1328_v19 = vshll.u32 %v1324_v40, 16  ;;  %v7464_v41 = vxor.u32 2147483648, %v5910_v29 }
 0x188   : > { %v5913_v58 = vmul.f32 %v923_v9, %v5857_v46  ;;  %v738_v0 = vshll.u32 %v5882_v54, %v736_v5  ;;  %vm1330_vm8 = vc.u32 %v1322_v1, %v1326_v21  ;;  %vm629_vm9 = vcmp.lt.s32.totalorder %v4915_v28, 0 }
 0x189   : > { %v739_v18 = vshrl.u32 %v721_v47, %v737_v2  ;;  %v742_v62 = vadd.s32 127, %v741_v7  ;;  %v1331_v63 = vsel %vm1330_vm8, 1, %v7563_v20  ;;  %v1332_v11 = vadd.s32 %v1326_v21, %v1322_v1 }
 0x18a   : > { %7607 = vst [vmem:[#allocation14_spill] sm:$0xff] %v5913_v58  ;;  %v7465_v44 = vxor.u32 2147483648, %v5913_v58  ;;  %v1316_v49 = vadd.s32 %v1315_v3, %v1305_v43  ;;  %v1333_v38 = vadd.s32 %v1331_v63, %v1325_v23  ;;  %v7466_v51 = vand.u32 2147483647, %v7608_v36 }
 0x18b   : > { %v740_v46 = vor.u32 %v739_v18, %v738_v0  ;;  %v743_v55 = vshll.u32 %v742_v62, 23  ;;  %v1307_v4 = vshrl.u32 %v5880_v52, 16  ;;  %vm1334_vm11 = vc.u32 %v1332_v11, %v1328_v19  ;;  %v7610_v0 = vld [vmem:[#allocation34_spill] sm:$0xff]  ;;  %v7611_v62 = vld [vmem:[#allocation39_spill] sm:$0xff] }
 0x18c   : > { %v2942_v54 = vsel %vm2940_vm0, %v5910_v29, %v7465_v44  ;;  %v2945_v47 = vsel %vm2943_vm4, %v7464_v41, %v5913_v58  ;;  %v1327_v34 = vshrl.u32 %v1323_v32, 16  ;;  %v1335_v43 = vsel %vm1334_vm11, 1, %v7563_v20 }
 0x18d   : > { %v2946_v1 = vsel %vm2939_vm12, %v2942_v54, %v2945_v47  ;;  %v744_v52 = vor.u32 4788187, %v743_v55  ;;  %v1329_v21 = vshrl.u32 %v1324_v40, 16  ;;  %v1337_v9 = vadd.s32 %v1335_v43, %v1333_v38 }
 0x18e   : > { %v5937_v5 = vsel %vm7501_vm5, nan, %v2946_v1  ;;  %v5939_v3 = vadd.s32 %v1316_v49, %v1307_v4  ;;  %v5941_v2 = vadd.s32 %v1332_v11, %v1328_v19  ;;  %v1099_v7 = vand.u32 8388607, %v7466_v51 }
 0x18f   : > { %7609 = vst [vmem:[#allocation44_spill] sm:$0xff] %v5937_v5  ;;  %4367 = vrot.lane.b32.xlu0 %v5937_v5, %s4790_s28  ;;  %v745_v32 = vand.u32 2147483647, %v744_v52  ;;  %v747_v8 = vcvt.s32.f32 %v740_v46  ;;  %v1338_v23 = vadd.s32 %v1337_v9, %v1327_v34  ;;  %v1109_v40 = vshll.u32 %v7566_v39, %v7610_v0 }
 0x190   : > { %v1100_v18 = vor.u32 8388608, %v1099_v7  ;;  %v1110_v63 = vshrl.u32 %v7567_v13, %v7611_v62  ;;  %v1112_v19 = vshll.u32 %v7567_v13, %v7610_v0  ;;  %v1113_v11 = vshrl.u32 %v7569_v59, %v7611_v62  ;;  %v7612_v7 = vld [vmem:[#allocation42_spill] sm:$0xff] }
 0x191   : > { %v748_v49 = vmul.f32 %v747_v8, %v745_v32  ;;  %v1339_v38 = vadd.s32 %v1338_v23, %v1329_v21  ;;  %v1115_v55 = vshll.u32 %v7569_v59, %v7610_v0  ;;  %v1116_v46 = vshrl.u32 %v7552_v26, %v7611_v62  ;;  %v7614_v23 = vld [vmem:[#allocation47_spill] sm:$0xff] }
 0x192   : > { %v5960_v4 = vsub.s32 32, %v5717_v53  ;;  %v752_v54 = vsel %vm629_vm9, %v751_v45, %v5849_v14  ;;  %vm1342_vm3 = vc.u32 %v5939_v3, %v5941_v2  ;;  %v5967_v47 = vor.u32 %v1110_v63, %v1109_v40  ;;  %v7615_v0 = vld [vmem:[#allocation43_spill] sm:$0xff] }
 0x193   : > { %v749_v34 = vxor.u32 2147483648, %v748_v49  ;;  %v1343_v43 = vadd.s32 1, %v1339_v38  ;;  %v5969_v1 = vor.u32 %v1113_v11, %v1112_v19  ;;  %v1117_v52 = vor.u32 %v1116_v46, %v1115_v55 }
 0x194   : > { %v5973_v21 = vshll.u32 %v7552_v26, %v5717_v53  ;;  %v1340_v9 = vmul.u32 %v5832_v50, %v5906_v35  ;;  %vm1126_vm13 = vcmp.lt.s32.totalorder %v7612_v7, 3  ;;  %v5978_v14 = vshll.u32 %v1100_v18, 8 }
 0x195   : > { %v7613_v45 = vand.u32 2147483647, %v4915_v28  ;;  %v750_v32 = vsel %vm629_vm9, %v749_v34, %v748_v49  ;;  %v1344_v8 = vsel %vm1342_vm3, %v1343_v43, %v1339_v38  ;;  %v1138_v40 = vsel %vm1126_vm13, %v7615_v0, %v7614_v23  ;;  %v7617_v38 = vld [vmem:[#allocation46_spill] sm:$0xff] }
 0x196   : > { %v1345_v35 = vadd.s32 %v1344_v8, %v1340_v9  ;;  %vm1124_vm4 = vcmp.lt.s32.totalorder %v7612_v7, 1  ;;  %vm1125_vm12 = vcmp.lt.s32.totalorder %v7612_v7, 2  ;;  %v1134_v55 = vsel %vm1126_vm13, %v1117_v52, %v7617_v38 }
 0x197   : > { %vm628_vm0 = vcmp.le.f32.partialorder %v7613_v45, 0.7853982  ;;  %v1132_v19 = vsel %vm1124_vm4, %v5967_v47, %v5969_v1  ;;  %v1136_v11 = vsel %vm1124_vm4, %v5969_v1, %v1117_v52  ;;  %v6016_v8 = vshrl.u32 %v7550_v57, %v5737_v16 }
 0x198   : > { %v5989_v63 = vsel %vm628_vm0, %v4915_v28, %v750_v32  ;;  %v5991_v50 = vsel %vm628_vm0, 0, %v752_v54  ;;  %v1346_v49 = vadd.s32 536870912, %v1345_v35  ;;  %v1139_v46 = vsel %vm1125_vm12, %v1136_v11, %v1138_v40 }
 0x199   : > { %7616 = vst [vmem:[#allocation19_spill] sm:$0xff] %v5991_v50  ;;  %v755_v18 = vmul.f32 %v5989_v63, %v5989_v63  ;;  %v1141_v54 = vand.u32 65535, %v5978_v14  ;;  %v1143_v9 = vand.u32 65535, %v1139_v46  ;;  %v1144_v45 = vshrl.u32 %v1139_v46, 16 }
 0x19a   : > { %v6012_v32 = vshrl.u32 %v7562_v56, %v5737_v16  ;;  %v6018_v23 = vshrl.u32 %v1346_v49, 30  ;;  %v1142_v0 = vshrl.u32 %v5978_v14, 16  ;;  %v1135_v11 = vsel %vm1125_vm12, %v1132_v19, %v1134_v55 }
 0x19b   : > { %v756_v34 = vmul.f32 -0.001358992, %v755_v18  ;;  %v763_v43 = vmul.f32 -0.00019511016, %v755_v18  ;;  %v1146_v41 = vmul.u32 %v1144_v45, %v1141_v54  ;;  %v2784_v46 = vand.u32 3, %v5991_v50 }
 0x19c   : > { %v1348_v44 = vshll.u32 %v6018_v23, 30  ;;  %v1108_v51 = vshrl.u32 %v7566_v39, %v7611_v62  ;;  %v6027_v5 = vmul.u32 %v1143_v9, %v1142_v0  ;;  %v1145_v29 = vmul.u32 %v1143_v9, %v1141_v54 }
 0x19d   : > { %v757_v38 = vadd.f32 0.041655596, %v756_v34  ;;  %v764_v40 = vadd.f32 0.008332121, %v763_v43  ;;  %v1149_v58 = vshll.u32 %v1146_v41, 16  ;;  %v1165_v19 = vand.u32 65535, %v1135_v11 }
 0x19e   : > { %v6029_v15 = vsub.s32 %v1345_v35, %v1348_v44  ;;  %v1129_v34 = vsel %vm1127_vm7, %v1117_v52, 2102212464  ;;  %v1166_v55 = vshrl.u32 %v1135_v11, 16  ;;  %v1148_v33 = vmul.u32 %v1144_v45, %v1142_v0 }
 0x19f   : > { %v758_v30 = vmul.f32 %v757_v38, %v755_v18  ;;  %v765_v49 = vmul.f32 %v764_v40, %v755_v18  ;;  %vm1153_vm6 = vc.u32 %v1145_v29, %v1149_v58  ;;  %vm2786_vm8 = vcmp.eq.s32.totalorder %v2784_v46, 0 }
 0x1a0   : > { %vm1350_vm9 = vcmp.lt.s32.totalorder %v6029_v15, 0  ;;  %v1351_v62 = vsub.s32 0, %v6029_v15  ;;  %v1151_v38 = vshll.u32 %v6027_v5, 16  ;;  %v1154_v9 = vsel %vm1153_vm6, 1, %v7563_v20 }
 0x1a1   : > { %v759_v43 = vadd.f32 -0.4999988, %v758_v30  ;;  %v766_v50 = vadd.f32 -0.16666654, %v765_v49  ;;  %vm2785_vm11 = vcmp.lt.s32.totalorder %v2784_v46, 2  ;;  %v1155_v40 = vadd.s32 %v1149_v58, %v1145_v29 }
 0x1a2   : > { %v1156_v52 = vadd.s32 %v1154_v9, %v1148_v33  ;;  %vm7518_vm7 = vweird.f32 %v4915_v28  ;;  %v1352_v30 = vsel %vm1350_vm9, %v1351_v62, %v6029_v15  ;;  %v1128_v45 = vsel %vm1124_vm4, %v1108_v51, %v5967_v47 }
 0x1a3   : > { %v760_v44 = vmul.f32 %v759_v43, %v755_v18  ;;  %v767_v35 = vmul.f32 %v766_v50, %v755_v18  ;;  %v1130_v11 = vsel %vm1126_vm13, %v5969_v1, %v1129_v34  ;;  %v1169_v49 = vmul.u32 %v1165_v19, %v1142_v0 }
 0x1a4   : > { %v1353_v50 = vclz %v1352_v30  ;;  %vm1157_vm3 = vc.u32 %v1155_v40, %v1151_v38  ;;  %vm2789_vm0 = vcmp.eq.s32.totalorder %v2784_v46, 2  ;;  %v1341_v33 = vadd.s32 %v5941_v2, %v5939_v3 }
 0x1a5   : > { %v6045_v10 = vadd.f32 1.0, %v760_v44  ;;  %v768_v43 = vadd.f32 1.0, %v767_v35  ;;  %v1158_v29 = vsel %vm1157_vm3, 1, %v7563_v20  ;;  %v1168_v58 = vmul.u32 %v1166_v55, %v1141_v54 }
 0x1a6   : > { %v4595_v47 = vadd.s32 4294967294, %v1353_v50  ;;  %v1160_v1 = vadd.s32 %v1158_v29, %v1156_v52  ;;  %v6056_v34 = vsel %vm1125_vm12, %v1128_v45, %v1130_v11  ;;  %v1150_v62 = vshrl.u32 %v1146_v41, 16  ;;  %v7621_v29 = vld [vmem:[#allocation17_spill] sm:$0xff] }
 0x1a7   : > { %7618 = vst [vmem:[#allocation29_spill] sm:$0xff] %v6045_v10  ;;  %v6051_v18 = vmul.f32 %v768_v43, %v5989_v63  ;;  %v7478_v51 = vxor.u32 2147483648, %v6045_v10  ;;  %v1167_v38 = vmul.u32 %v1165_v19, %v1141_v54  ;;  %v1171_v9 = vshll.u32 %v1168_v58, 16 }
 0x1a8   : > { %vm4596_vm13 = vcmp.lt.s32.totalorder %v4595_v47, 0  ;;  %v1170_v3 = vmul.u32 %v1166_v55, %v1142_v0  ;;  %v1173_v2 = vshll.u32 %v1169_v49, 16  ;;  %v1161_v19 = vadd.s32 %v1160_v1, %v1150_v62 }
 0x1a9   : > { %7619 = vst [vmem:[#allocation23_spill] sm:$0xff] %v6051_v18  ;;  %v7479_v44 = vxor.u32 2147483648, %v6051_v18  ;;  %v2791_v63 = vsel %vm2789_vm0, %v7478_v51, %v6051_v18  ;;  %v1356_v35 = vsel %vm4596_vm13, 0, %v4595_v47  ;;  %vm1175_vm4 = vc.u32 %v1167_v38, %v1171_v9  ;;  %v7623_v51 = vld [vmem:[#allocation48_spill] sm:$0xff] }
 0x1aa   : > { %v1177_v40 = vadd.s32 %v1171_v9, %v1167_v38  ;;  %v1357_v7 = vsub.s32 32, %v1356_v35  ;;  %v1361_v54 = vsub.s32 4294967266, %v1356_v35  ;;  %v1358_v0 = vshll.u32 %v6029_v15, %v1356_v35 }
 0x1ab   : > { %v2788_v41 = vsel %vm2786_vm8, %v6045_v10, %v7479_v44  ;;  %v1176_v55 = vsel %vm1175_vm4, 1, %v7563_v20  ;;  %vm1249_vm6 = vcmp.lt.s32.totalorder %v7595_v24, 0  ;;  %v1371_v46 = vsub.s32 4, %v6018_v23 }
 0x1ac   : > { %v2792_v52 = vsel %vm2785_vm11, %v2788_v41, %v2791_v63  ;;  %vm1179_vm12 = vc.u32 %v1177_v40, %v1173_v2  ;;  %v1359_v45 = vshrl.u32 %v1341_v33, %v1357_v7  ;;  %v1362_v11 = vadd.s32 127, %v1361_v54 }
 0x1ad   : > { %v6072_v30 = vsel %vm7518_vm7, nan, %v2792_v52  ;;  %v1178_v43 = vadd.s32 %v1176_v55, %v1170_v3  ;;  %v1152_v50 = vshrl.u32 %v6027_v5, 16  ;;  %v1180_v15 = vsel %vm1179_vm12, 1, %v7563_v20  ;;  %v7622_v52 = vld [vmem:[#allocation45_spill] sm:$0xff] }
 0x1ae   : > { %7620 = vst [vmem:[#allocation28_spill] sm:$0xff] %v6072_v30  ;;  %4365 = vrot.lane.b32.xlu2 %v6072_v30, %s4790_s28  ;;  %v7480_v47 = vand.u32 2147483647, %v7621_v29  ;;  %v1360_v1 = vor.u32 %v1359_v45, %v1358_v0  ;;  %v1363_v62 = vshll.u32 %v1362_v11, 23  ;;  %v1172_v38 = vshrl.u32 %v1168_v58, 16 }
 0x1af   : > { %v1182_v9 = vadd.s32 %v1180_v15, %v1178_v43  ;;  %v1162_v63 = vadd.s32 %v1161_v19, %v1152_v50  ;;  %v1174_v35 = vshrl.u32 %v1169_v49, 16  ;;  %v1181_v33 = vadd.s32 %v1177_v40, %v1173_v2 }
 0x1b0   : > { %v1409_v3 = vand.u32 8388607, %v7480_v47  ;;  %v1364_v41 = vor.u32 4788187, %v1363_v62  ;;  %v1367_v7 = vcvt.s32.f32 %v1360_v1  ;;  %v1419_v5 = vshll.u32 %v7566_v39, %v7622_v52 }
 0x1b1   : > { %v1183_v54 = vadd.s32 %v1182_v9, %v1172_v38  ;;  %v1420_v44 = vshrl.u32 %v7567_v13, %v7623_v51  ;;  %v1422_v58 = vshll.u32 %v7567_v13, %v7622_v52  ;;  %v1423_v49 = vshrl.u32 %v7569_v59, %v7623_v51 }
 0x1b2   : > { %v1410_v55 = vor.u32 8388608, %v1409_v3  ;;  %v1365_v2 = vand.u32 2147483647, %v1364_v41  ;;  %v1425_v19 = vshll.u32 %v7569_v59, %v7622_v52  ;;  %v1426_v0 = vshrl.u32 %v7552_v26, %v7623_v51 }
 0x1b3   : > { %v1184_v40 = vadd.s32 %v1183_v54, %v1174_v35  ;;  %vm1187_vm8 = vc.u32 %v1162_v63, %v1181_v33  ;;  %v6095_v45 = vor.u32 %v1420_v44, %v1419_v5  ;;  %v6097_v11 = vor.u32 %v1423_v49, %v1422_v58 }
 0x1b4   : > { %vm1434_vm9 = vcmp.lt.s32.totalorder %v7598_v12, 1  ;;  %v1368_v43 = vmul.f32 %v1367_v7, %v1365_v2  ;;  %v1427_v15 = vor.u32 %v1426_v0, %v1425_v19  ;;  %vm1436_vm11 = vcmp.lt.s32.totalorder %v7598_v12, 3 }
 0x1b5   : > { %v1188_v50 = vadd.s32 1, %v1184_v40  ;;  %v1372_v1 = vsel %vm1249_vm6, %v1371_v46, %v6018_v23  ;;  %v1185_v62 = vmul.u32 %v5978_v14, %v6056_v34  ;;  %v1442_v44 = vsel %vm1434_vm9, %v6095_v45, %v6097_v11 }
 0x1b6   : > { %v1448_v38 = vsel %vm1436_vm11, %v5721_v60, %v5866_v25  ;;  %v1369_v9 = vxor.u32 2147483648, %v1368_v43  ;;  %v1444_v3 = vsel %vm1436_vm11, %v1427_v15, %v5854_v31  ;;  %v6117_v23 = vshll.u32 %v1410_v55, 8 }
 0x1b7   : > { %v1189_v35 = vsel %vm1187_vm8, %v1188_v50, %v1184_v40  ;;  %v7624_v14 = vand.u32 2147483647, %v7595_v24  ;;  %vm1435_vm0 = vcmp.lt.s32.totalorder %v7598_v12, 2  ;;  %v1446_v46 = vsel %vm1434_vm9, %v6097_v11, %v1427_v15 }
 0x1b8   : > { %v1190_v34 = vadd.s32 %v1189_v35, %v1185_v62  ;;  %v6127_v60 = vshll.u32 %v7562_v56, %v5717_v53  ;;  %v1370_v25 = vsel %vm1249_vm6, %v1369_v9, %v1368_v43  ;;  %v1449_v41 = vsel %vm1435_vm0, %v1446_v46, %v1448_v38 }
 0x1b9   : > { %vm1248_vm3 = vcmp.le.f32.partialorder %v7624_v14, 0.7853982  ;;  %v1445_v52 = vsel %vm1435_vm0, %v1442_v44, %v1444_v3  ;;  %v1453_v5 = vand.u32 65535, %v1449_v41  ;;  %v1451_v58 = vand.u32 65535, %v6117_v23 }
 0x1ba   : > { %v6131_v31 = vsel %vm1248_vm3, 0, %v1372_v1  ;;  %v6136_v7 = vsel %vm1248_vm3, %v7595_v24, %v1370_v25  ;;  %v1191_v54 = vadd.s32 536870912, %v1190_v34  ;;  %v1452_v49 = vshrl.u32 %v6117_v23, 16 }
 0x1bb   : > { %7625 = vst [vmem:[#allocation13_spill] sm:$0xff] %v6131_v31  ;;  %v1375_v55 = vmul.f32 %v6136_v7, %v6136_v7  ;;  %v1454_v2 = vshrl.u32 %v1449_v41, 16  ;;  %v6146_v40 = vshrl.u32 %v7562_v56, %v5960_v4  ;;  %v6150_v19 = vshrl.u32 %v7550_v57, %v5960_v4 }
 0x1bc   : > { %v6153_v0 = vand.u32 3, %v6131_v31  ;;  %v6155_v43 = vshrl.u32 %v1191_v54, 30  ;;  %v6157_v44 = vmul.u32 %v1453_v5, %v1452_v49  ;;  %v6159_v38 = vadd.s32 %v1181_v33, %v1162_v63 }
 0x1bd   : > { %v1376_v50 = vmul.f32 -0.001358992, %v1375_v55  ;;  %v1383_v1 = vmul.f32 -0.00019511016, %v1375_v55  ;;  %v1456_v62 = vmul.u32 %v1454_v2, %v1451_v58  ;;  %v1418_v35 = vshrl.u32 %v7566_v39, %v7623_v51 }
 0x1be   : > { %v1193_v9 = vshll.u32 %v6155_v43, 30  ;;  %v1476_v3 = vshrl.u32 %v1445_v52, 16  ;;  %v1455_v25 = vmul.u32 %v1453_v5, %v1451_v58  ;;  %v1439_v54 = vsel %vm1437_vm15, %v1427_v15, 2102212464 }
 0x1bf   : > { %v1377_v14 = vadd.f32 0.041655596, %v1376_v50  ;;  %v1384_v46 = vadd.f32 0.008332121, %v1383_v1  ;;  %v1459_v41 = vshll.u32 %v1456_v62, 16  ;;  %v1458_v30 = vmul.u32 %v1454_v2, %v1452_v49 }
 0x1c0   : > { %v6164_v47 = vsub.s32 %v1190_v34, %v1193_v9  ;;  %v1475_v28 = vand.u32 65535, %v1445_v52  ;;  %v1461_v33 = vshll.u32 %v6157_v44, 16  ;;  %vm3405_vm4 = vcmp.eq.s32.totalorder %v6153_v0, 2 }
 0x1c1   : > { %v1378_v10 = vmul.f32 %v1377_v14, %v1375_v55  ;;  %v1385_v63 = vmul.f32 %v1384_v46, %v1375_v55  ;;  %vm1463_vm13 = vc.u32 %v1455_v25, %v1459_v41  ;;  %v1478_v34 = vmul.u32 %v1476_v3, %v1451_v58 }
 0x1c2   : > { %vm1195_vm12 = vcmp.lt.s32.totalorder %v6164_v47, 0  ;;  %v1196_v51 = vsub.s32 0, %v6164_v47  ;;  %v1464_v5 = vsel %vm1463_vm13, 1, %v7563_v20  ;;  %v1465_v9 = vadd.s32 %v1459_v41, %v1455_v25 }
 0x1c3   : > { %v1379_v50 = vadd.f32 -0.4999988, %v1378_v10  ;;  %v1386_v1 = vadd.f32 -0.16666654, %v1385_v63  ;;  %v1466_v15 = vadd.s32 %v1464_v5, %v1458_v30  ;;  %vm3402_vm15 = vcmp.eq.s32.totalorder %v6153_v0, 0 }
 0x1c4   : > { %v1197_v52 = vsel %vm1195_vm12, %v1196_v51, %v6164_v47  ;;  %v1438_v2 = vsel %vm1434_vm9, %v1418_v35, %v6095_v45  ;;  %v1440_v14 = vsel %vm1436_vm11, %v6097_v11, %v1439_v54  ;;  %v1460_v46 = vshrl.u32 %v1456_v62, 16 }
 0x1c5   : > { %v1380_v18 = vmul.f32 %v1379_v50, %v1375_v55  ;;  %v1387_v31 = vmul.f32 %v1386_v1, %v1375_v55  ;;  %vm3401_vm6 = vcmp.lt.s32.totalorder %v6153_v0, 2  ;;  %v1198_v10 = vclz %v1197_v52 }
 0x1c6   : > { %vm1467_vm8 = vc.u32 %v1465_v9, %v1461_v33  ;;  %vm1390_vm3 = vweird.f32 %v7595_v24  ;;  %v1477_v25 = vmul.u32 %v1475_v28, %v1451_v58  ;;  %v1479_v41 = vmul.u32 %v1475_v28, %v1452_v49 }
 0x1c7   : > { %v1468_v30 = vsel %vm1467_vm8, 1, %v7563_v20  ;;  %v1481_v63 = vshll.u32 %v1478_v34, 16  ;;  %v6184_v51 = vadd.f32 1.0, %v1380_v18  ;;  %v1388_v45 = vadd.f32 1.0, %v1387_v31 }
 0x1c8   : > { %v4592_v35 = vadd.s32 4294967294, %v1198_v10  ;;  %v1470_v5 = vadd.s32 %v1468_v30, %v1466_v15  ;;  %v6188_v11 = vsel %vm1435_vm0, %v1438_v2, %v1440_v14  ;;  %v1462_v55 = vshrl.u32 %v6157_v44, 16  ;;  %v7628_v10 = vld [vmem:[#allocation8_spill] sm:$0xff] }
 0x1c9   : > { %7626 = vst [vmem:[#allocation34_spill] sm:$0xff] %v6184_v51  ;;  %v1480_v62 = vmul.u32 %v1476_v3, %v1452_v49  ;;  %vm1485_vm9 = vc.u32 %v1477_v25, %v1481_v63  ;;  %v6192_v54 = vmul.f32 %v1388_v45, %v6136_v7  ;;  %v7488_v58 = vxor.u32 2147483648, %v6184_v51 }
 0x1ca   : > { %vm4593_vm11 = vcmp.lt.s32.totalorder %v4592_v35, 0  ;;  %v1471_v28 = vadd.s32 %v1470_v5, %v1460_v46  ;;  %v1483_v33 = vshll.u32 %v1479_v41, 16  ;;  %v1486_v31 = vsel %vm1485_vm9, 1, %v7563_v20 }
 0x1cb   : > { %7627 = vst [vmem:[#allocation39_spill] sm:$0xff] %v6192_v54  ;;  %v1201_v18 = vsel %vm4593_vm11, 0, %v4592_v35  ;;  %v1487_v50 = vadd.s32 %v1481_v63, %v1477_v25  ;;  %v7489_v12 = vxor.u32 2147483648, %v6192_v54  ;;  %v3407_v49 = vsel %vm3405_vm4, %v7488_v58, %v6192_v54 }
 0x1cc   : > { %v1202_v44 = vsub.s32 32, %v1201_v18  ;;  %v1482_v7 = vshrl.u32 %v1478_v34, 16  ;;  %v1203_v3 = vshll.u32 %v6164_v47, %v1201_v18  ;;  %v1206_v1 = vsub.s32 4294967266, %v1201_v18 }
 0x1cd   : > { %v1488_v9 = vadd.s32 %v1486_v31, %v1480_v62  ;;  %vm1489_vm0 = vc.u32 %v1487_v50, %v1483_v33  ;;  %v3404_v15 = vsel %vm3402_vm15, %v6184_v51, %v7489_v12  ;;  %v6209_v2 = vadd.s32 %v1471_v28, %v1462_v55 }
 0x1ce   : > { %v1204_v52 = vshrl.u32 %v6159_v38, %v1202_v44  ;;  %v1490_v14 = vsel %vm1489_vm0, 1, %v7563_v20  ;;  %v3408_v34 = vsel %vm3401_vm6, %v3404_v15, %v3407_v49  ;;  %v1207_v46 = vadd.s32 127, %v1206_v1  ;;  %v7631_v49 = vld [vmem:[#allocation49_spill] sm:$0xff] }
 0x1cf   : > { %v1492_v47 = vadd.s32 %v1490_v14, %v1488_v9  ;;  %v7490_v30 = vand.u32 2147483647, %v7628_v10  ;;  %v6216_v25 = vshrl.u32 %v5734_v22, 5  ;;  %v6219_v63 = vand.u32 31, %v5734_v22 }
 0x1d0   : > { %v6223_v38 = vsel %vm1390_vm3, nan, %v3408_v34  ;;  %v1484_v45 = vshrl.u32 %v1479_v41, 16  ;;  %v1205_v0 = vor.u32 %v1204_v52, %v1203_v3  ;;  %v1208_v35 = vshll.u32 %v1207_v46, 23  ;;  %v7633_v34 = vld [vmem:[#allocation25_spill] sm:$0xff] }
 0x1d1   : > { %7629 = vst [vmem:[#allocation42_spill] sm:$0xff] %v6223_v38  ;;  %4373 = vrot.lane.b32.xlu0 %v6223_v38, %s4790_s28  ;;  %v6227_v5 = vadd.s32 %v1487_v50, %v1483_v33  ;;  %v1493_v55 = vadd.s32 %v1492_v47, %v1482_v7  ;;  %v6231_v62 = vor.u32 %v6012_v32, %v5823_v61  ;;  %v1216_v22 = vsub.s32 4, %v6155_v43  ;;  %v7630_v33 = vld [vmem:[#allocation18_spill] sm:$0xff]  ;;  %v7632_v61 = vld [vmem:[#allocation15_spill] sm:$0xff] }
 0x1d2   : > { %v1495_v28 = vmul.u32 %v6117_v23, %v6188_v11  ;;  %v1719_v41 = vand.u32 8388607, %v7490_v30  ;;  %v1209_v18 = vor.u32 4788187, %v1208_v35  ;;  %v1730_v50 = vshrl.u32 %v7567_v13, %v7630_v33  ;;  %v7634_v35 = vld [vmem:[#allocation31_spill] sm:$0xff] }
 0x1d3   : > { %v1494_v31 = vadd.s32 %v1493_v55, %v1484_v45  ;;  %vm1497_vm13 = vc.u32 %v6209_v2, %v6227_v5  ;;  %vm1592_vm4 = vcmp.lt.s32.totalorder %v7631_v49, 4  ;;  %v1732_v32 = vshll.u32 %v7567_v13, %v7632_v61  ;;  %v7635_v55 = vld [vmem:[#allocation26_spill] sm:$0xff] }
 0x1d4   : > { %v1733_v44 = vshrl.u32 %v7569_v59, %v7630_v33  ;;  %v1735_v23 = vshll.u32 %v7569_v59, %v7632_v61  ;;  %v1736_v11 = vshrl.u32 %v7552_v26, %v7630_v33  ;;  %v1210_v7 = vand.u32 2147483647, %v1209_v18 }
 0x1d5   : > { %v1212_v3 = vcvt.s32.f32 %v1205_v0  ;;  %v1498_v1 = vadd.s32 1, %v1494_v31  ;;  %v1729_v9 = vshll.u32 %v7566_v39, %v7632_v61  ;;  %v1720_v15 = vor.u32 8388608, %v1719_v41 }
 0x1d6   : > { %v1734_v52 = vor.u32 %v1733_v44, %v1732_v32  ;;  %v1737_v14 = vor.u32 %v1736_v11, %v1735_v23  ;;  %vm1746_vm12 = vcmp.lt.s32.totalorder %v7633_v34, 3  ;;  %v1588_v18 = vor.u32 %v6016_v8, %v5827_v48 }
 0x1d7   : > { %v1213_v46 = vmul.f32 %v1212_v3, %v1210_v7  ;;  %v1499_v47 = vsel %vm1497_vm13, %v1498_v1, %v1494_v31  ;;  %v1731_v45 = vor.u32 %v1730_v50, %v1729_v9  ;;  %v1758_v0 = vsel %vm1746_vm12, %v7635_v55, %v7634_v35  ;;  %v7639_v7 = vld [vmem:[#allocation30_spill] sm:$0xff] }
 0x1d8   : > { %v7636_v41 = vand.u32 2147483647, %v7608_v36  ;;  %v1500_v32 = vadd.s32 %v1499_v47, %v1495_v28  ;;  %vm1744_vm6 = vcmp.lt.s32.totalorder %v7633_v34, 1  ;;  %vm1094_vm8 = vcmp.lt.s32.totalorder %v7608_v36, 0 }
 0x1d9   : > { %v1214_v31 = vxor.u32 2147483648, %v1213_v46  ;;  %vm1745_vm9 = vcmp.lt.s32.totalorder %v7633_v34, 2  ;;  %v1756_v50 = vsel %vm1744_vm6, %v1734_v52, %v1737_v14  ;;  %v1217_v44 = vsel %vm1094_vm8, %v1216_v22, %v6155_v43 }
 0x1da   : > { %vm6265_vm15 = vcmp.le.f32.partialorder %v7636_v41, 0.7853982  ;;  %v1501_v48 = vadd.s32 536870912, %v1500_v32  ;;  %v1759_v8 = vsel %vm1745_vm9, %v1756_v50, %v1758_v0  ;;  %v6277_v23 = vshll.u32 %v1720_v15, 8 }
 0x1db   : > { %v1215_v11 = vsel %vm1094_vm8, %v1214_v31, %v1213_v46  ;;  %v1752_v28 = vsel %vm1744_vm6, %v1731_v45, %v1734_v52  ;;  %v1754_v3 = vsel %vm1746_vm12, %v1737_v14, %v7639_v7  ;;  %v1764_v1 = vshrl.u32 %v1759_v8, 16 }
 0x1dc   : > { %v6287_v9 = vsel %vm6265_vm15, %v7608_v36, %v1215_v11  ;;  %v6289_v43 = vshrl.u32 %v1501_v48, 30  ;;  %v1761_v22 = vand.u32 65535, %v6277_v23  ;;  %v1763_v15 = vand.u32 65535, %v1759_v8 }
 0x1dd   : > { %v6295_v46 = vsel %vm1592_vm4, %v6231_v62, 920167782  ;;  %v6299_v47 = vsel %vm1592_vm4, %v1588_v18, 1326507024  ;;  %v6303_v35 = vsel %vm6265_vm15, 0, %v1217_v44  ;;  %v1220_v55 = vmul.f32 %v6287_v9, %v6287_v9 }
 0x1de   : > { %7640 = vst [vmem:[#allocation47_spill] sm:$0xff] %v6303_v35  ;;  %v1503_v0 = vshll.u32 %v6289_v43, 30  ;;  %v1728_v41 = vshrl.u32 %v7566_v39, %v7630_v33  ;;  %v1762_v31 = vshrl.u32 %v6277_v23, 16  ;;  %v1766_v50 = vmul.u32 %v1764_v1, %v1761_v22 }
 0x1df   : > { %v1221_v48 = vmul.f32 -0.001358992, %v1220_v55  ;;  %v1228_v8 = vmul.f32 -0.00019511016, %v1220_v55  ;;  %v1749_v18 = vsel %vm1747_vm14, %v1737_v14, 2102212464  ;;  %v1755_v61 = vsel %vm1745_vm9, %v1752_v28, %v1754_v3 }
 0x1e0   : > { %v6316_v44 = vand.u32 3, %v6303_v35  ;;  %v6318_v11 = vsub.s32 %v1500_v32, %v1503_v0  ;;  %v6320_v7 = vmul.u32 %v1763_v15, %v1762_v31  ;;  %v1769_v58 = vshll.u32 %v1766_v50, 16 }
 0x1e1   : > { %v1222_v33 = vadd.f32 0.041655596, %v1221_v48  ;;  %v1229_v12 = vadd.f32 0.008332121, %v1228_v8  ;;  %v1748_v30 = vsel %vm1744_vm6, %v1728_v41, %v1731_v45  ;;  %v1765_v38 = vmul.u32 %v1763_v15, %v1761_v22 }
 0x1e2   : > { %vm1505_vm11 = vcmp.lt.s32.totalorder %v6318_v11, 0  ;;  %v1506_v14 = vsub.s32 0, %v6318_v11  ;;  %v1750_v28 = vsel %vm1746_vm12, %v1734_v52, %v1749_v18  ;;  %v1786_v3 = vshrl.u32 %v1755_v61, 16 }
 0x1e3   : > { %v1223_v24 = vmul.f32 %v1222_v33, %v1220_v55  ;;  %v1230_v32 = vmul.f32 %v1229_v12, %v1220_v55  ;;  %vm1773_vm14 = vc.u32 %v1765_v38, %v1769_v58  ;;  %v1775_v0 = vadd.s32 %v1769_v58, %v1765_v38 }
 0x1e4   : > { %v1507_v35 = vsel %vm1505_vm11, %v1506_v14, %v6318_v11  ;;  %v1768_v48 = vmul.u32 %v1764_v1, %v1762_v31  ;;  %v1771_v8 = vshll.u32 %v6320_v7, 16  ;;  %v1785_v51 = vand.u32 65535, %v1755_v61 }
 0x1e5   : > { %v1224_v45 = vadd.f32 -0.4999988, %v1223_v24  ;;  %v1231_v15 = vadd.f32 -0.16666654, %v1230_v32  ;;  %vm3251_vm0 = vcmp.eq.s32.totalorder %v6316_v44, 2  ;;  %v1508_v41 = vclz %v1507_v35 }
 0x1e6   : > { %v1774_v54 = vsel %vm1773_vm14, 1, %v7563_v20  ;;  %vm3248_vm13 = vcmp.eq.s32.totalorder %v6316_v44, 0  ;;  %v1496_v12 = vadd.s32 %v6227_v5, %v6209_v2  ;;  %vm1777_vm12 = vc.u32 %v1775_v0, %v1771_v8 }
 0x1e7   : > { %v1776_v52 = vadd.s32 %v1774_v54, %v1768_v48  ;;  %v1788_v58 = vmul.u32 %v1786_v3, %v1761_v22  ;;  %v1225_v38 = vmul.f32 %v1224_v45, %v1220_v55  ;;  %v1232_v1 = vmul.f32 %v1231_v15, %v1220_v55 }
 0x1e8   : > { %vm3247_vm15 = vcmp.lt.s32.totalorder %v6316_v44, 2  ;;  %v4598_v18 = vadd.s32 4294967294, %v1508_v41  ;;  %v1778_v24 = vsel %vm1777_vm12, 1, %v7563_v20  ;;  %vm7500_vm6 = vweird.f32 %v7608_v36 }
 0x1e9   : > { %v6340_v35 = vsel %vm1745_vm9, %v1748_v30, %v1750_v28  ;;  %v1780_v61 = vadd.s32 %v1778_v24, %v1776_v52  ;;  %v1789_v33 = vmul.u32 %v1785_v51, %v1762_v31  ;;  %v1791_v14 = vshll.u32 %v1788_v58, 16 }
 0x1ea   : > { %v6342_v2 = vadd.f32 1.0, %v1225_v38  ;;  %v1233_v54 = vadd.f32 1.0, %v1232_v1  ;;  %vm4599_vm8 = vcmp.lt.s32.totalorder %v4598_v18, 0  ;;  %v1770_v5 = vshrl.u32 %v1766_v50, 16 }
 0x1eb   : > { %v1511_v55 = vsel %vm4599_vm8, 0, %v4598_v18  ;;  %v1772_v32 = vshrl.u32 %v6320_v7, 16  ;;  %v1787_v0 = vmul.u32 %v1785_v51, %v1761_v22  ;;  %v1790_v48 = vmul.u32 %v1786_v3, %v1762_v31 }
 0x1ec   : > { %v6346_v8 = vmul.f32 %v1233_v54, %v6287_v9  ;;  %v7498_v34 = vxor.u32 2147483648, %v6342_v2  ;;  %v1512_v30 = vsub.s32 32, %v1511_v55  ;;  %v1781_v28 = vadd.s32 %v1780_v61, %v1770_v5 }
 0x1ed   : > { %v1516_v45 = vsub.s32 4294967266, %v1511_v55  ;;  %v1793_v15 = vshll.u32 %v1789_v33, 16  ;;  %vm1795_vm9 = vc.u32 %v1787_v0, %v1791_v14  ;;  %v1797_v41 = vadd.s32 %v1791_v14, %v1787_v0 }
 0x1ee   : > { %v7499_v52 = vxor.u32 2147483648, %v6346_v8  ;;  %vm1404_vm11 = vcmp.lt.s32.totalorder %v7621_v29, 0  ;;  %v1513_v50 = vshll.u32 %v6318_v11, %v1511_v55  ;;  %v1514_v7 = vshrl.u32 %v1496_v12, %v1512_v30  ;;  %v7641_v12 = vld [vmem:[#allocation20_spill] sm:$0xff] }
 0x1ef   : > { %v1796_v51 = vsel %vm1795_vm9, 1, %v7563_v20  ;;  %v3253_v9 = vsel %vm3251_vm0, %v7498_v34, %v6346_v8  ;;  %v1517_v22 = vadd.s32 127, %v1516_v45  ;;  %vm1799_vm14 = vc.u32 %v1797_v41, %v1793_v15 }
 0x1f0   : > { %v1798_v31 = vadd.s32 %v1796_v51, %v1790_v48  ;;  %v3250_v3 = vsel %vm3248_vm13, %v6342_v2, %v7499_v52  ;;  %v1515_v38 = vor.u32 %v1514_v7, %v1513_v50  ;;  %v1800_v11 = vsel %vm1799_vm14, 1, %v7563_v20 }
 0x1f1   : > { %v7505_v1 = vand.u32 2147483647, %v7641_v12  ;;  %v3254_v18 = vsel %vm3247_vm15, %v3250_v3, %v3253_v9  ;;  %v1518_v24 = vshll.u32 %v1517_v22, 23  ;;  %v1792_v61 = vshrl.u32 %v1788_v58, 16 }
 0x1f2   : > { %v1802_v14 = vadd.s32 %v1800_v11, %v1798_v31  ;;  %v6369_v54 = vsel %vm7500_vm6, nan, %v3254_v18  ;;  %v1526_v5 = vsub.s32 4, %v6289_v43  ;;  %v6372_v55 = vadd.s32 %v1781_v28, %v1772_v32 }
 0x1f3   : > { %7642 = vst [vmem:[#allocation43_spill] sm:$0xff] %v6369_v54  ;;  %v1805_v0 = vmul.u32 %v6277_v23, %v6340_v35  ;;  %4371 = vrot.lane.b32.xlu2 %v6369_v54, %s4790_s28  ;;  %v1519_v48 = vor.u32 4788187, %v1518_v24  ;;  %v1794_v44 = vshrl.u32 %v1789_v33, 16  ;;  %v1564_v58 = vand.u32 8388607, %v7505_v1 }
 0x1f4   : > { %v1803_v30 = vadd.s32 %v1802_v14, %v1792_v61  ;;  %v1522_v45 = vcvt.s32.f32 %v1515_v38  ;;  %v6380_v50 = vadd.s32 %v1797_v41, %v1793_v15  ;;  %v1575_v7 = vshrl.u32 %v7567_v13, %v5737_v16 }
 0x1f5   : > { %v1577_v32 = vshll.u32 %v7567_v13, %v5445_v42  ;;  %v1520_v28 = vand.u32 2147483647, %v1519_v48  ;;  %v1565_v35 = vor.u32 8388608, %v1564_v58  ;;  %v1578_v51 = vshrl.u32 %v7569_v59, %v5737_v16 }
 0x1f6   : > { %v1804_v23 = vadd.s32 %v1803_v30, %v1794_v44  ;;  %vm1807_vm0 = vc.u32 %v6372_v55, %v6380_v50  ;;  %v1574_v33 = vshll.u32 %v7566_v39, %v5445_v42  ;;  %v1580_v15 = vshll.u32 %v7569_v59, %v5445_v42 }
 0x1f7   : > { %v1581_v41 = vshrl.u32 %v7552_v26, %v5737_v16  ;;  %vm1902_vm13 = vcmp.lt.s32.totalorder %v5565_v6, 4  ;;  %v1523_v9 = vmul.f32 %v1522_v45, %v1520_v28  ;;  %v1527_v22 = vsel %vm1404_vm11, %v1526_v5, %v6289_v43 }
 0x1f8   : > { %v1808_v31 = vadd.s32 1, %v1804_v23  ;;  %v6400_v3 = vor.u32 %v1578_v51, %v1577_v32  ;;  %v6402_v38 = vor.u32 %v1575_v7, %v1574_v33  ;;  %vm1589_vm12 = vcmp.lt.s32.totalorder %v7631_v49, 1 }
 0x1f9   : > { %v1582_v11 = vor.u32 %v1581_v41, %v1580_v15  ;;  %vm1591_vm15 = vcmp.lt.s32.totalorder %v7631_v49, 3  ;;  %v1524_v42 = vxor.u32 2147483648, %v1523_v9  ;;  %v6410_v61 = vshll.u32 %v1565_v35, 8 }
 0x1fa   : > { %v1809_v18 = vsel %vm1807_vm0, %v1808_v31, %v1804_v23  ;;  %v1603_v24 = vsel %vm1591_vm15, %v6231_v62, %v6299_v47  ;;  %v7643_v43 = vand.u32 2147483647, %v7621_v29  ;;  %vm1590_vm9 = vcmp.lt.s32.totalorder %v7631_v49, 2 }
 0x1fb   : > { %v1810_v14 = vadd.s32 %v1809_v18, %v1805_v0  ;;  %v1601_v5 = vsel %vm1589_vm12, %v6400_v3, %v1582_v11  ;;  %v6420_v48 = vor.u32 %v6146_v40, %v5973_v21  ;;  %v1525_v44 = vsel %vm1404_vm11, %v1524_v42, %v1523_v9 }
 0x1fc   : > { %vm1403_vm8 = vcmp.le.f32.partialorder %v7643_v43, 0.7853982  ;;  %v1604_v47 = vsel %vm1590_vm9, %v1601_v5, %v1603_v24  ;;  %v1597_v58 = vsel %vm1589_vm12, %v6402_v38, %v6400_v3  ;;  %v1599_v21 = vsel %vm1591_vm15, %v1582_v11, %v6295_v46 }
 0x1fd   : > { %v6424_v62 = vsel %vm1403_vm8, 0, %v1527_v22  ;;  %v6429_v0 = vsel %vm1403_vm8, %v7621_v29, %v1525_v44  ;;  %v1811_v30 = vadd.s32 536870912, %v1810_v14  ;;  %v1606_v45 = vand.u32 65535, %v6410_v61 }
 0x1fe   : > { %v1530_v40 = vmul.f32 %v6429_v0, %v6429_v0  ;;  %v1608_v7 = vand.u32 65535, %v1604_v47  ;;  %v1609_v32 = vshrl.u32 %v1604_v47, 16  ;;  %v1898_v28 = vor.u32 %v6150_v19, %v6127_v60 }
 0x1ff   : > { %v6444_v23 = vsub.s32 32, %v6219_v63  ;;  %v6446_v35 = vshrl.u32 %v1811_v30, 30  ;;  %v6449_v51 = vshrl.u32 %v6410_v61, 16  ;;  %v1600_v15 = vsel %vm1590_vm9, %v1597_v58, %v1599_v21 }
 0x200   : > { %v1531_v33 = vmul.f32 -0.001358992, %v1530_v40  ;;  %v1538_v46 = vmul.f32 -0.00019511016, %v1530_v40  ;;  %v1611_v41 = vmul.u32 %v1609_v32, %v1606_v45  ;;  %v6456_v9 = vsel %vm1902_vm13, %v6420_v48, 920167782 }
 0x201   : > { %v6459_v60 = vand.u32 3, %v6424_v62  ;;  %v1813_v19 = vshll.u32 %v6446_v35, 30  ;;  %v6463_v22 = vmul.u32 %v1608_v7, %v6449_v51  ;;  %v1610_v18 = vmul.u32 %v1608_v7, %v1606_v45 }
 0x202   : > { %v1532_v31 = vadd.f32 0.041655596, %v1531_v33  ;;  %v1539_v42 = vadd.f32 0.008332121, %v1538_v46  ;;  %v1614_v24 = vshll.u32 %v1611_v41, 16  ;;  %v1630_v44 = vand.u32 65535, %v1600_v15 }
 0x203   : > { %v6467_v43 = vsel %vm1902_vm13, %v1898_v28, 1326507024  ;;  %v6469_v5 = vsub.s32 %v1810_v14, %v1813_v19  ;;  %v1631_v47 = vshrl.u32 %v1600_v15, 16  ;;  %v1613_v21 = vmul.u32 %v1609_v32, %v6449_v51 }
 0x204   : > { %v1533_v30 = vmul.f32 %v1532_v31, %v1530_v40  ;;  %v1540_v58 = vmul.f32 %v1539_v42, %v1530_v40  ;;  %vm1618_vm11 = vc.u32 %v1610_v18, %v1614_v24  ;;  %v1616_v7 = vshll.u32 %v6463_v22, 16 }
 0x205   : > { %vm1815_vm14 = vcmp.lt.s32.totalorder %v6469_v5, 0  ;;  %v1816_v33 = vsub.s32 0, %v6469_v5  ;;  %v1619_v46 = vsel %vm1618_vm11, 1, %v7563_v20  ;;  %vm3559_vm0 = vcmp.eq.s32.totalorder %v6459_v60, 2 }
 0x206   : > { %v1534_v34 = vadd.f32 -0.4999988, %v1533_v30  ;;  %v1541_v28 = vadd.f32 -0.16666654, %v1540_v58  ;;  %v1620_v14 = vadd.s32 %v1614_v24, %v1610_v18  ;;  %v1621_v19 = vadd.s32 %v1619_v46, %v1613_v21 }
 0x207   : > { %vm3556_vm8 = vcmp.eq.s32.totalorder %v6459_v60, 0  ;;  %v1806_v32 = vadd.s32 %v6380_v50, %v6372_v55  ;;  %v1817_v15 = vsel %vm1815_vm14, %v1816_v33, %v6469_v5  ;;  %v1573_v31 = vshrl.u32 %v7566_v39, %v5737_v16 }
 0x208   : > { %v1594_v42 = vsel %vm1592_vm4, %v1582_v11, 2102212464  ;;  %v1535_v52 = vmul.f32 %v1534_v34, %v1530_v40  ;;  %v1542_v30 = vmul.f32 %v1541_v28, %v1530_v40  ;;  %vm3555_vm11 = vcmp.lt.s32.totalorder %v6459_v60, 2 }
 0x209   : > { %v1818_v58 = vclz %v1817_v15  ;;  %vm1622_vm6 = vc.u32 %v1620_v14, %v1616_v7  ;;  %vm7517_vm5 = vweird.f32 %v7621_v29  ;;  %v1593_v55 = vsel %vm1589_vm12, %v1573_v31, %v6402_v38 }
 0x20a   : > { %v1623_v50 = vsel %vm1622_vm6, 1, %v7563_v20  ;;  %v1633_v18 = vmul.u32 %v1631_v47, %v1606_v45  ;;  %v1634_v16 = vmul.u32 %v1630_v44, %v6449_v51  ;;  %v6492_v24 = vadd.f32 1.0, %v1535_v52 }
 0x20b   : > { %v1543_v11 = vadd.f32 1.0, %v1542_v30  ;;  %v4604_v34 = vadd.s32 4294967294, %v1818_v58  ;;  %v1625_v40 = vadd.s32 %v1623_v50, %v1621_v19  ;;  %v1595_v21 = vsel %vm1591_vm15, %v6400_v3, %v1594_v42 }
 0x20c   : > { %7644 = vst [vmem:[#allocation46_spill] sm:$0xff] %v6492_v24  ;;  %v1615_v33 = vshrl.u32 %v1611_v41, 16  ;;  %v1632_v7 = vmul.u32 %v1630_v44, %v1606_v45  ;;  %v1636_v46 = vshll.u32 %v1633_v18, 16  ;;  %v7502_v38 = vxor.u32 2147483648, %v6492_v24 }
 0x20d   : > { %v6498_v28 = vmul.f32 %v1543_v11, %v6429_v0  ;;  %vm4605_vm4 = vcmp.lt.s32.totalorder %v4604_v34, 0  ;;  %v1638_v14 = vshll.u32 %v1634_v16, 16  ;;  %v1617_v58 = vshrl.u32 %v6463_v22, 16 }
 0x20e   : > { %v1821_v15 = vsel %vm4605_vm4, 0, %v4604_v34  ;;  %v1626_v52 = vadd.s32 %v1625_v40, %v1615_v33  ;;  %vm1640_vm6 = vc.u32 %v1632_v7, %v1636_v46  ;;  %v1642_v31 = vadd.s32 %v1636_v46, %v1632_v7  ;;  %v7647_v46 = vld [vmem:[#allocation21_spill] sm:$0xff] }
 0x20f   : > { %7645 = vst [vmem:[#allocation45_spill] sm:$0xff] %v6498_v28  ;;  %v7503_v19 = vxor.u32 2147483648, %v6498_v28  ;;  %v1822_v30 = vsub.s32 32, %v1821_v15  ;;  %v1635_v3 = vmul.u32 %v1631_v47, %v6449_v51  ;;  %v3561_v0 = vsel %vm3559_vm0, %v7502_v38, %v6498_v28 }
 0x210   : > { %v1826_v45 = vsub.s32 4294967266, %v1821_v15  ;;  %v1641_v41 = vsel %vm1640_vm6, 1, %v7563_v20  ;;  %vm1644_vm12 = vc.u32 %v1642_v31, %v1638_v14  ;;  %v1823_v50 = vshll.u32 %v6469_v5, %v1821_v15 }
 0x211   : > { %v3558_v44 = vsel %vm3556_vm8, %v6492_v24, %v7503_v19  ;;  %v1824_v42 = vshrl.u32 %v1806_v32, %v1822_v30  ;;  %v1643_v22 = vadd.s32 %v1641_v41, %v1635_v3  ;;  %v1645_v51 = vsel %vm1644_vm12, 1, %v7563_v20 }
 0x212   : > { %v3562_v47 = vsel %vm3555_vm11, %v3558_v44, %v3561_v0  ;;  %v1827_v11 = vadd.s32 127, %v1826_v45  ;;  %v6519_v34 = vadd.s32 %v1626_v52, %v1617_v58  ;;  %v1637_v33 = vshrl.u32 %v1633_v18, 16 }
 0x213   : > { %v6523_v40 = vsel %vm7517_vm5, nan, %v3562_v47  ;;  %v1647_v7 = vadd.s32 %v1645_v51, %v1643_v22  ;;  %v7504_v38 = vand.u32 2147483647, %v7647_v46  ;;  %v1825_v32 = vor.u32 %v1824_v42, %v1823_v50 }
 0x214   : > { %7646 = vst [vmem:[#allocation48_spill] sm:$0xff] %v6523_v40  ;;  %4375 = vrot.lane.b32.xlu1 %v6523_v40, %s4790_s28  ;;  %v1828_v30 = vshll.u32 %v1827_v11, 23  ;;  %v1596_v60 = vsel %vm1590_vm9, %v1593_v55, %v1595_v21  ;;  %v6530_v5 = vadd.s32 %v1642_v31, %v1638_v14  ;;  %v1836_v15 = vsub.s32 4, %v6446_v35 }
 0x215   : > { %v1639_v52 = vshrl.u32 %v1634_v16, 16  ;;  %v1648_v58 = vadd.s32 %v1647_v7, %v1637_v33  ;;  %v1874_v18 = vand.u32 8388607, %v7504_v38  ;;  %v1884_v0 = vshll.u32 %v7566_v39, %v5717_v53 }
 0x216   : > { %v1829_v3 = vor.u32 4788187, %v1828_v30  ;;  %vm1652_vm15 = vc.u32 %v6519_v34, %v6530_v5  ;;  %v1885_v49 = vshrl.u32 %v7567_v13, %v5960_v4  ;;  %v1887_v14 = vshll.u32 %v7567_v13, %v5717_v53 }
 0x217   : > { %v1649_v55 = vadd.s32 %v1648_v58, %v1639_v52  ;;  %v1875_v21 = vor.u32 8388608, %v1874_v18  ;;  %v1888_v16 = vshrl.u32 %v7569_v59, %v5960_v4  ;;  %v1832_v45 = vcvt.s32.f32 %v1825_v32 }
 0x218   : > { %v1830_v31 = vand.u32 2147483647, %v1829_v3  ;;  %v1890_v41 = vshll.u32 %v7569_v59, %v5717_v53  ;;  %v1891_v44 = vshrl.u32 %v7552_v26, %v5960_v4  ;;  %v7648_v42 = vand.u32 2147483647, %v7628_v10 }
 0x219   : > { %v1653_v51 = vadd.s32 1, %v1649_v55  ;;  %v6555_v47 = vor.u32 %v1885_v49, %v1884_v0  ;;  %v6557_v50 = vor.u32 %v1888_v16, %v1887_v14  ;;  %v1650_v33 = vmul.u32 %v6410_v61, %v1596_v60 }
 0x21a   : > { %vm6551_vm9 = vcmp.le.f32.partialorder %v7648_v42, 0.7853982  ;;  %v1833_v11 = vmul.f32 %v1832_v45, %v1830_v31  ;;  %v1892_v7 = vor.u32 %v1891_v44, %v1890_v41  ;;  %vm1901_vm14 = vcmp.lt.s32.totalorder %v5565_v6, 3 }
 0x21b   : > { %vm1714_vm0 = vcmp.lt.s32.totalorder %v7628_v10, 0  ;;  %v1654_v53 = vsel %vm1652_vm15, %v1653_v51, %v1649_v55  ;;  %v1913_v32 = vsel %vm1901_vm14, %v6420_v48, %v6467_v43  ;;  %v6569_v30 = vshll.u32 %v1875_v21, 8 }
 0x21c   : > { %v1834_v52 = vxor.u32 2147483648, %v1833_v11  ;;  %v1837_v58 = vsel %vm1714_vm0, %v1836_v15, %v6446_v35  ;;  %v1655_v61 = vadd.s32 %v1654_v53, %v1650_v33  ;;  %vm1899_vm8 = vcmp.lt.s32.totalorder %v5565_v6, 1 }
 0x21d   : > { %vm1900_vm11 = vcmp.lt.s32.totalorder %v5565_v6, 2  ;;  %v1907_v60 = vsel %vm1899_vm8, %v6555_v47, %v6557_v50  ;;  %v1909_v18 = vsel %vm1901_vm14, %v1892_v7, %v6456_v9  ;;  %v1911_v48 = vsel %vm1899_vm8, %v6557_v50, %v1892_v7 }
 0x21e   : > { %v1835_v43 = vsel %vm1714_vm0, %v1834_v52, %v1833_v11  ;;  %v1656_v35 = vadd.s32 536870912, %v1655_v61  ;;  %v1914_v15 = vsel %vm1900_vm11, %v1911_v48, %v1913_v32  ;;  %v1916_v3 = vand.u32 65535, %v6569_v30 }
 0x21f   : > { %v6590_v0 = vsel %vm6551_vm9, %v7628_v10, %v1835_v43  ;;  %v1917_v49 = vshrl.u32 %v6569_v30, 16  ;;  %v1918_v55 = vand.u32 65535, %v1914_v15  ;;  %v1919_v9 = vshrl.u32 %v1914_v15, 16 }
 0x220   : > { %v2048_v21 = vshll.u32 %v7552_v26, %v6219_v63  ;;  %v1840_v14 = vmul.f32 %v6590_v0, %v6590_v0  ;;  %v6597_v16 = vshrl.u32 %v1656_v35, 30  ;;  %v1910_v31 = vsel %vm1900_vm11, %v1907_v60, %v1909_v18 }
 0x221   : > { %v6603_v45 = vshll.u32 %v7562_v56, %v6219_v63  ;;  %v6607_v41 = vsel %vm6551_vm9, 0, %v1837_v58  ;;  %v6609_v44 = vmul.u32 %v1919_v9, %v1916_v3  ;;  %v6611_v42 = vmul.u32 %v1918_v55, %v1917_v49 }
 0x222   : > { %v2049_v51 = vshrl.u32 %v7562_v56, %v6444_v23  ;;  %v1841_v11 = vmul.f32 -0.001358992, %v1840_v14  ;;  %v1848_v33 = vmul.f32 -0.00019511016, %v1840_v14  ;;  %v1658_v53 = vshll.u32 %v6597_v16, 30 }
 0x223   : > { %v6618_v32 = vshrl.u32 %v7550_v57, %v6444_v23  ;;  %v1920_v52 = vmul.u32 %v1918_v55, %v1916_v3  ;;  %v1924_v22 = vshll.u32 %v6609_v44, 16  ;;  %v1941_v58 = vshrl.u32 %v1910_v31, 16 }
 0x224   : > { %v1842_v60 = vadd.f32 0.041655596, %v1841_v11  ;;  %v1849_v18 = vadd.f32 0.008332121, %v1848_v33  ;;  %v6622_v48 = vand.u32 3, %v6607_v41  ;;  %v6624_v43 = vsub.s32 %v1655_v61, %v1658_v53 }
 0x225   : > { %v1926_v56 = vshll.u32 %v6611_v42, 16  ;;  %vm1928_vm4 = vc.u32 %v1920_v52, %v1924_v22  ;;  %v1930_v35 = vadd.s32 %v1924_v22, %v1920_v52  ;;  %v1940_v15 = vand.u32 65535, %v1910_v31 }
 0x226   : > { %v1843_v19 = vmul.f32 %v1842_v60, %v1840_v14  ;;  %v1850_v38 = vmul.f32 %v1849_v18, %v1840_v14  ;;  %vm1660_vm6 = vcmp.lt.s32.totalorder %v6624_v43, 0  ;;  %v1661_v57 = vsub.s32 0, %v6624_v43 }
 0x227   : > { %v1923_v55 = vmul.u32 %v1919_v9, %v1917_v49  ;;  %v1929_v11 = vsel %vm1928_vm4, 1, %v7563_v20  ;;  %vm6630_vm12 = vc.u32 %v1930_v35, %v1926_v56  ;;  %v6634_v61 = vmul.u32 %v1941_v58, %v1916_v3 }
 0x228   : > { %v6636_v53 = vor.u32 %v2049_v51, %v2048_v21  ;;  %v1844_v1 = vadd.f32 -0.4999988, %v1843_v19  ;;  %v1851_v52 = vadd.f32 -0.16666654, %v1850_v38  ;;  %v1662_v31 = vsel %vm1660_vm6, %v1661_v57, %v6624_v43 }
 0x229   : > { %vm3864_vm15 = vcmp.eq.s32.totalorder %v6622_v48, 0  ;;  %vm3867_vm9 = vcmp.eq.s32.totalorder %v6622_v48, 2  ;;  %v1663_v22 = vclz %v1662_v31  ;;  %v1883_v9 = vshrl.u32 %v7566_v39, %v5960_v4 }
 0x22a   : > { %v1904_v60 = vsel %vm1902_vm13, %v1892_v7, 2102212464  ;;  %v1931_v18 = vadd.s32 %v1929_v11, %v1923_v55  ;;  %v1845_v56 = vmul.f32 %v1844_v1, %v1840_v14  ;;  %v1852_v35 = vmul.f32 %v1851_v52, %v1840_v14 }
 0x22b   : > { %vm3863_vm0 = vcmp.lt.s32.totalorder %v6622_v48, 2  ;;  %v1651_v38 = vadd.s32 %v6530_v5, %v6519_v34  ;;  %v1933_v19 = vsel %vm6630_vm12, 1, %v7563_v20  ;;  %vm1855_vm4 = vweird.f32 %v7628_v10 }
 0x22c   : > { %v4601_v21 = vadd.s32 4294967294, %v1663_v22  ;;  %v1903_v4 = vsel %vm1899_vm8, %v1883_v9, %v6555_v47  ;;  %v1942_v7 = vmul.u32 %v1940_v15, %v1916_v3  ;;  %v1946_v1 = vshll.u32 %v6634_v61, 16 }
 0x22d   : > { %v6656_v14 = vadd.f32 1.0, %v1845_v56  ;;  %v1853_v51 = vadd.f32 1.0, %v1852_v35  ;;  %v1905_v34 = vsel %vm1901_vm14, %v6557_v50, %v1904_v60  ;;  %v1944_v5 = vmul.u32 %v1940_v15, %v1917_v49 }
 0x22e   : > { %vm4602_vm13 = vcmp.lt.s32.totalorder %v4601_v21, 0  ;;  %v1935_v57 = vadd.s32 %v1933_v19, %v1931_v18  ;;  %v1945_v55 = vmul.u32 %v1941_v58, %v1917_v49  ;;  %vm1950_vm6 = vc.u32 %v1942_v7, %v1946_v1 }
 0x22f   : > { %v6662_v11 = vmul.f32 %v1853_v51, %v6590_v0  ;;  %v7506_v47 = vxor.u32 2147483648, %v6656_v14  ;;  %v1666_v3 = vsel %vm4602_vm13, 0, %v4601_v21  ;;  %v1951_v33 = vsel %vm1950_vm6, 1, %v7563_v20 }
 0x230   : > { %v1667_v52 = vsub.s32 32, %v1666_v3  ;;  %v1671_v31 = vsub.s32 4294967266, %v1666_v3  ;;  %v1925_v22 = vshrl.u32 %v6609_v44, 16  ;;  %v1927_v9 = vshrl.u32 %v6611_v42, 16  ;;  %v7653_v42 = vld [vmem:[#allocation10_spill] sm:$0xff] }
 0x231   : > { %v7507_v50 = vxor.u32 2147483648, %v6662_v11  ;;  %v1948_v15 = vshll.u32 %v1944_v5, 16  ;;  %v1952_v60 = vadd.s32 %v1946_v1, %v1942_v7  ;;  %v1953_v49 = vadd.s32 %v1951_v33, %v1945_v55 }
 0x232   : > { %v1668_v58 = vshll.u32 %v6624_v43, %v1666_v3  ;;  %v1669_v0 = vshrl.u32 %v1651_v38, %v1667_v52  ;;  %v1672_v18 = vadd.s32 127, %v1671_v31  ;;  %v1936_v56 = vadd.s32 %v1935_v57, %v1925_v22 }
 0x233   : > { %v3866_v35 = vsel %vm3864_vm15, %v6656_v14, %v7507_v50  ;;  %v3869_v44 = vsel %vm3867_vm9, %v7506_v47, %v6662_v11  ;;  %vm1954_vm14 = vc.u32 %v1952_v60, %v1948_v15  ;;  %v7508_v19 = vand.u32 2147483647, %v7653_v42 }
 0x234   : > { %v3870_v43 = vsel %vm3863_vm0, %v3866_v35, %v3869_v44  ;;  %vm1559_vm8 = vcmp.lt.s32.totalorder %v7641_v12, 0  ;;  %v1670_v38 = vor.u32 %v1669_v0, %v1668_v58  ;;  %v1673_v21 = vshll.u32 %v1672_v18, 23  ;;  %v7655_v0 = vld [vmem:[#allocation24_spill] sm:$0xff] }
 0x235   : > { %v1955_v7 = vsel %vm1954_vm14, 1, %v7563_v20  ;;  %v6687_v1 = vsel %vm1855_vm4, nan, %v3870_v43  ;;  %v1906_v51 = vsel %vm1900_vm11, %v1903_v4, %v1905_v34  ;;  %v1947_v57 = vshrl.u32 %v6634_v61, 16  ;;  %v7656_v61 = vld [vmem:[#allocation27_spill] sm:$0xff] }
 0x236   : > { %7654 = vst [vmem:[#allocation8_spill] sm:$0xff] %v6687_v1  ;;  %v1957_v55 = vadd.s32 %v1955_v7, %v1953_v49  ;;  %4379 = vrot.lane.b32.xlu0 %v6687_v1, %s4790_s28  ;;  %v1674_v48 = vor.u32 4788187, %v1673_v21  ;;  %v6694_v3 = vadd.s32 %v1936_v56, %v1927_v9  ;;  %v1949_v33 = vshrl.u32 %v1944_v5, 16  ;;  %v7657_v7 = vld [vmem:[#allocation32_spill] sm:$0xff] }
 0x237   : > { %v6696_v52 = vadd.s32 %v1952_v60, %v1948_v15  ;;  %v1677_v31 = vcvt.s32.f32 %v1670_v38  ;;  %v2184_v58 = vand.u32 8388607, %v7508_v19  ;;  %v2194_v6 = vshll.u32 %v7566_v39, %v7655_v0 }
 0x238   : > { %v1958_v22 = vadd.s32 %v1957_v55, %v1947_v57  ;;  %v1675_v4 = vand.u32 2147483647, %v1674_v48  ;;  %v2195_v34 = vshrl.u32 %v7567_v13, %v7656_v61  ;;  %v2197_v49 = vshll.u32 %v7567_v13, %v7655_v0  ;;  %v7658_v48 = vld [vmem:[#allocation38_spill] sm:$0xff] }
 0x239   : > { %v2198_v5 = vshrl.u32 %v7569_v59, %v7656_v61  ;;  %v1681_v9 = vsub.s32 4, %v6597_v16  ;;  %v2200_v60 = vshll.u32 %v7569_v59, %v7655_v0  ;;  %v2201_v18 = vshrl.u32 %v7552_v26, %v7656_v61 }
 0x23a   : > { %v1959_v15 = vadd.s32 %v1958_v22, %v1949_v33  ;;  %v1678_v56 = vmul.f32 %v1677_v31, %v1675_v4  ;;  %vm1962_vm11 = vc.u32 %v6694_v3, %v6696_v52  ;;  %v6715_v35 = vor.u32 %v2195_v34, %v2194_v6  ;;  %v7659_v33 = vld [vmem:[#allocation33_spill] sm:$0xff] }
 0x23b   : > { %v6717_v44 = vor.u32 %v2198_v5, %v2197_v49  ;;  %v2185_v38 = vor.u32 8388608, %v2184_v58  ;;  %v6719_v21 = vor.u32 %v2201_v18, %v2200_v60  ;;  %vm2211_vm12 = vcmp.lt.s32.totalorder %v7657_v7, 3  ;;  %v7663_v49 = vld [vmem:[#allocation37_spill] sm:$0xff] }
 0x23c   : > { %v1963_v43 = vadd.s32 1, %v1959_v15  ;;  %v1679_v57 = vxor.u32 2147483648, %v1678_v56  ;;  %v1960_v55 = vmul.u32 %v6569_v30, %v1906_v51  ;;  %vm2209_vm15 = vcmp.lt.s32.totalorder %v7657_v7, 1 }
 0x23d   : > { %v2223_v31 = vsel %vm2211_vm12, %v7659_v33, %v7658_v48  ;;  %v7660_v22 = vand.u32 2147483647, %v7641_v12  ;;  %v1682_v58 = vsel %vm1559_vm8, %v1681_v9, %v6597_v16  ;;  %v2221_v30 = vsel %vm2209_vm15, %v6717_v44, %v6719_v21 }
 0x23e   : > { %v1964_v6 = vsel %vm1962_vm11, %v1963_v43, %v1959_v15  ;;  %v1680_v51 = vsel %vm1559_vm8, %v1679_v57, %v1678_v56  ;;  %vm2210_vm0 = vcmp.lt.s32.totalorder %v7657_v7, 2  ;;  %v2217_v34 = vsel %vm2209_vm15, %v6715_v35, %v6717_v44 }
 0x23f   : > { %vm6730_vm9 = vcmp.le.f32.partialorder %v7660_v22, 0.7853982  ;;  %v1965_v4 = vadd.s32 %v1964_v6, %v1960_v55  ;;  %v2219_v5 = vsel %vm2211_vm12, %v6719_v21, %v7663_v49  ;;  %v2224_v9 = vsel %vm2210_vm0, %v2221_v30, %v2223_v31 }
 0x240   : > { %v1683_v16 = vsel %vm6730_vm9, %v7641_v12, %v1680_v51  ;;  %v6757_v15 = vshll.u32 %v2185_v38, 8  ;;  %v2228_v56 = vand.u32 65535, %v2224_v9  ;;  %v2229_v43 = vshrl.u32 %v2224_v9, 16 }
 0x241   : > { %v1685_v60 = vmul.f32 %v1683_v16, %v1683_v16  ;;  %v1966_v18 = vadd.s32 536870912, %v1965_v4  ;;  %vm2057_vm13 = vcmp.lt.s32.totalorder %v6216_v25, 4  ;;  %v6762_v57 = vsel %vm6730_vm9, 0, %v1682_v58 }
 0x242   : > { %v2226_v55 = vand.u32 65535, %v6757_v15  ;;  %v2227_v48 = vshrl.u32 %v6757_v15, 16  ;;  %v2220_v38 = vsel %vm2210_vm0, %v2217_v34, %v2219_v5  ;;  %v6773_v31 = vsel %vm2057_vm13, %v6636_v53, 920167782 }
 0x243   : > { %v1686_v33 = vmul.f32 -0.001358992, %v1685_v60  ;;  %v1693_v22 = vmul.f32 -0.00019511016, %v1685_v60  ;;  %v6766_v6 = vshrl.u32 %v1966_v18, 30  ;;  %v2053_v58 = vor.u32 %v6618_v32, %v6603_v45 }
 0x244   : > { %v2231_v30 = vmul.u32 %v2229_v43, %v2226_v55  ;;  %v6775_v0 = vmul.u32 %v2228_v56, %v2227_v48  ;;  %v3708_v18 = vand.u32 3, %v6762_v57  ;;  %v2230_v47 = vmul.u32 %v2228_v56, %v2226_v55 }
 0x245   : > { %v1687_v51 = vadd.f32 0.041655596, %v1686_v33  ;;  %v1694_v49 = vadd.f32 0.008332121, %v1693_v22  ;;  %v1968_v9 = vshll.u32 %v6766_v6, 30  ;;  %v2251_v34 = vshrl.u32 %v2220_v38, 16 }
 0x246   : > { %v2234_v50 = vshll.u32 %v2231_v30, 16  ;;  %v2250_v1 = vand.u32 65535, %v2220_v38  ;;  %v2233_v54 = vmul.u32 %v2229_v43, %v2227_v48  ;;  %v2236_v29 = vshll.u32 %v6775_v0, 16 }
 0x247   : > { %v1688_v5 = vmul.f32 %v1687_v51, %v1685_v60  ;;  %v1695_v19 = vmul.f32 %v1694_v49, %v1685_v60  ;;  %v1969_v40 = vsub.s32 %v1965_v4, %v1968_v9  ;;  %v6784_v33 = vsel %vm2057_vm13, %v2053_v58, 1326507024 }
 0x248   : > { %vm2238_vm6 = vc.u32 %v2230_v47, %v2234_v50  ;;  %v2240_v24 = vadd.s32 %v2234_v50, %v2230_v47  ;;  %v2253_v22 = vmul.u32 %v2251_v34, %v2226_v55  ;;  %vm3709_vm11 = vcmp.lt.s32.totalorder %v3708_v18, 2 }
 0x249   : > { %v1689_v28 = vadd.f32 -0.4999988, %v1688_v5  ;;  %v1696_v45 = vadd.f32 -0.16666654, %v1695_v19  ;;  %vm1970_vm14 = vcmp.lt.s32.totalorder %v1969_v40, 0  ;;  %v1971_v32 = vsub.s32 0, %v1969_v40 }
 0x24a   : > { %v2239_v56 = vsel %vm2238_vm6, 1, %v7563_v20  ;;  %vm2242_vm8 = vc.u32 %v2240_v24, %v2236_v29  ;;  %vm1700_vm9 = vweird.f32 %v7641_v12  ;;  %vm3710_vm5 = vcmp.eq.s32.totalorder %v3708_v18, 0 }
 0x24b   : > { %v1690_v51 = vmul.f32 %v1689_v28, %v1685_v60  ;;  %v1697_v4 = vmul.f32 %v1696_v45, %v1685_v60  ;;  %v1972_v43 = vsel %vm1970_vm14, %v1971_v32, %v1969_v40  ;;  %v2241_v38 = vadd.s32 %v2239_v56, %v2233_v54 }
 0x24c   : > { %vm3713_vm7 = vcmp.eq.s32.totalorder %v3708_v18, 2  ;;  %v1961_v47 = vadd.s32 %v6696_v52, %v6694_v3  ;;  %v1973_v50 = vclz %v1972_v43  ;;  %v2243_v49 = vsel %vm2242_vm8, 1, %v7563_v20 }
 0x24d   : > { %v6790_v19 = vadd.f32 1.0, %v1690_v51  ;;  %v1698_v58 = vadd.f32 1.0, %v1697_v4  ;;  %v2254_v29 = vmul.u32 %v2250_v1, %v2227_v48  ;;  %v2245_v28 = vadd.s32 %v2243_v49, %v2241_v38  ;;  %v7664_v49 = vld [vmem:[#allocation22_spill] sm:$0xff] }
 0x24e   : > { %v4607_v24 = vadd.s32 4294967294, %v1973_v50  ;;  %v2252_v60 = vmul.u32 %v2250_v1, %v2226_v55  ;;  %v2256_v9 = vshll.u32 %v2253_v22, 16  ;;  %v2193_v45 = vshrl.u32 %v7566_v39, %v7656_v61 }
 0x24f   : > { %v6793_v5 = vmul.f32 %v1698_v58, %v1683_v16  ;;  %v7519_v54 = vxor.u32 2147483648, %v6790_v19  ;;  %v2214_v3 = vsel %vm2212_vm1, %v6719_v21, 2102212464  ;;  %v2235_v52 = vshrl.u32 %v2231_v30, 16 }
 0x250   : > { %vm4608_vm6 = vcmp.lt.s32.totalorder %v4607_v24, 0  ;;  %v2255_v32 = vmul.u32 %v2251_v34, %v2227_v48  ;;  %vm2260_vm14 = vc.u32 %v2252_v60, %v2256_v9  ;;  %v2258_v1 = vshll.u32 %v2254_v29, 16 }
 0x251   : > { %v1705_v56 = vxor.u32 2147483648, %v6793_v5  ;;  %v1976_v51 = vsel %vm4608_vm6, 0, %v4607_v24  ;;  %v2261_v16 = vsel %vm2260_vm14, 1, %v7563_v20  ;;  %v3715_v55 = vsel %vm3713_vm7, %v7519_v54, %v6793_v5 }
 0x252   : > { %v1977_v61 = vsub.s32 32, %v1976_v51  ;;  %v1981_v4 = vsub.s32 4294967266, %v1976_v51  ;;  %v2246_v43 = vadd.s32 %v2245_v28, %v2235_v52  ;;  %v1978_v48 = vshll.u32 %v1969_v40, %v1976_v51 }
 0x253   : > { %v3712_v21 = vsel %vm3710_vm5, %v6790_v19, %v1705_v56  ;;  %v2262_v30 = vadd.s32 %v2256_v9, %v2252_v60  ;;  %v2263_v34 = vadd.s32 %v2261_v16, %v2255_v32  ;;  %v2022_v24 = vand.u32 2147483647, %v7664_v49 }
 0x254   : > { %v3716_v38 = vsel %vm3709_vm11, %v3712_v21, %v3715_v55  ;;  %v1979_v50 = vshrl.u32 %v1961_v47, %v1977_v61  ;;  %v1982_v58 = vadd.s32 127, %v1981_v4  ;;  %v2213_v28 = vsel %vm2209_vm15, %v2193_v45, %v6715_v35 }
 0x255   : > { %v6815_v54 = vsel %vm1700_vm9, nan, %v3716_v38  ;;  %v2215_v40 = vsel %vm2211_vm12, %v6717_v44, %v2214_v3  ;;  %vm2264_vm1 = vc.u32 %v2262_v30, %v2258_v1  ;;  %v2237_v60 = vshrl.u32 %v6775_v0, 16 }
 0x256   : > { %4377 = vrot.lane.b32.xlu2 %v6815_v54, %s4790_s28  ;;  %v1980_v18 = vor.u32 %v1979_v50, %v1978_v48  ;;  %v1983_v47 = vshll.u32 %v1982_v58, 23  ;;  %v2265_v9 = vsel %vm2264_vm1, 1, %v7563_v20  ;;  %v1991_v52 = vsub.s32 4, %v6766_v6 }
 0x257   : > { %v2257_v32 = vshrl.u32 %v2253_v22, 16  ;;  %v2267_v51 = vadd.s32 %v2265_v9, %v2263_v34  ;;  %v2029_v35 = vand.u32 8388607, %v2022_v24  ;;  %v6830_v16 = vadd.s32 %v2246_v43, %v2237_v60 }
 0x258   : > { %v1984_v45 = vor.u32 4788187, %v1983_v47  ;;  %v2259_v44 = vshrl.u32 %v2254_v29, 16  ;;  %v6832_v3 = vadd.s32 %v2262_v30, %v2258_v1  ;;  %v1987_v55 = vcvt.s32.f32 %v1980_v18 }
 0x259   : > { %v2268_v61 = vadd.s32 %v2267_v51, %v2257_v32  ;;  %v2040_v0 = vshrl.u32 %v7567_v13, %v6444_v23  ;;  %v2042_v4 = vshll.u32 %v7567_v13, %v6219_v63  ;;  %v2043_v22 = vshrl.u32 %v7569_v59, %v6444_v23 }
 0x25a   : > { %v1985_v21 = vand.u32 2147483647, %v1984_v45  ;;  %v2045_v48 = vshll.u32 %v7569_v59, %v6219_v63  ;;  %v2046_v29 = vshrl.u32 %v7552_v26, %v6444_v23  ;;  %v2216_v1 = vsel %vm2210_vm0, %v2213_v28, %v2215_v40 }
 0x25b   : > { %v2269_v43 = vadd.s32 %v2268_v61, %v2259_v44  ;;  %v2030_v30 = vor.u32 8388608, %v2029_v35  ;;  %v2039_v34 = vshll.u32 %v7566_v39, %v6219_v63  ;;  %vm2272_vm5 = vc.u32 %v6830_v16, %v6832_v3 }
 0x25c   : > { %v1988_v38 = vmul.f32 %v1987_v55, %v1985_v21  ;;  %v6850_v13 = vor.u32 %v2043_v22, %v2042_v4  ;;  %v6852_v50 = vor.u32 %v2046_v29, %v2045_v48  ;;  %v7665_v59 = vand.u32 2147483647, %v7647_v46 }
 0x25d   : > { %vm1869_vm12 = vcmp.lt.s32.totalorder %v7647_v46, 0  ;;  %v2273_v7 = vadd.s32 1, %v2269_v43  ;;  %v6861_v58 = vor.u32 %v2040_v0, %v2039_v34  ;;  %v2270_v40 = vmul.u32 %v6757_v15, %v2216_v1 }
 0x25e   : > { %vm6856_vm7 = vcmp.le.f32.partialorder %v7665_v59, 0.7853982  ;;  %v1989_v63 = vxor.u32 2147483648, %v1988_v38  ;;  %v1992_v28 = vsel %vm1869_vm12, %v1991_v52, %v6766_v6  ;;  %vm2054_vm15 = vcmp.lt.s32.totalorder %v6216_v25, 1 }
 0x25f   : > { %v2274_v18 = vsel %vm2272_vm5, %v2273_v7, %v2269_v43  ;;  %vm2056_vm0 = vcmp.lt.s32.totalorder %v6216_v25, 3  ;;  %v2066_v47 = vsel %vm2054_vm15, %v6850_v13, %v6852_v50  ;;  %v6871_v60 = vshll.u32 %v2030_v30, 8 }
 0x260   : > { %v1990_v9 = vsel %vm1869_vm12, %v1989_v63, %v1988_v38  ;;  %v2275_v32 = vadd.s32 %v2274_v18, %v2270_v40  ;;  %vm2055_vm8 = vcmp.lt.s32.totalorder %v6216_v25, 2  ;;  %v2068_v15 = vsel %vm2056_vm0, %v6636_v53, %v6784_v33 }
 0x261   : > { %v1993_v6 = vsel %vm6856_vm7, %v7647_v46, %v1990_v9  ;;  %v2062_v52 = vsel %vm2054_vm15, %v6861_v58, %v6850_v13  ;;  %v2064_v51 = vsel %vm2056_vm0, %v6852_v50, %v6773_v31  ;;  %v2069_v35 = vsel %vm2055_vm8, %v2066_v47, %v2068_v15 }
 0x262   : > { %v1995_v45 = vmul.f32 %v1993_v6, %v1993_v6  ;;  %v2276_v44 = vadd.s32 536870912, %v2275_v32  ;;  %v2073_v53 = vand.u32 65535, %v2069_v35  ;;  %v2074_v33 = vshrl.u32 %v2069_v35, 16 }
 0x263   : > { %v6893_v55 = vsel %vm6856_vm7, 0, %v1992_v28  ;;  %v2071_v61 = vand.u32 65535, %v6871_v60  ;;  %v2072_v0 = vshrl.u32 %v6871_v60, 16  ;;  %v2065_v31 = vsel %vm2055_vm8, %v2062_v52, %v2064_v51 }
 0x264   : > { %v1996_v4 = vmul.f32 -0.001358992, %v1995_v45  ;;  %v2003_v21 = vmul.f32 -0.00019511016, %v1995_v45  ;;  %v6897_v22 = vshrl.u32 %v2276_v44, 30  ;;  %v4016_v34 = vand.u32 3, %v6893_v55 }
 0x265   : > { %v2076_v48 = vmul.u32 %v2074_v33, %v2071_v61  ;;  %v6901_v29 = vmul.u32 %v2073_v53, %v2072_v0  ;;  %v2075_v38 = vmul.u32 %v2073_v53, %v2071_v61  ;;  %v2096_v26 = vshrl.u32 %v2065_v31, 16 }
 0x266   : > { %v1997_v1 = vadd.f32 0.041655596, %v1996_v4  ;;  %v2004_v43 = vadd.f32 0.008332121, %v2003_v21  ;;  %v2278_v30 = vshll.u32 %v6897_v22, 30  ;;  %v2095_v40 = vand.u32 65535, %v2065_v31 }
 0x267   : > { %v2079_v59 = vshll.u32 %v2076_v48, 16  ;;  %v2078_v18 = vmul.u32 %v2074_v33, %v2072_v0  ;;  %v2081_v47 = vshll.u32 %v6901_v29, 16  ;;  %vm4018_vm14 = vcmp.eq.s32.totalorder %v4016_v34, 0 }
 0x268   : > { %v1998_v7 = vmul.f32 %v1997_v1, %v1995_v45  ;;  %v2005_v63 = vmul.f32 %v2004_v43, %v1995_v45  ;;  %v6905_v28 = vsub.s32 %v2275_v32, %v2278_v30  ;;  %vm4021_vm1 = vcmp.eq.s32.totalorder %v4016_v34, 2 }
 0x269   : > { %vm2083_vm11 = vc.u32 %v2075_v38, %v2079_v59  ;;  %v2085_v9 = vadd.s32 %v2079_v59, %v2075_v38  ;;  %v2098_v44 = vmul.u32 %v2096_v26, %v2071_v61  ;;  %vm4017_vm7 = vcmp.lt.s32.totalorder %v4016_v34, 2 }
 0x26a   : > { %v1999_v15 = vadd.f32 -0.4999988, %v1998_v7  ;;  %v2006_v52 = vadd.f32 -0.16666654, %v2005_v63  ;;  %vm2280_vm6 = vcmp.lt.s32.totalorder %v6905_v28, 0  ;;  %v2281_v51 = vsub.s32 0, %v6905_v28 }
 0x26b   : > { %v2084_v35 = vsel %vm2083_vm11, 1, %v7563_v20  ;;  %vm2087_vm5 = vc.u32 %v2085_v9, %v2081_v47  ;;  %vm2010_vm12 = vweird.f32 %v7647_v46  ;;  %v2271_v21 = vadd.s32 %v6832_v3, %v6830_v16 }
 0x26c   : > { %v2000_v32 = vmul.f32 %v1999_v15, %v1995_v45  ;;  %v2007_v53 = vmul.f32 %v2006_v52, %v1995_v45  ;;  %v2282_v33 = vsel %vm2280_vm6, %v2281_v51, %v6905_v28  ;;  %v2086_v4 = vadd.s32 %v2084_v35, %v2078_v18 }
 0x26d   : > { %v2283_v31 = vclz %v2282_v33  ;;  %v2038_v1 = vshrl.u32 %v7566_v39, %v6444_v23  ;;  %v2059_v43 = vsel %vm2057_vm13, %v6852_v50, 2102212464  ;;  %v2088_v38 = vsel %vm2087_vm5, 1, %v7563_v20 }
 0x26e   : > { %v6920_v30 = vadd.f32 1.0, %v2000_v32  ;;  %v2008_v45 = vadd.f32 1.0, %v2007_v53  ;;  %v2099_v59 = vmul.u32 %v2095_v40, %v2072_v0  ;;  %v2090_v63 = vadd.s32 %v2088_v38, %v2086_v4 }
 0x26f   : > { %v4613_v7 = vadd.s32 4294967294, %v2283_v31  ;;  %v2097_v18 = vmul.u32 %v2095_v40, %v2071_v61  ;;  %v2101_v47 = vshll.u32 %v2098_v44, 16  ;;  %v2080_v3 = vshrl.u32 %v2076_v48, 16 }
 0x270   : > { %v6923_v9 = vmul.f32 %v2008_v45, %v1993_v6  ;;  %v2018_v16 = vxor.u32 2147483648, %v6920_v30  ;;  %v2082_v39 = vshrl.u32 %v6901_v29, 16  ;;  %v2100_v23 = vmul.u32 %v2096_v26, %v2072_v0 }
 0x271   : > { %vm4614_vm11 = vcmp.lt.s32.totalorder %v4613_v7, 0  ;;  %vm2105_vm13 = vc.u32 %v2097_v18, %v2101_v47  ;;  %v2107_v50 = vadd.s32 %v2101_v47, %v2097_v18  ;;  %v2103_v51 = vshll.u32 %v2099_v59, 16 }
 0x272   : > { %v2015_v15 = vxor.u32 2147483648, %v6923_v9  ;;  %v2286_v52 = vsel %vm4614_vm11, 0, %v4613_v7  ;;  %v2106_v35 = vsel %vm2105_vm13, 1, %v7563_v20  ;;  %v4023_v6 = vsel %vm4021_vm1, %v2018_v16, %v6923_v9 }
 0x273   : > { %v2287_v61 = vsub.s32 32, %v2286_v52  ;;  %v2291_v40 = vsub.s32 4294967266, %v2286_v52  ;;  %v2091_v48 = vadd.s32 %v2090_v63, %v2080_v3  ;;  %v2288_v29 = vshll.u32 %v6905_v28, %v2286_v52 }
 0x274   : > { %v4020_v0 = vsel %vm4018_vm14, %v6920_v30, %v2015_v15  ;;  %v2108_v26 = vadd.s32 %v2106_v35, %v2100_v23  ;;  %vm2109_vm6 = vc.u32 %v2107_v50, %v2103_v51  ;;  %v2058_v45 = vsel %vm2054_vm15, %v2038_v1, %v6861_v58  ;;  %v7668_v23 = vld [vmem:[#allocation50_spill] sm:$0xff] }
 0x275   : > { %v4024_v32 = vsel %vm4017_vm7, %v4020_v0, %v4023_v6  ;;  %v2289_v53 = vshrl.u32 %v2271_v21, %v2287_v61  ;;  %v2292_v33 = vadd.s32 127, %v2291_v40  ;;  %v2110_v4 = vsel %vm2109_vm6, 1, %v7563_v20 }
 0x276   : > { %v6942_v31 = vsel %vm2010_vm12, nan, %v4024_v32  ;;  %v2102_v38 = vshrl.u32 %v2098_v44, 16  ;;  %v2112_v7 = vadd.s32 %v2110_v4, %v2108_v26  ;;  %v2060_v21 = vsel %vm2056_vm0, %v6850_v13, %v2059_v43 }
 0x277   : > { %4381 = vrot.lane.b32.xlu1 %v6942_v31, %s4790_s28  ;;  %v2290_v28 = vor.u32 %v2289_v53, %v2288_v29  ;;  %v2293_v34 = vshll.u32 %v2292_v33, 23  ;;  %v6952_v20 = vadd.s32 %v2091_v48, %v2082_v39  ;;  %v2104_v63 = vshrl.u32 %v2099_v59, 16 }
 0x278   : > { %v2113_v18 = vadd.s32 %v2112_v7, %v2102_v38  ;;  %v6954_v3 = vadd.s32 %v2107_v50, %v2103_v51  ;;  %v2301_v58 = vsub.s32 4, %v6897_v22  ;;  %v2061_v44 = vsel %vm2055_vm8, %v2058_v45, %v2060_v21  ;;  %v7672_v7 = vld [vmem:[#allocation52_spill] sm:$0xff] }
 0x279   : > { %v2294_v47 = vor.u32 4788187, %v2293_v34  ;;  %v616_v52 = vadd.s32 3, %v7668_v23  ;;  %v2297_v6 = vcvt.s32.f32 %v2290_v28  ;;  %vm2179_vm0 = vcmp.lt.s32.totalorder %v7653_v42, 0 }
 0x27a   : > { %v2114_v1 = vadd.s32 %v2113_v18, %v2104_v63  ;;  %vm2117_vm15 = vc.u32 %v6952_v20, %v6954_v3  ;;  %v2115_v59 = vmul.u32 %v6871_v60, %v2061_v44  ;;  %v461_v39 = vadd.s32 3, %v5702_v17 }
 0x27b   : > { %v2295_v35 = vand.u32 2147483647, %v2294_v47  ;;  %v2302_v25 = vsel %vm2179_vm0, %v2301_v58, %v6897_v22  ;;  %v617_v51 = vand.u32 3, %v616_v52  ;;  %v7669_v48 = vand.u32 2147483647, %v7653_v42  ;;  %v7676_v52 = vld [vmem:[#allocation35_spill] sm:$0xff] }
 0x27c   : > { %v2118_v13 = vadd.s32 1, %v2114_v1  ;;  %v462_v32 = vand.u32 3, %v461_v39  ;;  %v7670_v53 = vxor.u32 2147483648, %v5499_v27  ;;  %v7671_v4 = vxor.u32 2147483648, %v5490_v37 }
 0x27d   : > { %v2298_v43 = vmul.f32 %v2297_v6, %v2295_v35  ;;  %vm2178_vm8 = vcmp.le.f32.partialorder %v7669_v48, 0.7853982  ;;  %vm618_vm14 = vcmp.lt.s32.totalorder %v617_v51, 2  ;;  %vm619_vm1 = vcmp.eq.s32.totalorder %v617_v51, 0 }
 0x27e   : > { %v2119_v50 = vsel %vm2117_vm15, %v2118_v13, %v2114_v1  ;;  %v6971_v29 = vsel %vm2178_vm8, 0, %v2302_v25  ;;  %vm622_vm5 = vcmp.eq.s32.totalorder %v617_v51, 2  ;;  %v621_v33 = vsel %vm619_vm1, %v5490_v37, %v7670_v53  ;;  %v7678_v51 = vld [vmem:[#allocation19_spill] sm:$0xff] }
 0x27f   : > { %v2299_v61 = vxor.u32 2147483648, %v2298_v43  ;;  %v2120_v40 = vadd.s32 %v2119_v50, %v2115_v59  ;;  %v624_v45 = vsel %vm622_vm5, %v7671_v4, %v5499_v27  ;;  %vm4334_vm7 = vcmask 523264   ;;  %v7674_v27 = vld [vmem:[#allocation40_spill] sm:$0xff] }
 0x280   : > { %v625_v38 = vsel %vm618_vm14, %v621_v33, %v624_v45  ;;  %v1081_v28 = vadd.s32 3, %v7672_v7  ;;  %v6989_v18 = vand.u32 3, %v6971_v29  ;;  %vm464_vm11 = vcmp.eq.s32.totalorder %v462_v32, 0  ;;  %v7681_v7 = vld [vmem:[#allocation54_spill] sm:$0xff] }
 0x281   : > { %v2300_v0 = vsel %vm2179_vm0, %v2299_v61, %v2298_v43  ;;  %v2121_v26 = vadd.s32 536870912, %v2120_v40  ;;  %v6993_v58 = vsel %vm615_vm10, nan, %v625_v38  ;;  %vm467_vm13 = vcmp.eq.s32.totalorder %v462_v32, 2 }
 0x282   : > { %v6974_v60 = vsel %vm2178_vm8, %v7653_v42, %v2300_v0  ;;  %4336 = vst.msk [vmem:[%s6997_s3 + $0x10] sm:$0xff] %vm4334_vm7, %v6993_v58  ;;  %vm463_vm6 = vcmp.lt.s32.totalorder %v462_v32, 2  ;;  %v7675_v23 = vxor.u32 2147483648, %v7674_v27  ;;  %v7677_v6 = vxor.u32 2147483648, %v7676_v52 }
 0x283   : > { %v2305_v17 = vmul.f32 %v6974_v60, %v6974_v60  ;;  %v6978_v22 = vshrl.u32 %v2121_v26, 30  ;;  %v1082_v43 = vand.u32 3, %v1081_v28  ;;  %v771_v61 = vadd.s32 3, %v7678_v51 }
 0x284   : > { %v466_v35 = vsel %vm464_vm11, %v7676_v52, %v7675_v23  ;;  %v469_v13 = vsel %vm467_vm13, %v7677_v6, %v7674_v27  ;;  %vm4325_vm14 = vcmp.lt.s32.totalorder %v6989_v18, 2  ;;  %v7682_v28 = vxor.u32 2147483648, %v7681_v7  ;;  %v7685_v52 = vld [vmem:[#allocation6_spill] sm:$0xff] }
 0x285   : > { %v2306_v34 = vmul.f32 -0.001358992, %v2305_v17  ;;  %v2313_v21 = vmul.f32 -0.00019511016, %v2305_v17  ;;  %v2123_v63 = vshll.u32 %v6978_v22, 30  ;;  %v470_v50 = vsel %vm463_vm6, %v466_v35, %v469_v13 }
 0x286   : > { %v471_v33 = vsel %vm460_vm2, nan, %v470_v50  ;;  %vm1083_vm15 = vcmp.lt.s32.totalorder %v1082_v43, 2  ;;  %vm1084_vm0 = vcmp.eq.s32.totalorder %v1082_v43, 0  ;;  %vm1087_vm8 = vcmp.eq.s32.totalorder %v1082_v43, 2  ;;  %v7687_v43 = vld [vmem:[#allocation36_spill] sm:$0xff] }
 0x287   : > { %v2307_v44 = vadd.f32 0.041655596, %v2306_v34  ;;  %v2314_v1 = vadd.f32 0.008332121, %v2313_v21  ;;  %v6995_v37 = vsub.s32 %v2120_v40, %v2123_v63  ;;  %v7679_v40 = vld [vmem:[#allocation13_spill] sm:$0xff]  ;;  %4427 = vrot.lane.b32.xlu1 %v471_v33, %s4790_s28  ;;  %4335 = vst.msk [vmem:[%s6997_s3] sm:$0xff] %vm4334_vm7, %v471_v33  ;;  %vm2320_vm2 = vweird.f32 %v7653_v42 }
 0x288   : > { %v1391_v48 = vadd.s32 3, %v7679_v40  ;;  %v7683_v34 = vld [vmem:[#allocation53_spill] sm:$0xff]  ;;  %vm4326_vm1 = vcmp.eq.s32.totalorder %v6989_v18, 0  ;;  %vm4329_vm5 = vcmp.eq.s32.totalorder %v6989_v18, 2  ;;  %vm7686_vm11 = vweird.f32 %v7685_v52 }
 0x289   : > { %v2308_v59 = vmul.f32 %v2307_v44, %v2305_v17  ;;  %v2315_v39 = vmul.f32 %v2314_v1, %v2305_v17  ;;  %vm2125_vm10 = vcmp.lt.s32.totalorder %v6995_v37, 0  ;;  %v2126_v25 = vsub.s32 0, %v6995_v37 }
 0x28a   : > { %v1086_v21 = vsel %vm1084_vm0, %v7683_v34, %v7682_v28  ;;  %v7684_v63 = vxor.u32 2147483648, %v7683_v34  ;;  %v1392_v27 = vand.u32 3, %v1391_v48  ;;  %v2116_v6 = vadd.s32 %v6954_v3, %v6952_v20  ;;  %v7688_v3 = vld [vmem:[#allocation39_spill] sm:$0xff] }
 0x28b   : > { %v2309_v0 = vadd.f32 -0.4999988, %v2308_v59  ;;  %v2316_v26 = vadd.f32 -0.16666654, %v2315_v39  ;;  %v2127_v32 = vsel %vm2125_vm10, %v2126_v25, %v6995_v37  ;;  %v7036_v13 = vand.u32 3, %v771_v61 }
 0x28c   : > { %v2128_v4 = vclz %v2127_v32  ;;  %v1089_v47 = vsel %vm1087_vm8, %v7684_v63, %v7681_v7  ;;  %v926_v59 = vadd.s32 3, %v7687_v43  ;;  %v1856_v51 = vadd.s32 3, %v6607_v41  ;;  %v7692_v7 = vld [vmem:[#allocation47_spill] sm:$0xff] }
 0x28d   : > { %v2310_v45 = vmul.f32 %v2309_v0, %v2305_v17  ;;  %v2317_v38 = vmul.f32 %v2316_v26, %v2305_v17  ;;  %v1090_v1 = vsel %vm1083_vm15, %v1086_v21, %v1089_v47  ;;  %vm1394_vm6 = vcmp.eq.s32.totalorder %v1392_v27, 0  ;;  %v7690_v0 = vld [vmem:[#allocation34_spill] sm:$0xff] }
 0x28e   : > { %v4610_v44 = vadd.s32 4294967294, %v2128_v4  ;;  %v7032_v35 = vsel %vm7686_vm11, nan, %v1090_v1  ;;  %vm1397_vm10 = vcmp.eq.s32.totalorder %v1392_v27, 2  ;;  %vm1393_vm15 = vcmp.lt.s32.totalorder %v1392_v27, 2 }
 0x28f   : > { %v7027_v23 = vadd.f32 1.0, %v2310_v45  ;;  %v2318_v17 = vadd.f32 1.0, %v2317_v38  ;;  %4339 = vst.msk [vmem:[%s6997_s3 + $0x40] sm:$0xff] %vm4334_vm7, %v7032_v35  ;;  %v7689_v61 = vxor.u32 2147483648, %v7688_v3  ;;  %v1236_v28 = vadd.s32 3, %v7692_v7 }
 0x290   : > { %vm4611_vm13 = vcmp.lt.s32.totalorder %v4610_v44, 0  ;;  %vm7081_vm0 = vcmp.le.f32.partialorder %v2022_v24, 0.7853982  ;;  %vm773_vm8 = vcmp.lt.s32.totalorder %v7036_v13, 2  ;;  %v2146_v52 = vsub.s32 4, %v6978_v22 }
 0x291   : > { %v7043_v39 = vmul.f32 %v2318_v17, %v6974_v60  ;;  %v2328_v25 = vxor.u32 2147483648, %v7027_v23  ;;  %v2131_v50 = vsel %vm4611_vm13, 0, %v4610_v44  ;;  %v1396_v26 = vsel %vm1394_vm6, %v7690_v0, %v7689_v61 }
 0x292   : > { %v2132_v40 = vsub.s32 32, %v2131_v50  ;;  %v2136_v48 = vsub.s32 4294967266, %v2131_v50  ;;  %v7691_v60 = vxor.u32 2147483648, %v7690_v0  ;;  %v2133_v53 = vshll.u32 %v6995_v37, %v2131_v50 }
 0x293   : > { %v2325_v20 = vxor.u32 2147483648, %v7043_v39  ;;  %v4331_v38 = vsel %vm4329_vm5, %v2328_v25, %v7043_v39  ;;  %v1857_v44 = vand.u32 3, %v1856_v51  ;;  %v927_v17 = vand.u32 3, %v926_v59 }
 0x294   : > { %v1399_v32 = vsel %vm1397_vm10, %v7691_v60, %v7688_v3  ;;  %v2134_v33 = vshrl.u32 %v2116_v6, %v2132_v40  ;;  %v2137_v41 = vadd.s32 127, %v2136_v48  ;;  %v7091_v6 = vand.u32 3, %v1236_v28 }
 0x295   : > { %v1400_v4 = vsel %vm1393_vm15, %v1396_v26, %v1399_v32  ;;  %v4328_v45 = vsel %vm4326_vm1, %v7027_v23, %v2325_v20  ;;  %v1701_v24 = vadd.s32 3, %v6762_v57  ;;  %v2321_v43 = vadd.s32 3, %v6971_v29  ;;  %v7698_v32 = vld [vmem:[#allocation23_spill] sm:$0xff] }
 0x296   : > { %v7068_v37 = vsel %vm1390_vm3, nan, %v1400_v4  ;;  %v4332_v21 = vsel %vm4325_vm14, %v4328_v45, %v4331_v38  ;;  %v2135_v63 = vor.u32 %v2134_v33, %v2133_v53  ;;  %v2138_v47 = vshll.u32 %v2137_v41, 23  ;;  %v7702_v41 = vld [vmem:[#allocation14_spill] sm:$0xff]  ;;  %v7704_v45 = vld [vmem:[#allocation16_spill] sm:$0xff] }
 0x297   : > { %4341 = vst.msk [vmem:[%s6997_s3 + $0x60] sm:$0xff] %vm4334_vm7, %v7068_v37  ;;  %v7077_v1 = vsel %vm2320_vm2, nan, %v4332_v21  ;;  %vm2024_vm3 = vcmp.lt.s32.totalorder %v7664_v49, 0  ;;  %vm774_vm14 = vcmp.eq.s32.totalorder %v7036_v13, 0  ;;  %vm1859_vm1 = vcmp.eq.s32.totalorder %v1857_v44, 0 }
 0x298   : > { %4385 = vrot.lane.b32.xlu0 %v7077_v1, %s4790_s28  ;;  %v2139_v18 = vor.u32 4788187, %v2138_v47  ;;  %v2142_v51 = vcvt.s32.f32 %v2135_v63  ;;  %vm1862_vm5 = vcmp.eq.s32.totalorder %v1857_v44, 2  ;;  %vm777_vm11 = vcmp.eq.s32.totalorder %v7036_v13, 2 }
 0x299   : > { %vm1858_vm13 = vcmp.lt.s32.totalorder %v1857_v44, 2  ;;  %v7696_v40 = vxor.u32 2147483648, %v6662_v11  ;;  %v7697_v48 = vxor.u32 2147483648, %v6656_v14  ;;  %vm928_vm6 = vcmp.lt.s32.totalorder %v927_v17, 2 }
 0x29a   : > { %v2140_v50 = vand.u32 2147483647, %v2139_v18  ;;  %vm929_vm10 = vcmp.eq.s32.totalorder %v927_v17, 0  ;;  %v2147_v29 = vsel %vm2024_vm3, %v2146_v52, %v6978_v22  ;;  %vm932_vm15 = vcmp.eq.s32.totalorder %v927_v17, 2  ;;  %v7700_v22 = vld [vmem:[#allocation29_spill] sm:$0xff]  ;;  %v7706_v18 = vld [vmem:[#allocation12_spill] sm:$0xff] }
 0x29b   : > { %v1861_v59 = vsel %vm1859_vm1, %v6656_v14, %v7696_v40  ;;  %v1864_v3 = vsel %vm1862_vm5, %v7697_v48, %v6662_v11  ;;  %v1546_v0 = vadd.s32 3, %v6424_v62  ;;  %vm1239_vm1 = vcmp.eq.s32.totalorder %v7091_v6, 0 }
 0x29c   : > { %v2143_v61 = vmul.f32 %v2142_v51, %v2140_v50  ;;  %v1865_v57 = vsel %vm1858_vm13, %v1861_v59, %v1864_v3  ;;  %vm1242_vm5 = vcmp.eq.s32.totalorder %v7091_v6, 2  ;;  %v1702_v14 = vand.u32 3, %v1701_v24  ;;  %v7708_v24 = vld [vmem:[#allocation11_spill] sm:$0xff] }
 0x29d   : > { %v7108_v26 = vsel %vm1855_vm4, nan, %v1865_v57  ;;  %v2322_v11 = vand.u32 3, %v2321_v43  ;;  %v7699_v53 = vxor.u32 2147483648, %v7698_v32  ;;  %v7701_v10 = vxor.u32 2147483648, %v7700_v22 }
 0x29e   : > { %v2144_v60 = vxor.u32 2147483648, %v2143_v61  ;;  %4344 = vst.msk [vmem:[%s6997_s3 + $0x90] sm:$0xff] %vm4334_vm7, %v7108_v26  ;;  %v7703_v4 = vxor.u32 2147483648, %v7702_v41  ;;  %v7705_v7 = vxor.u32 2147483648, %v7704_v45  ;;  %vm1238_vm4 = vcmp.lt.s32.totalorder %v7091_v6, 2 }
 0x29f   : > { %v776_v62 = vsel %vm774_vm14, %v7700_v22, %v7699_v53  ;;  %v779_v33 = vsel %vm777_vm11, %v7701_v10, %v7698_v32  ;;  %v2149_v21 = vsel %vm7081_vm0, 0, %v2147_v29  ;;  %vm7707_vm14 = vweird.f32 %v7706_v18  ;;  %v7716_v22 = vld [vmem:[#allocation46_spill] sm:$0xff]  ;;  %v7718_v10 = vld [vmem:[#allocation17_spill] sm:$0xff] }
 0x2a0   : > { %v931_v38 = vsel %vm929_vm10, %v7704_v45, %v7703_v4  ;;  %v934_v28 = vsel %vm932_vm15, %v7705_v7, %v7702_v41  ;;  %v2145_v34 = vsel %vm2024_vm3, %v2144_v60, %v2143_v61  ;;  %v780_v63 = vsel %vm773_vm8, %v776_v62, %v779_v33 }
 0x2a1   : > { %v935_v47 = vsel %vm928_vm6, %v931_v38, %v934_v28  ;;  %v7142_v44 = vsel %vm7081_vm0, %v7664_v49, %v2145_v34  ;;  %v781_v52 = vsel %vm7707_vm14, nan, %v780_v63  ;;  %vm7709_vm11 = vweird.f32 %v7708_v24 }
 0x2a2   : > { %v936_v43 = vsel %vm7709_vm11, nan, %v935_v47  ;;  %v1547_v50 = vand.u32 3, %v1546_v0  ;;  %v2150_v51 = vmul.f32 %v7142_v44, %v7142_v44  ;;  %4431 = vrot.lane.b32.xlu0 %v781_v52, %s4790_s28  ;;  %4337 = vst.msk [vmem:[%s6997_s3 + $0x20] sm:$0xff] %vm4334_vm7, %v781_v52  ;;  %vm1703_vm3 = vcmp.lt.s32.totalorder %v1702_v14, 2 }
 0x2a3   : > { %4433 = vrot.lane.b32.xlu1 %v936_v43, %s4790_s28  ;;  %vm2324_vm8 = vcmp.eq.s32.totalorder %v2322_v11, 0  ;;  %vm2327_vm0 = vcmp.eq.s32.totalorder %v2322_v11, 2  ;;  %4338 = vst.msk [vmem:[%s6997_s3 + $0x30] sm:$0xff] %vm4334_vm7, %v936_v43  ;;  %vm1704_vm13 = vcmp.eq.s32.totalorder %v1702_v14, 0  ;;  %vm2323_vm6 = vcmp.lt.s32.totalorder %v2322_v11, 2 }
 0x2a4   : > { %v2326_v13 = vsel %vm2324_vm8, %v7027_v23, %v2325_v20  ;;  %v2329_v27 = vsel %vm2327_vm0, %v2328_v25, %v7043_v39  ;;  %v2151_v17 = vmul.f32 -0.001358992, %v2150_v51  ;;  %v2158_v40 = vmul.f32 -0.00019511016, %v2150_v51 }
 0x2a5   : > { %vm1707_vm10 = vcmp.eq.s32.totalorder %v1702_v14, 2  ;;  %v2330_v59 = vsel %vm2323_vm6, %v2326_v13, %v2329_v27  ;;  %vm1548_vm15 = vcmp.lt.s32.totalorder %v1547_v50, 2  ;;  %vm1549_vm14 = vcmp.eq.s32.totalorder %v1547_v50, 0  ;;  %v4362_v13 = vpop.permute.xlu0 %4361 }
 0x2a6   : > { %vm1552_vm11 = vcmp.eq.s32.totalorder %v1547_v50, 2  ;;  %v7164_v48 = vsel %vm2320_vm2, nan, %v2330_v59  ;;  %v2152_v3 = vadd.f32 0.041655596, %v2151_v17  ;;  %v2159_v61 = vadd.f32 0.008332121, %v2158_v40  ;;  %v4364_v50 = vpop.permute.xlu1 %4363 }
 0x2a7   : > { %4347 = vst.msk [vmem:[%s6997_s3 + $0xc0] sm:$0xff] %vm4334_vm7, %v7164_v48  ;;  %v2011_v20 = vadd.s32 3, %v6893_v55  ;;  %v7710_v23 = vxor.u32 2147483648, %v6346_v8  ;;  %v7711_v25 = vxor.u32 2147483648, %v6342_v2  ;;  %v1706_v57 = vsel %vm1704_vm13, %v6790_v19, %v1705_v56  ;;  %v7714_v56 = vld [vmem:[#allocation45_spill] sm:$0xff] }
 0x2a8   : > { %v7712_v55 = vxor.u32 2147483648, %v6790_v19  ;;  %v2153_v0 = vmul.f32 %v2152_v3, %v2150_v51  ;;  %v2160_v60 = vmul.f32 %v2159_v61, %v2150_v51  ;;  %vm7713_vm2 = vweird.f32 %v7608_v36 }
 0x2a9   : > { %v1241_v39 = vsel %vm1239_vm1, %v6342_v2, %v7710_v23  ;;  %v1244_v42 = vsel %vm1242_vm5, %v7711_v25, %v6346_v8  ;;  %v7715_v53 = vxor.u32 2147483648, %v7714_v56  ;;  %v2012_v12 = vand.u32 3, %v2011_v20  ;;  %v7720_v20 = vld [vmem:[#allocation41_spill] sm:$0xff] }
 0x2aa   : > { %v1709_v29 = vsel %vm1707_vm10, %v7712_v55, %v6793_v5  ;;  %v1245_v11 = vsel %vm1238_vm4, %v1241_v39, %v1244_v42  ;;  %v7717_v5 = vxor.u32 2147483648, %v7716_v22  ;;  %v2154_v62 = vadd.f32 -0.4999988, %v2153_v0  ;;  %v7721_v42 = vld [vmem:[#allocation44_spill] sm:$0xff] }
 0x2ab   : > { %v1710_v2 = vsel %vm1703_vm3, %v1706_v57, %v1709_v29  ;;  %v1246_v8 = vsel %vm7713_vm2, nan, %v1245_v11  ;;  %v1551_v19 = vsel %vm1549_vm14, %v7716_v22, %v7715_v53  ;;  %v2161_v14 = vadd.f32 -0.16666654, %v2160_v60  ;;  %4439 = vrot.lane.b32.xlu1 %v7068_v37, %s4790_s28  ;;  %v7722_v57 = vld [vmem:[#allocation28_spill] sm:$0xff]  ;;  %v7723_v29 = vld [vmem:[#allocation51_spill] sm:$0xff]  ;;  %v7724_v11 = vld [vmem:[#allocation42_spill] sm:$0xff] }
 0x2ac   : > { %v1711_v32 = vsel %vm1700_vm9, nan, %v1710_v2  ;;  %v1554_v6 = vsel %vm1552_vm11, %v7717_v5, %v7714_v56  ;;  %4437 = vrot.lane.b32.xlu0 %v1246_v8, %s4790_s28  ;;  %4340 = vst.msk [vmem:[%s6997_s3 + $0x50] sm:$0xff] %vm4334_vm7, %v1246_v8  ;;  %vm7719_vm9 = vweird.f32 %v7718_v10  ;;  %v2166_v41 = vadd.s32 3, %v2149_v21  ;;  %v7725_v2 = vld [vmem:[#allocation43_spill] sm:$0xff]  ;;  %v7727_v22 = vld [vmem:[#allocation8_spill] sm:$0xff] }
 0x2ad   : > { %v1555_v36 = vsel %vm1548_vm15, %v1551_v19, %v1554_v6  ;;  %4343 = vst.msk [vmem:[%s6997_s3 + $0x80] sm:$0xff] %vm4334_vm7, %v1711_v32  ;;  %v2155_v4 = vmul.f32 %v2154_v62, %v2150_v51  ;;  %v2162_v45 = vmul.f32 %v2161_v14, %v2150_v51  ;;  %v4170_v38 = vand.u32 3, %v2149_v21  ;;  %v4366_v51 = vpop.permute.xlu2 %4365  ;;  %v7728_v5 = vld [vmem:[#allocation48_spill] sm:$0xff] }
 0x2ae   : > { %v1556_v33 = vsel %vm7719_vm9, nan, %v1555_v36  ;;  %vm2014_vm1 = vcmp.eq.s32.totalorder %v2012_v12, 0  ;;  %vm2017_vm5 = vcmp.eq.s32.totalorder %v2012_v12, 2  ;;  %v2167_v37 = vand.u32 3, %v2166_v41 }
 0x2af   : > { %4342 = vst.msk [vmem:[%s6997_s3 + $0x70] sm:$0xff] %vm4334_vm7, %v1556_v33  ;;  %v2156_v7 = vadd.f32 1.0, %v2155_v4  ;;  %v2163_v28 = vadd.f32 1.0, %v2162_v45  ;;  %vm2013_vm4 = vcmp.lt.s32.totalorder %v2012_v12, 2  ;;  %v2016_v34 = vsel %vm2014_vm1, %v6920_v30, %v2015_v15 }
 0x2b0   : > { %v2019_v63 = vsel %vm2017_vm5, %v2018_v16, %v6923_v9  ;;  %vm4171_vm3 = vcmp.lt.s32.totalorder %v4170_v38, 2  ;;  %vm4172_vm8 = vcmp.eq.s32.totalorder %v4170_v38, 0  ;;  %vm4175_vm0 = vcmp.eq.s32.totalorder %v4170_v38, 2 }
 0x2b1   : > { %v2164_v47 = vmul.f32 %v2163_v28, %v7142_v44  ;;  %v2173_v18 = vxor.u32 2147483648, %v2156_v7  ;;  %v2020_v52 = vsel %vm2013_vm4, %v2016_v34, %v2019_v63  ;;  %vm2168_vm13 = vcmp.lt.s32.totalorder %v2167_v37, 2 }
 0x2b2   : > { %v2021_v21 = vsel %vm2010_vm12, nan, %v2020_v52  ;;  %vm2169_vm6 = vcmp.eq.s32.totalorder %v2167_v37, 0  ;;  %vm2172_vm10 = vcmp.eq.s32.totalorder %v2167_v37, 2  ;;  %vm2165_vm12 = vweird.f32 %v7664_v49  ;;  %v4370_v49 = vpop.permute.xlu1 %4369 }
 0x2b3   : > { %v2170_v24 = vxor.u32 2147483648, %v2164_v47  ;;  %4445 = vrot.lane.b32.xlu1 %v7108_v26, %s4790_s28  ;;  %4345 = vst.msk [vmem:[%s6997_s3 + $0xa0] sm:$0xff] %vm4334_vm7, %v2021_v21  ;;  %v4177_v46 = vsel %vm4175_vm0, %v2173_v18, %v2164_v47  ;;  %v2174_v16 = vsel %vm2172_vm10, %v2173_v18, %v2164_v47  ;;  %vm4400_vm15 = vcmask 1048064  }
 0x2b4   : > { %4443 = vrot.lane.b32.xlu0 %v1711_v32, %s4790_s28  ;;  %4402 = vst.msk [vmem:[%s6997_s3 + $0x10] sm:$0xff] %vm4400_vm15, %v4364_v50  ;;  %v7726_v32 = vld [vmem:[#allocation55_spill] sm:$0xff] }
 0x2b5   : > { %v4174_v30 = vsel %vm4172_vm8, %v2156_v7, %v2170_v24  ;;  %v2171_v9 = vsel %vm2169_vm6, %v2156_v7, %v2170_v24  ;;  %4403 = vst.msk [vmem:[%s6997_s3 + $0x20] sm:$0xff] %vm4400_vm15, %v4366_v51  ;;  %v4372_v27 = vpop.permute.xlu2 %4371 }
 0x2b6   : > { %v4178_v15 = vsel %vm4171_vm3, %v4174_v30, %v4177_v46  ;;  %v2175_v44 = vsel %vm2168_vm13, %v2171_v9, %v2174_v16  ;;  %4401 = vst.msk [vmem:[%s6997_s3] sm:$0xff] %vm4400_vm15, %v4362_v13 }
 0x2b7   : > { %v7229_v43 = vsel %vm2165_vm12, nan, %v4178_v15  ;;  %v2176_v26 = vsel %vm2165_vm12, nan, %v2175_v44  ;;  %4405 = vst.msk [vmem:[%s6997_s3 + $0x40] sm:$0xff] %vm4400_vm15, %v4370_v49 }
 0x2b8   : > { %4383 = vrot.lane.b32.xlu2 %v7229_v43, %s4790_s28  ;;  %4346 = vst.msk [vmem:[%s6997_s3 + $0xb0] sm:$0xff] %vm4334_vm7, %v2176_v26 }
 0x2b9   : > { %4406 = vst.msk [vmem:[%s6997_s3 + $0x50] sm:$0xff] %vm4400_vm15, %v4372_v27 }
 0x2ba   : > { %v4376_v40 = vpop.permute.xlu1 %4375 }
 0x2bb   : > { %4451 = vrot.lane.b32.xlu1 %v7164_v48, %s4790_s28  ;;  %4408 = vst.msk [vmem:[%s6997_s3 + $0x70] sm:$0xff] %vm4400_vm15, %v4376_v40 }
 0x2bc   : > { %4449 = vrot.lane.b32.xlu0 %v2176_v26, %s4790_s28 }
 0x2bd   : > { %v4378_v17 = vpop.permute.xlu2 %4377 }
 0x2be   : > { %4409 = vst.msk [vmem:[%s6997_s3 + $0x80] sm:$0xff] %vm4400_vm15, %v4378_v17 }
 0x2c0   : > { %4429 = vrot.lane.b32.xlu2 %v6993_v58, %s4790_s28  ;;  %v4368_v58 = vpop.permute.xlu0 %4367 }
 0x2c1   : > { %4404 = vst.msk [vmem:[%s6997_s3 + $0x30] sm:$0xff] %vm4400_vm15, %v4368_v58 }
 0x2c8   : > { %4435 = vrot.lane.b32.xlu2 %v7032_v35, %s4790_s28  ;;  %v4374_v59 = vpop.permute.xlu0 %4373 }
 0x2c9   : > { %4407 = vst.msk [vmem:[%s6997_s3 + $0x60] sm:$0xff] %vm4400_vm15, %v4374_v59 }
 0x2d0   : > { %4441 = vrot.lane.b32.xlu2 %v1556_v33, %s4790_s28  ;;  %v4380_v48 = vpop.permute.xlu0 %4379 }
 0x2d1   : > { %4410 = vst.msk [vmem:[%s6997_s3 + $0x90] sm:$0xff] %vm4400_vm15, %v4380_v48 }
 0x2d8   : > { %4447 = vrot.lane.b32.xlu2 %v2021_v21, %s4790_s28 }
 0x2e9   : > { %v4382_v35 = vpop.permute.xlu1 %4381 }
 0x2ea   : > { %4411 = vst.msk [vmem:[%s6997_s3 + $0xa0] sm:$0xff] %vm4400_vm15, %v4382_v35 }
 0x2f9   : > { %v4428_v3 = vpop.permute.xlu1 %4427 }
 0x2fa   : > { %4466 = vst.msk [vmem:[%s6997_s3 + $0x8] sm:$0xff] %vm4334_vm7, %v4428_v3 }
 0x2fb   : > { %4479 = vst.msk [vmem:[%s6997_s3 + $0x8] sm:$0xff] %vm4400_vm15, %v7720_v20 }
 0x30a   : > { %v4386_v61 = vpop.permute.xlu0 %4385 }
 0x30b   : > { %4413 = vst.msk [vmem:[%s6997_s3 + $0xc0] sm:$0xff] %vm4400_vm15, %v4386_v61 }
 0x312   : > { %v4384_v23 = vpop.permute.xlu2 %4383 }
 0x313   : > { %4412 = vst.msk [vmem:[%s6997_s3 + $0xb0] sm:$0xff] %vm4400_vm15, %v4384_v23 }
 0x314   : > { %v4432_v25 = vpop.permute.xlu0 %4431 }
 0x315   : > { %v4434_v39 = vpop.permute.xlu1 %4433  ;;  %4468 = vst.msk [vmem:[%s6997_s3 + $0x28] sm:$0xff] %vm4334_vm7, %v4432_v25 }
 0x316   : > { %4469 = vst.msk [vmem:[%s6997_s3 + $0x38] sm:$0xff] %vm4334_vm7, %v4434_v39 }
 0x317   : > { %4482 = vst.msk [vmem:[%s6997_s3 + $0x38] sm:$0xff] %vm4400_vm15, %v7721_v42 }
 0x318   : > { %4481 = vst.msk [vmem:[%s6997_s3 + $0x28] sm:$0xff] %vm4400_vm15, %v7722_v57 }
 0x31a   : > { %v4430_v55 = vpop.permute.xlu2 %4429 }
 0x31b   : > { %4467 = vst.msk [vmem:[%s6997_s3 + $0x18] sm:$0xff] %vm4334_vm7, %v4430_v55 }
 0x31c   : > { %4480 = vst.msk [vmem:[%s6997_s3 + $0x18] sm:$0xff] %vm4400_vm15, %v7723_v29 }
 0x31d   : > { %v4440_v0 = vpop.permute.xlu1 %4439 }
 0x31e   : > { %v4438_v60 = vpop.permute.xlu0 %4437  ;;  %4472 = vst.msk [vmem:[%s6997_s3 + $0x68] sm:$0xff] %vm4334_vm7, %v4440_v0 }
 0x31f   : > { %4485 = vst.msk [vmem:[%s6997_s3 + $0x68] sm:$0xff] %vm4400_vm15, %v7724_v11 }
 0x320   : > { %4471 = vst.msk [vmem:[%s6997_s3 + $0x58] sm:$0xff] %vm4334_vm7, %v4438_v60 }
 0x321   : > { %4484 = vst.msk [vmem:[%s6997_s3 + $0x58] sm:$0xff] %vm4400_vm15, %v7725_v2 }
 0x322   : > { %v4436_v8 = vpop.permute.xlu2 %4435 }
 0x323   : > { %4470 = vst.msk [vmem:[%s6997_s3 + $0x48] sm:$0xff] %vm4334_vm7, %v4436_v8 }
 0x324   : > { %4483 = vst.msk [vmem:[%s6997_s3 + $0x48] sm:$0xff] %vm4400_vm15, %v7726_v32 }
 0x325   : > { %v4446_v56 = vpop.permute.xlu1 %4445 }
 0x326   : > { %v4444_v53 = vpop.permute.xlu0 %4443  ;;  %4475 = vst.msk [vmem:[%s6997_s3 + $0x98] sm:$0xff] %vm4334_vm7, %v4446_v56 }
 0x327   : > { %4488 = vst.msk [vmem:[%s6997_s3 + $0x98] sm:$0xff] %vm4400_vm15, %v7727_v22 }
 0x328   : > { %4474 = vst.msk [vmem:[%s6997_s3 + $0x88] sm:$0xff] %vm4334_vm7, %v4444_v53 }
 0x329   : > { %4487 = vst.msk [vmem:[%s6997_s3 + $0x88] sm:$0xff] %vm4400_vm15, %v6815_v54 }
 0x32a   : > { %v4442_v19 = vpop.permute.xlu2 %4441 }
 0x32b   : > { %4473 = vst.msk [vmem:[%s6997_s3 + $0x78] sm:$0xff] %vm4334_vm7, %v4442_v19 }
 0x32c   : > { %4486 = vst.msk [vmem:[%s6997_s3 + $0x78] sm:$0xff] %vm4400_vm15, %v7728_v5 }
 0x32d   : > { %v4452_v6 = vpop.permute.xlu1 %4451 }
 0x32e   : > { %v4450_v62 = vpop.permute.xlu0 %4449  ;;  %4478 = vst.msk [vmem:[%s6997_s3 + $0xc8] sm:$0xff] %vm4334_vm7, %v4452_v6 }
 0x32f   : > { %4491 = vst.msk [vmem:[%s6997_s3 + $0xc8] sm:$0xff] %vm4400_vm15, %v7077_v1 }
 0x330   : > { %4477 = vst.msk [vmem:[%s6997_s3 + $0xb8] sm:$0xff] %vm4334_vm7, %v4450_v62 }
 0x331   : > { %4490 = vst.msk [vmem:[%s6997_s3 + $0xb8] sm:$0xff] %vm4400_vm15, %v7229_v43 }
 0x332   : > { %v4448_v54 = vpop.permute.xlu2 %4447 }
 0x333   : > { %4476 = vst.msk [vmem:[%s6997_s3 + $0xa8] sm:$0xff] %vm4334_vm7, %v4448_v54 }
 0x334   : > { %4489 = vst.msk [vmem:[%s6997_s3 + $0xa8] sm:$0xff] %vm4400_vm15, %v6942_v31 }
 0x335   : > { %4745 = shalt.err (!%p4742_p3)
}
 0x336   : > { %s4791_s26 = smov 256   ;;  %s4792_s27 = smov 16  }
 0x337   : > { %4662 = dma.vmem_to_hbm [thread:$0]  (%p4846_p5), %s4507_s8, 3328, %s4509_s13, %s4493_s14, %s4791_s26, %s4791_s26, %s4792_s27  }
 0x338 PF: > { %p4668_p4 = scmp.ge.s32.totalorder %s4780_s12, 2  ;;  %s4523_s28 = sand.u32 1, %s4768_s9  }
 0x339   : > { %s4524_s29 = scalar_lea.sflag [#allocation3], %s4523_s28 }
 0x33a   : > { %p4665_p7 = pnand %p4668_p4, %p4850_p6 }
 0x33c   : > { %p4666_p8 = pneg %p4665_p7 }
 0x33e   : > { %4763 = dma.done.wait (%p4666_p8), %s4524_s29, 3328  }
 0x33f   : > { %4765 = vsyncadd (%p4666_p8), %s4524_s29, 4294963968  ;;  %p12_p9 = scmp.ge.s32.totalorder %s4833_s15, 4   ;;  %s7729_s9 = smov %s4772_s10 }
 0x340   : > { %s7730_s10 = smov %s4776_s11  ;;  %s7731_s11 = smov %s4844_s18 }
 0x341   : > { %s7732_s12 = smov %s4833_s15  ;;  %14 = sbr.rel (!%p12_p9) target bundleno = 3 (0x3), region = 63 }
 0x346   :  { %4530 = vsyncpa [#allocation3], 1 }
 0x347   :  { %4532 = vsyncpa [#allocation3 + $0x1], 1 }

</bundles_post_ra>
